<compile_context>
chip_gen: v6e
topology: v6e:2x2x1
jax: 0.10.0
libtpu: 0.0.40
codegen_flags: <defaults>
</compile_context>

<pallas_src>
import functools

import jax
import jax.numpy as jnp
from jax import lax
from jax.experimental import pallas as pl
from jax.experimental.pallas import tpu as pltpu

EPS = 1e-5
_ACT_DTYPE = jnp.bfloat16          # storage / MXU dtype for intermediate activations


# --------------------------------------------------------------------------- #
# hardware-aware sizing helpers
# --------------------------------------------------------------------------- #
def _vmem_budget():
    """~75% of physical VMEM (96 MiB on 128-MiB v5e/v6e, 48 MiB on 64-MiB v7x)."""
    try:
        cap = int(pltpu.get_tpu_info().vmem_capacity_bytes)
    except Exception:                                   # no TPU info available
        cap = 128 * 1024 * 1024
    return max(32 * 1024 * 1024, min(int(cap * 0.75), cap - 16 * 1024 * 1024))


def _compiler_params(n_axes, vmem_limit):
    return pltpu.CompilerParams(
        dimension_semantics=("parallel",) * n_axes,
        vmem_limit_bytes=int(vmem_limit))


def _pick_row_tile(nrows, cin, c1, c3, budget):
    """Row tile for the flattened (NHW, C) 1x1 / elementwise stages."""
    # double-buffered per-row HBM<->VMEM bytes of the heaviest stage
    per_row = max(
        2 * (cin * 4 + c1 * 2),            # stage 1: x f32 in, y1 bf16 out
        2 * (c1 * 2 + c3 * 2),             # stage 3: y2 bf16 in, y3 bf16 out
        2 * (c3 * 2 + 2 * c3 * 4),         # stage 4: y3 bf16 + x f32 in, f32 out
    )
    cap = max(8, (budget // 2) // per_row)  # leave half the budget as headroom
    cands = (2048, 1024, 512, 256, 128, 64, 32, 16, 8)
    for cand in cands:                      # prefer >=2 grid steps (v7x: 2 TCs)
        if cand <= cap and 2 * cand <= nrows and nrows % cand == 0:
            return cand
    for cand in cands:
        if cand <= cap and cand <= nrows and nrows % cand == 0:
            return cand
    return nrows


def _pick_conv_rows(h, w, c1, budget):
    """Image rows per 3x3 grid step, sized against the VMEM budget."""
    # rough working set ~32 bytes / pixel / channel (bf16 center+output double-
    # buffered, f32 halo temporaries, bf16 3C concat slab, f32 accumulator)
    row_cap = max(1, (budget // 2) // max(32 * c1 * w, 1))
    pix_cap = 8192                          # flat matmul-M cap
    best = 1
    for t in range(1, h + 1):
        if h % t == 0 and t <= row_cap and t * w <= pix_cap and (t * w) % 8 == 0:
            best = t
    return best


# --------------------------------------------------------------------------- #
# in-kernel helpers
# --------------------------------------------------------------------------- #
def _write_stats(st_ref, y):
    # lane-dense per-tile partial BN statistics: [sum | sum of squares] per channel
    s = jnp.concatenate([jnp.sum(y, axis=0, keepdims=True),
                         jnp.sum(y * y, axis=0, keepdims=True)], axis=1)
    st_ref[...] = s.reshape(st_ref.shape)


# --------------------------------------------------------------------------- #
# kernels
# --------------------------------------------------------------------------- #
def conv1x1_stats_kernel(x_ref, w_ref, y_ref, st_ref):
    # y = x @ W1 on the MXU (bf16 operands, f32 accumulate); emit raw y + stats.
    y = jnp.dot(x_ref[...].astype(w_ref.dtype), w_ref[...],
                preferred_element_type=jnp.float32)
    y_ref[...] = y.astype(y_ref.dtype)
    _write_stats(st_ref, y)


def bn_relu_conv1x1_stats_kernel(y_ref, sc_ref, sh_ref, w_ref, o_ref, st_ref):
    # h = relu(bn_prev(y_prev)) fused in, then y = h @ W3; emit raw y + stats.
    h = jnp.maximum(y_ref[...].astype(jnp.float32) * sc_ref[...] + sh_ref[...], 0.0)
    y = jnp.dot(h.astype(w_ref.dtype), w_ref[...],
                preferred_element_type=jnp.float32)
    o_ref[...] = y.astype(o_ref.dtype)
    _write_stats(st_ref, y)


def bn_add_relu_kernel(y_ref, sc_ref, sh_ref, id_ref, o_ref):
    # out = relu(bn3(y3) + identity)
    y = y_ref[...].astype(jnp.float32) * sc_ref[...] + sh_ref[...]
    o_ref[...] = jnp.maximum(y + id_ref[...].astype(jnp.float32), 0.0).astype(o_ref.dtype)


def conv3x3_stats_kernel(yc_ref, yt_ref, yb_ref, w_ref, sc_ref, sh_ref,
                         y2_ref, st_ref, *, TH, W, C, num_hb):
    """3x3 / stride-1 / pad-1 conv over a block of TH image rows.

    yc_ref: (1, TH, W, C) raw (pre-BN) stage-1 output rows of this block.
    yt_ref/yb_ref: (1, 1, W, C) rows directly above/below the block (index_map
        clamps at the image border; masked to zero here).
    w_ref: (3, 3*C, C) — one (3C, C) weight per ky, kx taps stacked on channels.
    Fuses BN1+ReLU on the input, builds the horizontal halo with pltpu.roll,
    and accumulates the conv as 3 MXU matmuls with contraction K = 3*C.
    """
    hb = pl.program_id(1)
    scale = sc_ref[...]
    shift = sh_ref[...]

    def bn_relu(v):
        return jnp.maximum(v.astype(jnp.float32) * scale + shift, 0.0)

    center = bn_relu(yc_ref[0])                                    # (TH, W, C)
    top = bn_relu(yt_ref[0, 0]) * (hb > 0).astype(jnp.float32)     # (W, C)
    bot = bn_relu(yb_ref[0, 0]) * (hb < num_hb - 1).astype(jnp.float32)

    # rows incl. vertical halo, flattened so one image pixel == one matmul row.
    # NOTE: W % 8 == 0 keeps the ky*W row slices sublane-aligned (true here).
    nrows = (TH + 2) * W
    ext = jnp.concatenate([top[None], center, bot[None]], axis=0)  # (TH+2, W, C)
    ext = ext.reshape(nrows, C)

    # horizontal halo via XLU roll; zero the pixels that wrap across an
    # image-row boundary (w==0 has no left neighbour, w==W-1 no right one).
    wi = lax.broadcasted_iota(jnp.int32, ext.shape, 0) % W
    rsh = pltpu.roll(ext, shift=1, axis=0)              # pixel (r, w-1)  -> kx=0
    rsh = jnp.where(wi == 0, 0.0, rsh)
    lsh = pltpu.roll(ext, shift=nrows - 1, axis=0)      # pixel (r, w+1)  -> kx=2
    lsh = jnp.where(wi == W - 1, 0.0, lsh)

    # kx taps concatenated along channels -> 3 matmuls with K = 3*C.
    big = jnp.concatenate([rsh, ext, lsh], axis=1).astype(w_ref.dtype)  # (nrows, 3C)

    acc = jnp.dot(big[0:TH * W], w_ref[0], preferred_element_type=jnp.float32)
    for ky in (1, 2):
        acc = acc + jnp.dot(big[ky * W: ky * W + TH * W], w_ref[ky],
                            preferred_element_type=jnp.float32)

    y2_ref[...] = acc.astype(y2_ref.dtype)
    _write_stats(st_ref, acc)


# --------------------------------------------------------------------------- #
# wrapper
# --------------------------------------------------------------------------- #
def _bn_scale_shift(partial_stats, gamma, beta, count):
    # reduce per-tile [sum | sumsq] partials -> per-channel affine scale/shift
    s = jnp.sum(partial_stats, axis=(0, 1))             # (2*C,)
    c = s.shape[0] // 2
    mean = s[:c] / count
    # TODO(synk): E[x^2]-E[x]^2 in f32 is cancellation-prone for very large NHW
    # with strongly non-zero-mean activations; a centered/Welford combine would
    # be more robust.
    var = jnp.maximum(s[c:] / count - mean * mean, 0.0)  # biased batch variance
    scale = gamma.reshape(-1) * lax.rsqrt(var + EPS)
    shift = beta.reshape(-1) - mean * scale
    return scale.reshape(1, -1), shift.reshape(1, -1)


def bottleneck_forward(x_nhwc, params, *, row_tile=None, conv_row_block=None,
                       conv_center_buffers=2, out_dtype=jnp.float32,
                       vmem_budget=None):
    """Bottleneck forward, x_nhwc: (N, H, W, inplanes) float32, NHWC layout."""
    N, H, W, Cin = x_nhwc.shape
    C1 = params["w1"].shape[1]          # planes
    C3 = params["w3"].shape[1]          # planes * expansion (== Cin, no downsample)
    assert Cin == C3, "no-downsample Bottleneck requires inplanes == planes*4"
    NHW = N * H * W

    budget = int(vmem_budget or _vmem_budget())
    TM = row_tile or _pick_row_tile(NHW, Cin, C1, C3, budget)
    assert NHW % TM == 0
    TH = conv_row_block or _pick_conv_rows(H, W, C1, budget)
    assert H % TH == 0
    num_hb = H // TH
    assert (TH * W) % 8 == 0 or TH * W == NHW, "conv row-block must be 8-row aligned"
    nt = NHW // TM

    w1 = params["w1"].astype(_ACT_DTYPE)
    # conv2 taps (9, C, C) [ky*3+kx][ci, co] regrouped into 3 ky-weights of
    # shape (3*C, C) so the 3x3 runs as 3 MXU matmuls with K = 3*C.
    w2 = params["w2"].reshape(3, 3, C1, C1).reshape(3, 3 * C1, C1).astype(_ACT_DTYPE)
    w3 = params["w3"].astype(_ACT_DTYPE)

    x2d = x_nhwc.reshape(NHW, Cin)

    # --- stage 1 (pass A): y1 = x @ W1, + partial BN1 stats -----------------
    y1, st1 = pl.pallas_call(
        conv1x1_stats_kernel,
        grid=(nt,),
        in_specs=[pl.BlockSpec((TM, Cin), lambda i: (i, 0)),
                  pl.BlockSpec((Cin, C1), lambda i: (0, 0))],
        out_specs=(pl.BlockSpec((TM, C1), lambda i: (i, 0)),
                   pl.BlockSpec((1, 1, 2 * C1), lambda i: (i, 0, 0))),
        out_shape=(jax.ShapeDtypeStruct((NHW, C1), _ACT_DTYPE),
                   jax.ShapeDtypeStruct((nt, 1, 2 * C1), jnp.float32)),
        compiler_params=_compiler_params(1, budget),
    )(x2d, w1)
    sc1, sh1 = _bn_scale_shift(st1, params["g1"], params["b1"], NHW)

    # --- stage 2: fused BN1+ReLU -> 3x3 conv, + partial BN2 stats -----------
    y1_4d = y1.reshape(N, H, W, C1)
    center_spec = pl.BlockSpec((1, TH, W, C1), lambda n, hb: (n, hb, 0, 0))
    if conv_center_buffers > 2:     # optional deeper pipelining (sweepable)
        center_spec = pl.BlockSpec((1, TH, W, C1), lambda n, hb: (n, hb, 0, 0),
                                   pipeline_mode=pl.Buffered(conv_center_buffers))
    kern2 = functools.partial(conv3x3_stats_kernel, TH=TH, W=W, C=C1,
                              num_hb=num_hb)
    y2, st2 = pl.pallas_call(
        kern2,
        grid=(N, num_hb),
        in_specs=[
            center_spec,
            pl.BlockSpec((1, 1, W, C1),
                         lambda n, hb: (n, jnp.maximum(hb * TH - 1, 0), 0, 0)),
            pl.BlockSpec((1, 1, W, C1),
                         lambda n, hb: (n, jnp.minimum((hb + 1) * TH, H - 1), 0, 0)),
            pl.BlockSpec((3, 3 * C1, C1), lambda n, hb: (0, 0, 0)),
            pl.BlockSpec((1, C1), lambda n, hb: (0, 0)),
            pl.BlockSpec((1, C1), lambda n, hb: (0, 0)),
        ],
        out_specs=(
            pl.BlockSpec((TH * W, C1), lambda n, hb: (n * num_hb + hb, 0)),
            pl.BlockSpec((1, 1, 2 * C1), lambda n, hb: (n * num_hb + hb, 0, 0)),
        ),
        out_shape=(jax.ShapeDtypeStruct((NHW, C1), _ACT_DTYPE),
                   jax.ShapeDtypeStruct((N * num_hb, 1, 2 * C1), jnp.float32)),
        compiler_params=_compiler_params(2, budget),
    )(y1_4d, y1_4d, y1_4d, w2, sc1, sh1)
    sc2, sh2 = _bn_scale_shift(st2, params["g2"], params["b2"], NHW)

    # --- stage 3 (pass A): fused BN2+ReLU -> y3 = h2 @ W3, + BN3 stats ------
    y3, st3 = pl.pallas_call(
        bn_relu_conv1x1_stats_kernel,
        grid=(nt,),
        in_specs=[pl.BlockSpec((TM, C1), lambda i: (i, 0)),
                  pl.BlockSpec((1, C1), lambda i: (0, 0)),
                  pl.BlockSpec((1, C1), lambda i: (0, 0)),
                  pl.BlockSpec((C1, C3), lambda i: (0, 0))],
        out_specs=(pl.BlockSpec((TM, C3), lambda i: (i, 0)),
                   pl.BlockSpec((1, 1, 2 * C3), lambda i: (i, 0, 0))),
        out_shape=(jax.ShapeDtypeStruct((NHW, C3), _ACT_DTYPE),
                   jax.ShapeDtypeStruct((nt, 1, 2 * C3), jnp.float32)),
        compiler_params=_compiler_params(1, budget),
    )(y2, sc2, sh2, w3)
    sc3, sh3 = _bn_scale_shift(st3, params["g3"], params["b3"], NHW)

    # --- stage 4 (pass B of BN3): out = relu(bn3(y3) + identity) ------------
    out2d = pl.pallas_call(
        bn_add_relu_kernel,
        grid=(nt,),
        in_specs=[pl.BlockSpec((TM, C3), lambda i: (i, 0)),
                  pl.BlockSpec((1, C3), lambda i: (0, 0)),
                  pl.BlockSpec((1, C3), lambda i: (0, 0)),
                  pl.BlockSpec((TM, C3), lambda i: (i, 0))],
        out_specs=pl.BlockSpec((TM, C3), lambda i: (i, 0)),
        out_shape=jax.ShapeDtypeStruct((NHW, C3), out_dtype),
        compiler_params=_compiler_params(1, budget),
    )(y3, sc3, sh3, x2d)

    return out2d.reshape(N, H, W, C3)


# --------------------------------------------------------------------------- #
# pure-JAX reference (same math, XLA ops) for verification
# --------------------------------------------------------------------------- #
def bottleneck_reference(x_nhwc, params):
    def bn(y, g, b):
        mean = y.mean(axis=(0, 1, 2), keepdims=True)
        var = ((y - mean) ** 2).mean(axis=(0, 1, 2), keepdims=True)
        return (y - mean) * lax.rsqrt(var + EPS) * g.reshape(1, 1, 1, -1) + b.reshape(1, 1, 1, -1)

    C1 = params["w2"].shape[1]
    w2_hwio = params["w2"].reshape(3, 3, C1, C1)       # [ky, kx, ci, co]
    h = jnp.einsum("nhwc,cd->nhwd", x_nhwc, params["w1"])
    h = jax.nn.relu(bn(h, params["g1"], params["b1"]))
    h = lax.conv_general_dilated(h, w2_hwio, (1, 1), "SAME",
                                 dimension_numbers=("NHWC", "HWIO", "NHWC"))
    h = jax.nn.relu(bn(h, params["g2"], params["b2"]))
    h = jnp.einsum("nhwc,cd->nhwd", h, params["w3"])
    h = bn(h, params["g3"], params["b3"]) + x_nhwc
    return jax.nn.relu(h)


if __name__ == "__main__":
    # Small shapes consistent with Bottleneck(inplanes=16, planes=4), stride=(1,1),
    # downsample=None (so inplanes must equal planes * expansion = 16).
    # NOTE: tile/MXU efficiency must be judged at real ResNet dims (C1 >= 64);
    # this config only verifies correctness of the kernel structure.
    N, H, W = 2, 16, 16
    planes = 4
    inplanes = planes * 4
    C1, C3 = planes, planes * 4

    key = jax.random.PRNGKey(0)
    ks = jax.random.split(key, 10)
    params = dict(
        # conv1: PyTorch (planes, inplanes, 1, 1) -> (inplanes, planes)
        w1=0.2 * jax.random.normal(ks[0], (inplanes, C1), jnp.float32),
        # conv2: PyTorch (planes, planes, 3, 3) -> (9 taps [ky*3+kx], c_in, c_out)
        w2=0.2 * jax.random.normal(ks[1], (9, C1, C1), jnp.float32),
        # conv3: PyTorch (planes*4, planes, 1, 1) -> (planes, planes*4)
        w3=0.2 * jax.random.normal(ks[2], (C1, C3), jnp.float32),
        g1=1.0 + 0.1 * jax.random.normal(ks[3], (1, C1), jnp.float32),
        b1=0.1 * jax.random.normal(ks[4], (1, C1), jnp.float32),
        g2=1.0 + 0.1 * jax.random.normal(ks[5], (1, C1), jnp.float32),
        b2=0.1 * jax.random.normal(ks[6], (1, C1), jnp.float32),
        g3=1.0 + 0.1 * jax.random.normal(ks[7], (1, C3), jnp.float32),
        b3=0.1 * jax.random.normal(ks[8], (1, C3), jnp.float32),
    )
    x = jax.random.normal(ks[9], (N, H, W, inplanes), jnp.float32)  # NHWC

    # conv_row_block=8 -> 2 row-blocks per image so the cross-block halo path is
    # exercised; row tiling is auto-picked (512 rows -> 2 tiles of the NHW slab).
    fwd = jax.jit(functools.partial(bottleneck_forward, conv_row_block=8))
    out = jax.block_until_ready(fwd(x, params))
    ref = jax.block_until_ready(bottleneck_reference(x, params))

    assert out.shape == (N, H, W, C3), out.shape
    # combined abs/rel tolerance (intermediates are bf16, reference is f32)
    err = float(jnp.max(jnp.abs(out - ref) / (1.0 + jnp.abs(ref))))
    assert err < 5e-2, f"max combined err too large: {err}"
    print("KERNEL_OK")
</pallas_src>

<mosaic_0001>
module attributes {stable_mosaic.version = 11 : i64} {
  func.func @conv1x1_stats_kernel(%arg0: i32, %arg1: memref<256x16xf32, #tpu.memory_space<vmem>>, %arg2: memref<16x4xbf16, #tpu.memory_space<vmem>>, %arg3: memref<256x4xbf16, #tpu.memory_space<vmem>>, %arg4: memref<1x1x8xf32, #tpu.memory_space<vmem>>) attributes {dimension_semantics = [#tpu.dimension_semantics<parallel>], iteration_bounds = array<i64: 2>, scalar_prefetch = 0 : i64, scratch_operands = 0 : i64, tpu.core_type = #tpu.core_type<tc>, window_params = [{transform_indices = @transform_0, window_bounds = array<i64: 256, 16>}, {pipeline_mode = #tpu.pipeline_mode<synchronous>, transform_indices = @transform_1, window_bounds = array<i64: 16, 4>}, {transform_indices = @transform_2, window_bounds = array<i64: 256, 4>}, {transform_indices = @transform_3, window_bounds = array<i64: 1, 1, 8>}]} {
    %c0 = arith.constant 0 : index
    %c0_0 = arith.constant 0 : index
    %0 = vector.load %arg1[%c0, %c0_0] : memref<256x16xf32, #tpu.memory_space<vmem>>, vector<256x16xf32>
    %1 = arith.truncf %0 : vector<256x16xf32> to vector<256x16xbf16>
    %c0_1 = arith.constant 0 : index
    %c0_2 = arith.constant 0 : index
    %2 = vector.load %arg2[%c0_1, %c0_2] : memref<16x4xbf16, #tpu.memory_space<vmem>>, vector<16x4xbf16>
    %cst = arith.constant dense<0.000000e+00> : vector<256x4xf32>
    %3 = tpu.matmul %1, %2, %cst {dimension_numbers = #tpu.dot_dimension_numbers<[1], [0], [0], [1], [0, 0, 1, 1], [], []>} : vector<256x16xbf16>, vector<16x4xbf16>, vector<256x4xf32> -> vector<256x4xf32>
    %4 = arith.truncf %3 : vector<256x4xf32> to vector<256x4xbf16>
    %c0_3 = arith.constant 0 : index
    %c0_4 = arith.constant 0 : index
    %5 = vector.load %arg3[%c0_3, %c0_4] : memref<256x4xbf16, #tpu.memory_space<vmem>>, vector<256x4xbf16>
    tpu.vector_store %arg3[%c0_3, %c0_4], %4 {strides = array<i32>} : memref<256x4xbf16, #tpu.memory_space<vmem>>, vector<256x4xbf16>,
    %cst_5 = arith.constant dense<0.000000e+00> : vector<4xf32>
    %6 = vector.multi_reduction <add>, %3, %cst_5 [0] : vector<256x4xf32> to vector<4xf32>
    %7 = vector.shape_cast %6 : vector<4xf32> to vector<1x4xf32>
    %8 = arith.mulf %3, %3 : vector<256x4xf32>
    %cst_6 = arith.constant dense<0.000000e+00> : vector<4xf32>
    %9 = vector.multi_reduction <add>, %8, %cst_6 [0] : vector<256x4xf32> to vector<4xf32>
    %10 = vector.shape_cast %9 : vector<4xf32> to vector<1x4xf32>
    %11 = tpu.concatenate %7, %10 in 1 : vector<1x4xf32>, vector<1x4xf32> -> vector<1x8xf32>
    %12 = vector.shape_cast %11 : vector<1x8xf32> to vector<1x1x8xf32>
    %c0_7 = arith.constant 0 : index
    %c0_8 = arith.constant 0 : index
    %c0_9 = arith.constant 0 : index
    %13 = vector.load %arg4[%c0_7, %c0_8, %c0_9] : memref<1x1x8xf32, #tpu.memory_space<vmem>>, vector<1x1x8xf32>
    tpu.vector_store %arg4[%c0_7, %c0_8, %c0_9], %12 {strides = array<i32>} : memref<1x1x8xf32, #tpu.memory_space<vmem>>, vector<1x1x8xf32>,
    return
  }
  func.func @transform_0(%arg0: i32) -> (i32, i32) {
    %c0_i32 = arith.constant 0 : i32
    %c0_i32_0 = arith.constant 0 : i32
    return %arg0, %c0_i32 : i32, i32
  }
  func.func @transform_1(%arg0: i32) -> (i32, i32) {
    %c0_i32 = arith.constant 0 : i32
    %c0_i32_0 = arith.constant 0 : i32
    %c0_i32_1 = arith.constant 0 : i32
    return %c0_i32, %c0_i32_0 : i32, i32
  }
  func.func @transform_2(%arg0: i32) -> (i32, i32) {
    %c0_i32 = arith.constant 0 : i32
    %c0_i32_0 = arith.constant 0 : i32
    return %arg0, %c0_i32 : i32, i32
  }
  func.func @transform_3(%arg0: i32) -> (i32, i32, i32) {
    %c0_i32 = arith.constant 0 : i32
    %c0_i32_0 = arith.constant 0 : i32
    %c0_i32_1 = arith.constant 0 : i32
    return %arg0, %c0_i32, %c0_i32_0 : i32, i32, i32
  }
}

module attributes {stable_mosaic.version = 11 : i64} {
  func.func @conv3x3_stats_kernel(%arg0: i32, %arg1: i32, %arg2: memref<1x8x16x4xbf16, #tpu.memory_space<vmem>>, %arg3: memref<1x1x16x4xbf16, #tpu.memory_space<vmem>>, %arg4: memref<1x1x16x4xbf16, #tpu.memory_space<vmem>>, %arg5: memref<3x12x4xbf16, #tpu.memory_space<vmem>>, %arg6: memref<1x4xf32, #tpu.memory_space<vmem>>, %arg7: memref<1x4xf32, #tpu.memory_space<vmem>>, %arg8: memref<128x4xbf16, #tpu.memory_space<vmem>>, %arg9: memref<1x1x8xf32, #tpu.memory_space<vmem>>) attributes {dimension_semantics = [#tpu.dimension_semantics<parallel>, #tpu.dimension_semantics<parallel>], iteration_bounds = array<i64: 2, 2>, scalar_prefetch = 0 : i64, scratch_operands = 0 : i64, tpu.core_type = #tpu.core_type<tc>, window_params = [{transform_indices = @transform_0, window_bounds = array<i64: 1, 8, 16, 4>}, {transform_indices = @transform_1, window_bounds = array<i64: 1, 1, 16, 4>}, {transform_indices = @transform_2, window_bounds = array<i64: 1, 1, 16, 4>}, {pipeline_mode = #tpu.pipeline_mode<synchronous>, transform_indices = @transform_3, window_bounds = array<i64: 3, 12, 4>}, {pipeline_mode = #tpu.pipeline_mode<synchronous>, transform_indices = @transform_4, window_bounds = array<i64: 1, 4>}, {pipeline_mode = #tpu.pipeline_mode<synchronous>, transform_indices = @transform_5, window_bounds = array<i64: 1, 4>}, {transform_indices = @transform_6, window_bounds = array<i64: 128, 4>}, {transform_indices = @transform_7, window_bounds = array<i64: 1, 1, 8>}]} {
    %c0 = arith.constant 0 : index
    %c0_0 = arith.constant 0 : index
    %0 = vector.load %arg6[%c0, %c0_0] : memref<1x4xf32, #tpu.memory_space<vmem>>, vector<1x4xf32>
    %c0_1 = arith.constant 0 : index
    %c0_2 = arith.constant 0 : index
    %1 = vector.load %arg7[%c0_1, %c0_2] : memref<1x4xf32, #tpu.memory_space<vmem>>, vector<1x4xf32>
    %c0_3 = arith.constant 0 : index
    %c0_4 = arith.constant 0 : index
    %c0_5 = arith.constant 0 : index
    %c0_6 = arith.constant 0 : index
    %2 = vector.load %arg2[%c0_3, %c0_4, %c0_5, %c0_6] : memref<1x8x16x4xbf16, #tpu.memory_space<vmem>>, vector<1x8x16x4xbf16>
    %3 = vector.shape_cast %2 : vector<1x8x16x4xbf16> to vector<8x16x4xbf16>
    %4 = arith.extf %3 : vector<8x16x4xbf16> to vector<8x16x4xf32>
    %5 = vector.shape_cast %0 : vector<1x4xf32> to vector<1x1x4xf32>
    %6 = vector.broadcast %5 : vector<1x1x4xf32> to vector<8x16x4xf32>
    %7 = arith.mulf %4, %6 : vector<8x16x4xf32>
    %8 = vector.shape_cast %1 : vector<1x4xf32> to vector<1x1x4xf32>
    %9 = vector.broadcast %8 : vector<1x1x4xf32> to vector<8x16x4xf32>
    %10 = arith.addf %7, %9 : vector<8x16x4xf32>
    %cst = arith.constant 0.000000e+00 : f32
    %11 = vector.broadcast %cst : f32 to vector<8x16x4xf32>
    %12 = arith.maximumf %10, %11 : vector<8x16x4xf32>
    %c0_7 = arith.constant 0 : index
    %c0_8 = arith.constant 0 : index
    %c0_9 = arith.constant 0 : index
    %c0_10 = arith.constant 0 : index
    %13 = vector.load %arg3[%c0_7, %c0_8, %c0_9, %c0_10] : memref<1x1x16x4xbf16, #tpu.memory_space<vmem>>, vector<1x1x16x4xbf16>
    %14 = vector.shape_cast %13 : vector<1x1x16x4xbf16> to vector<16x4xbf16>
    %15 = arith.extf %14 : vector<16x4xbf16> to vector<16x4xf32>
    %16 = vector.broadcast %0 : vector<1x4xf32> to vector<16x4xf32>
    %17 = arith.mulf %15, %16 : vector<16x4xf32>
    %18 = vector.broadcast %1 : vector<1x4xf32> to vector<16x4xf32>
    %19 = arith.addf %17, %18 : vector<16x4xf32>
    %cst_11 = arith.constant 0.000000e+00 : f32
    %20 = vector.broadcast %cst_11 : f32 to vector<16x4xf32>
    %21 = arith.maximumf %19, %20 : vector<16x4xf32>
    %c0_i32 = arith.constant 0 : i32
    %22 = arith.cmpi sgt, %arg1, %c0_i32 : i32
    %23 = arith.extui %22 : i1 to i32
    %24 = arith.sitofp %23 : i32 to f32
    %25 = vector.broadcast %24 : f32 to vector<16x4xf32>
    %26 = arith.mulf %21, %25 : vector<16x4xf32>
    %c0_12 = arith.constant 0 : index
    %c0_13 = arith.constant 0 : index
    %c0_14 = arith.constant 0 : index
    %c0_15 = arith.constant 0 : index
    %27 = vector.load %arg4[%c0_12, %c0_13, %c0_14, %c0_15] : memref<1x1x16x4xbf16, #tpu.memory_space<vmem>>, vector<1x1x16x4xbf16>
    %28 = vector.shape_cast %27 : vector<1x1x16x4xbf16> to vector<16x4xbf16>
    %29 = arith.extf %28 : vector<16x4xbf16> to vector<16x4xf32>
    %30 = vector.broadcast %0 : vector<1x4xf32> to vector<16x4xf32>
    %31 = arith.mulf %29, %30 : vector<16x4xf32>
    %32 = vector.broadcast %1 : vector<1x4xf32> to vector<16x4xf32>
    %33 = arith.addf %31, %32 : vector<16x4xf32>
    %cst_16 = arith.constant 0.000000e+00 : f32
    %34 = vector.broadcast %cst_16 : f32 to vector<16x4xf32>
    %35 = arith.maximumf %33, %34 : vector<16x4xf32>
    %c1_i32 = arith.constant 1 : i32
    %36 = arith.cmpi slt, %arg1, %c1_i32 : i32
    %37 = arith.extui %36 : i1 to i32
    %38 = arith.sitofp %37 : i32 to f32
    %39 = vector.broadcast %38 : f32 to vector<16x4xf32>
    %40 = arith.mulf %35, %39 : vector<16x4xf32>
    %41 = vector.shape_cast %26 : vector<16x4xf32> to vector<1x16x4xf32>
    %42 = vector.shape_cast %40 : vector<16x4xf32> to vector<1x16x4xf32>
    %43 = tpu.concatenate %41, %12, %42 in 0 : vector<1x16x4xf32>, vector<8x16x4xf32>, vector<1x16x4xf32> -> vector<10x16x4xf32>
    %44 = vector.shape_cast %43 : vector<10x16x4xf32> to vector<160x4xf32>
    %45 = tpu.iota {dimensions = array<i32: 0>} : vector<160x4xi32>
    %c16_i32 = arith.constant 16 : i32
    %c0_i32_17 = arith.constant 0 : i32
    %46 = arith.cmpi eq, %c16_i32, %c0_i32_17 : i32
    %c1_i32_18 = arith.constant 1 : i32
    %47 = arith.select %46, %c1_i32_18, %c16_i32 : i32
    %48 = vector.broadcast %47 : i32 to vector<160x4xi32>
    %49 = arith.remsi %45, %48 : vector<160x4xi32>
    %c0_i32_19 = arith.constant 0 : i32
    %50 = vector.broadcast %c0_i32_19 : i32 to vector<160x4xi32>
    %51 = arith.cmpi ne, %49, %50 : vector<160x4xi32>
    %c0_i32_20 = arith.constant 0 : i32
    %52 = vector.broadcast %c0_i32_20 : i32 to vector<160x4xi32>
    %53 = arith.cmpi slt, %49, %52 : vector<160x4xi32>
    %c0_i32_21 = arith.constant 0 : i32
    %54 = arith.cmpi slt, %47, %c0_i32_21 : i32
    %55 = vector.broadcast %54 : i1 to vector<160x4xi1>
    %56 = vector.broadcast %55 : vector<160x4xi1> to vector<160x4xi1>
    %57 = arith.xori %53, %56 : vector<160x4xi1>
    %58 = arith.andi %57, %51 : vector<160x4xi1>
    %59 = vector.broadcast %47 : i32 to vector<160x4xi32>
    %60 = arith.addi %49, %59 : vector<160x4xi32>
    %61 = arith.select %58, %60, %49 : vector<160x4xi1>, vector<160x4xi32>
    %c1_i32_22 = arith.constant 1 : i32
    %62 = tpu.dynamic_rotate %44 by %c1_i32_22 dim 0 : vector<160x4xf32>, i32 -> vector<160x4xf32>
    %c0_i32_23 = arith.constant 0 : i32
    %63 = vector.broadcast %c0_i32_23 : i32 to vector<160x4xi32>
    %64 = arith.cmpi eq, %61, %63 : vector<160x4xi32>
    %cst_24 = arith.constant 0.000000e+00 : f32
    %65 = vector.broadcast %cst_24 : f32 to vector<160x4xf32>
    %66 = arith.select %64, %65, %62 : vector<160x4xi1>, vector<160x4xf32>
    %c159_i32 = arith.constant 159 : i32
    %67 = tpu.dynamic_rotate %44 by %c159_i32 dim 0 : vector<160x4xf32>, i32 -> vector<160x4xf32>
    %c15_i32 = arith.constant 15 : i32
    %68 = vector.broadcast %c15_i32 : i32 to vector<160x4xi32>
    %69 = arith.cmpi eq, %61, %68 : vector<160x4xi32>
    %cst_25 = arith.constant 0.000000e+00 : f32
    %70 = vector.broadcast %cst_25 : f32 to vector<160x4xf32>
    %71 = arith.select %69, %70, %67 : vector<160x4xi1>, vector<160x4xf32>
    %72 = tpu.concatenate %66, %44, %71 in 1 : vector<160x4xf32>, vector<160x4xf32>, vector<160x4xf32> -> vector<160x12xf32>
    %73 = arith.truncf %72 : vector<160x12xf32> to vector<160x12xbf16>
    %74 = vector.extract_strided_slice %73 {offsets = [0, 0], sizes = [128, 12], strides = [1, 1]} : vector<160x12xbf16> to vector<128x12xbf16>
    %c0_26 = arith.constant 0 : index
    %c0_27 = arith.constant 0 : index
    %c0_28 = arith.constant 0 : index
    %75 = vector.load %arg5[%c0_26, %c0_27, %c0_28] : memref<3x12x4xbf16, #tpu.memory_space<vmem>>, vector<1x12x4xbf16>
    %76 = vector.shape_cast %75 : vector<1x12x4xbf16> to vector<12x4xbf16>
    %cst_29 = arith.constant dense<0.000000e+00> : vector<128x4xf32>
    %77 = tpu.matmul %74, %76, %cst_29 {dimension_numbers = #tpu.dot_dimension_numbers<[1], [0], [0], [1], [0, 0, 1, 1], [], []>} : vector<128x12xbf16>, vector<12x4xbf16>, vector<128x4xf32> -> vector<128x4xf32>
    %78 = vector.extract_strided_slice %73 {offsets = [16, 0], sizes = [128, 12], strides = [1, 1]} : vector<160x12xbf16> to vector<128x12xbf16>
    %c1 = arith.constant 1 : index
    %c0_30 = arith.constant 0 : index
    %c0_31 = arith.constant 0 : index
    %79 = vector.load %arg5[%c1, %c0_30, %c0_31] : memref<3x12x4xbf16, #tpu.memory_space<vmem>>, vector<1x12x4xbf16>
    %80 = vector.shape_cast %79 : vector<1x12x4xbf16> to vector<12x4xbf16>
    %cst_32 = arith.constant dense<0.000000e+00> : vector<128x4xf32>
    %81 = tpu.matmul %78, %80, %cst_32 {dimension_numbers = #tpu.dot_dimension_numbers<[1], [0], [0], [1], [0, 0, 1, 1], [], []>} : vector<128x12xbf16>, vector<12x4xbf16>, vector<128x4xf32> -> vector<128x4xf32>
    %82 = arith.addf %77, %81 : vector<128x4xf32>
    %83 = vector.extract_strided_slice %73 {offsets = [32, 0], sizes = [128, 12], strides = [1, 1]} : vector<160x12xbf16> to vector<128x12xbf16>
    %c2 = arith.constant 2 : index
    %c0_33 = arith.constant 0 : index
    %c0_34 = arith.constant 0 : index
    %84 = vector.load %arg5[%c2, %c0_33, %c0_34] : memref<3x12x4xbf16, #tpu.memory_space<vmem>>, vector<1x12x4xbf16>
    %85 = vector.shape_cast %84 : vector<1x12x4xbf16> to vector<12x4xbf16>
    %cst_35 = arith.constant dense<0.000000e+00> : vector<128x4xf32>
    %86 = tpu.matmul %83, %85, %cst_35 {dimension_numbers = #tpu.dot_dimension_numbers<[1], [0], [0], [1], [0, 0, 1, 1], [], []>} : vector<128x12xbf16>, vector<12x4xbf16>, vector<128x4xf32> -> vector<128x4xf32>
    %87 = arith.addf %82, %86 : vector<128x4xf32>
    %88 = arith.truncf %87 : vector<128x4xf32> to vector<128x4xbf16>
    %c0_36 = arith.constant 0 : index
    %c0_37 = arith.constant 0 : index
    %89 = vector.load %arg8[%c0_36, %c0_37] : memref<128x4xbf16, #tpu.memory_space<vmem>>, vector<128x4xbf16>
    tpu.vector_store %arg8[%c0_36, %c0_37], %88 {strides = array<i32>} : memref<128x4xbf16, #tpu.memory_space<vmem>>, vector<128x4xbf16>,
    %cst_38 = arith.constant dense<0.000000e+00> : vector<4xf32>
    %90 = vector.multi_reduction <add>, %87, %cst_38 [0] : vector<128x4xf32> to vector<4xf32>
    %91 = vector.shape_cast %90 : vector<4xf32> to vector<1x4xf32>
    %92 = arith.mulf %87, %87 : vector<128x4xf32>
    %cst_39 = arith.constant dense<0.000000e+00> : vector<4xf32>
    %93 = vector.multi_reduction <add>, %92, %cst_39 [0] : vector<128x4xf32> to vector<4xf32>
    %94 = vector.shape_cast %93 : vector<4xf32> to vector<1x4xf32>
    %95 = tpu.concatenate %91, %94 in 1 : vector<1x4xf32>, vector<1x4xf32> -> vector<1x8xf32>
    %96 = vector.shape_cast %95 : vector<1x8xf32> to vector<1x1x8xf32>
    %c0_40 = arith.constant 0 : index
    %c0_41 = arith.constant 0 : index
    %c0_42 = arith.constant 0 : index
    %97 = vector.load %arg9[%c0_40, %c0_41, %c0_42] : memref<1x1x8xf32, #tpu.memory_space<vmem>>, vector<1x1x8xf32>
    tpu.vector_store %arg9[%c0_40, %c0_41, %c0_42], %96 {strides = array<i32>} : memref<1x1x8xf32, #tpu.memory_space<vmem>>, vector<1x1x8xf32>,
    return
  }
  func.func @transform_0(%arg0: i32, %arg1: i32) -> (i32, i32, i32, i32) {
    %c0_i32 = arith.constant 0 : i32
    %c0_i32_0 = arith.constant 0 : i32
    %c0_i32_1 = arith.constant 0 : i32
    return %arg0, %arg1, %c0_i32, %c0_i32_0 : i32, i32, i32, i32
  }
  func.func @transform_1(%arg0: i32, %arg1: i32) -> (i32, i32, i32, i32) {
    %c8_i32 = arith.constant 8 : i32
    %0 = arith.muli %arg1, %c8_i32 : i32
    %c1_i32 = arith.constant 1 : i32
    %1 = arith.subi %0, %c1_i32 : i32
    %c0_i32 = arith.constant 0 : i32
    %2 = arith.maxsi %1, %c0_i32 : i32
    %c0_i32_0 = arith.constant 0 : i32
    %c0_i32_1 = arith.constant 0 : i32
    %c0_i32_2 = arith.constant 0 : i32
    return %arg0, %2, %c0_i32_0, %c0_i32_1 : i32, i32, i32, i32
  }
  func.func @transform_2(%arg0: i32, %arg1: i32) -> (i32, i32, i32, i32) {
    %c1_i32 = arith.constant 1 : i32
    %0 = arith.addi %arg1, %c1_i32 : i32
    %c8_i32 = arith.constant 8 : i32
    %1 = arith.muli %0, %c8_i32 : i32
    %c15_i32 = arith.constant 15 : i32
    %2 = arith.minsi %1, %c15_i32 : i32
    %c0_i32 = arith.constant 0 : i32
    %c0_i32_0 = arith.constant 0 : i32
    %c0_i32_1 = arith.constant 0 : i32
    return %arg0, %2, %c0_i32, %c0_i32_0 : i32, i32, i32, i32
  }
  func.func @transform_3(%arg0: i32, %arg1: i32) -> (i32, i32, i32) {
    %c0_i32 = arith.constant 0 : i32
    %c0_i32_0 = arith.constant 0 : i32
    %c0_i32_1 = arith.constant 0 : i32
    %c0_i32_2 = arith.constant 0 : i32
    return %c0_i32, %c0_i32_0, %c0_i32_1 : i32, i32, i32
  }
  func.func @transform_4(%arg0: i32, %arg1: i32) -> (i32, i32) {
    %c0_i32 = arith.constant 0 : i32
    %c0_i32_0 = arith.constant 0 : i32
    %c0_i32_1 = arith.constant 0 : i32
    return %c0_i32, %c0_i32_0 : i32, i32
  }
  func.func @transform_5(%arg0: i32, %arg1: i32) -> (i32, i32) {
    %c0_i32 = arith.constant 0 : i32
    %c0_i32_0 = arith.constant 0 : i32
    %c0_i32_1 = arith.constant 0 : i32
    return %c0_i32, %c0_i32_0 : i32, i32
  }
  func.func @transform_6(%arg0: i32, %arg1: i32) -> (i32, i32) {
    %c2_i32 = arith.constant 2 : i32
    %0 = arith.muli %arg0, %c2_i32 : i32
    %1 = arith.addi %0, %arg1 : i32
    %c0_i32 = arith.constant 0 : i32
    %c0_i32_0 = arith.constant 0 : i32
    return %1, %c0_i32 : i32, i32
  }
  func.func @transform_7(%arg0: i32, %arg1: i32) -> (i32, i32, i32) {
    %c2_i32 = arith.constant 2 : i32
    %0 = arith.muli %arg0, %c2_i32 : i32
    %1 = arith.addi %0, %arg1 : i32
    %c0_i32 = arith.constant 0 : i32
    %c0_i32_0 = arith.constant 0 : i32
    %c0_i32_1 = arith.constant 0 : i32
    return %1, %c0_i32, %c0_i32_0 : i32, i32, i32
  }
}

module attributes {stable_mosaic.version = 11 : i64} {
  func.func @bn_add_relu_kernel(%arg0: i32, %arg1: memref<256x16xbf16, #tpu.memory_space<vmem>>, %arg2: memref<1x16xf32, #tpu.memory_space<vmem>>, %arg3: memref<1x16xf32, #tpu.memory_space<vmem>>, %arg4: memref<256x16xf32, #tpu.memory_space<vmem>>, %arg5: memref<256x16xf32, #tpu.memory_space<vmem>>) attributes {dimension_semantics = [#tpu.dimension_semantics<parallel>], iteration_bounds = array<i64: 2>, scalar_prefetch = 0 : i64, scratch_operands = 0 : i64, tpu.core_type = #tpu.core_type<tc>, window_params = [{transform_indices = @transform_0, window_bounds = array<i64: 256, 16>}, {pipeline_mode = #tpu.pipeline_mode<synchronous>, transform_indices = @transform_1, window_bounds = array<i64: 1, 16>}, {pipeline_mode = #tpu.pipeline_mode<synchronous>, transform_indices = @transform_2, window_bounds = array<i64: 1, 16>}, {transform_indices = @transform_3, window_bounds = array<i64: 256, 16>}, {transform_indices = @transform_4, window_bounds = array<i64: 256, 16>}]} {
    %c0 = arith.constant 0 : index
    %c0_0 = arith.constant 0 : index
    %0 = vector.load %arg1[%c0, %c0_0] : memref<256x16xbf16, #tpu.memory_space<vmem>>, vector<256x16xbf16>
    %1 = arith.extf %0 : vector<256x16xbf16> to vector<256x16xf32>
    %c0_1 = arith.constant 0 : index
    %c0_2 = arith.constant 0 : index
    %2 = vector.load %arg2[%c0_1, %c0_2] : memref<1x16xf32, #tpu.memory_space<vmem>>, vector<1x16xf32>
    %3 = vector.broadcast %2 : vector<1x16xf32> to vector<256x16xf32>
    %4 = arith.mulf %1, %3 : vector<256x16xf32>
    %c0_3 = arith.constant 0 : index
    %c0_4 = arith.constant 0 : index
    %5 = vector.load %arg3[%c0_3, %c0_4] : memref<1x16xf32, #tpu.memory_space<vmem>>, vector<1x16xf32>
    %6 = vector.broadcast %5 : vector<1x16xf32> to vector<256x16xf32>
    %7 = arith.addf %4, %6 : vector<256x16xf32>
    %c0_5 = arith.constant 0 : index
    %c0_6 = arith.constant 0 : index
    %8 = vector.load %arg4[%c0_5, %c0_6] : memref<256x16xf32, #tpu.memory_space<vmem>>, vector<256x16xf32>
    %9 = arith.addf %7, %8 : vector<256x16xf32>
    %cst = arith.constant 0.000000e+00 : f32
    %10 = vector.broadcast %cst : f32 to vector<256x16xf32>
    %11 = arith.maximumf %9, %10 : vector<256x16xf32>
    %c0_7 = arith.constant 0 : index
    %c0_8 = arith.constant 0 : index
    %12 = vector.load %arg5[%c0_7, %c0_8] : memref<256x16xf32, #tpu.memory_space<vmem>>, vector<256x16xf32>
    tpu.vector_store %arg5[%c0_7, %c0_8], %11 {strides = array<i32>} : memref<256x16xf32, #tpu.memory_space<vmem>>, vector<256x16xf32>,
    return
  }
  func.func @transform_0(%arg0: i32) -> (i32, i32) {
    %c0_i32 = arith.constant 0 : i32
    %c0_i32_0 = arith.constant 0 : i32
    return %arg0, %c0_i32 : i32, i32
  }
  func.func @transform_1(%arg0: i32) -> (i32, i32) {
    %c0_i32 = arith.constant 0 : i32
    %c0_i32_0 = arith.constant 0 : i32
    %c0_i32_1 = arith.constant 0 : i32
    return %c0_i32, %c0_i32_0 : i32, i32
  }
  func.func @transform_2(%arg0: i32) -> (i32, i32) {
    %c0_i32 = arith.constant 0 : i32
    %c0_i32_0 = arith.constant 0 : i32
    %c0_i32_1 = arith.constant 0 : i32
    return %c0_i32, %c0_i32_0 : i32, i32
  }
  func.func @transform_3(%arg0: i32) -> (i32, i32) {
    %c0_i32 = arith.constant 0 : i32
    %c0_i32_0 = arith.constant 0 : i32
    return %arg0, %c0_i32 : i32, i32
  }
  func.func @transform_4(%arg0: i32) -> (i32, i32) {
    %c0_i32 = arith.constant 0 : i32
    %c0_i32_0 = arith.constant 0 : i32
    return %arg0, %c0_i32 : i32, i32
  }
}

module attributes {stable_mosaic.version = 11 : i64} {
  func.func @bn_relu_conv1x1_stats_kernel(%arg0: i32, %arg1: memref<256x4xbf16, #tpu.memory_space<vmem>>, %arg2: memref<1x4xf32, #tpu.memory_space<vmem>>, %arg3: memref<1x4xf32, #tpu.memory_space<vmem>>, %arg4: memref<4x16xbf16, #tpu.memory_space<vmem>>, %arg5: memref<256x16xbf16, #tpu.memory_space<vmem>>, %arg6: memref<1x1x32xf32, #tpu.memory_space<vmem>>) attributes {dimension_semantics = [#tpu.dimension_semantics<parallel>], iteration_bounds = array<i64: 2>, scalar_prefetch = 0 : i64, scratch_operands = 0 : i64, tpu.core_type = #tpu.core_type<tc>, window_params = [{transform_indices = @transform_0, window_bounds = array<i64: 256, 4>}, {pipeline_mode = #tpu.pipeline_mode<synchronous>, transform_indices = @transform_1, window_bounds = array<i64: 1, 4>}, {pipeline_mode = #tpu.pipeline_mode<synchronous>, transform_indices = @transform_2, window_bounds = array<i64: 1, 4>}, {pipeline_mode = #tpu.pipeline_mode<synchronous>, transform_indices = @transform_3, window_bounds = array<i64: 4, 16>}, {transform_indices = @transform_4, window_bounds = array<i64: 256, 16>}, {transform_indices = @transform_5, window_bounds = array<i64: 1, 1, 32>}]} {
    %c0 = arith.constant 0 : index
    %c0_0 = arith.constant 0 : index
    %0 = vector.load %arg1[%c0, %c0_0] : memref<256x4xbf16, #tpu.memory_space<vmem>>, vector<256x4xbf16>
    %1 = arith.extf %0 : vector<256x4xbf16> to vector<256x4xf32>
    %c0_1 = arith.constant 0 : index
    %c0_2 = arith.constant 0 : index
    %2 = vector.load %arg2[%c0_1, %c0_2] : memref<1x4xf32, #tpu.memory_space<vmem>>, vector<1x4xf32>
    %3 = vector.broadcast %2 : vector<1x4xf32> to vector<256x4xf32>
    %4 = arith.mulf %1, %3 : vector<256x4xf32>
    %c0_3 = arith.constant 0 : index
    %c0_4 = arith.constant 0 : index
    %5 = vector.load %arg3[%c0_3, %c0_4] : memref<1x4xf32, #tpu.memory_space<vmem>>, vector<1x4xf32>
    %6 = vector.broadcast %5 : vector<1x4xf32> to vector<256x4xf32>
    %7 = arith.addf %4, %6 : vector<256x4xf32>
    %cst = arith.constant 0.000000e+00 : f32
    %8 = vector.broadcast %cst : f32 to vector<256x4xf32>
    %9 = arith.maximumf %7, %8 : vector<256x4xf32>
    %10 = arith.truncf %9 : vector<256x4xf32> to vector<256x4xbf16>
    %c0_5 = arith.constant 0 : index
    %c0_6 = arith.constant 0 : index
    %11 = vector.load %arg4[%c0_5, %c0_6] : memref<4x16xbf16, #tpu.memory_space<vmem>>, vector<4x16xbf16>
    %cst_7 = arith.constant dense<0.000000e+00> : vector<256x16xf32>
    %12 = tpu.matmul %10, %11, %cst_7 {dimension_numbers = #tpu.dot_dimension_numbers<[1], [0], [0], [1], [0, 0, 1, 1], [], []>} : vector<256x4xbf16>, vector<4x16xbf16>, vector<256x16xf32> -> vector<256x16xf32>
    %13 = arith.truncf %12 : vector<256x16xf32> to vector<256x16xbf16>
    %c0_8 = arith.constant 0 : index
    %c0_9 = arith.constant 0 : index
    %14 = vector.load %arg5[%c0_8, %c0_9] : memref<256x16xbf16, #tpu.memory_space<vmem>>, vector<256x16xbf16>
    tpu.vector_store %arg5[%c0_8, %c0_9], %13 {strides = array<i32>} : memref<256x16xbf16, #tpu.memory_space<vmem>>, vector<256x16xbf16>,
    %cst_10 = arith.constant dense<0.000000e+00> : vector<16xf32>
    %15 = vector.multi_reduction <add>, %12, %cst_10 [0] : vector<256x16xf32> to vector<16xf32>
    %16 = vector.shape_cast %15 : vector<16xf32> to vector<1x16xf32>
    %17 = arith.mulf %12, %12 : vector<256x16xf32>
    %cst_11 = arith.constant dense<0.000000e+00> : vector<16xf32>
    %18 = vector.multi_reduction <add>, %17, %cst_11 [0] : vector<256x16xf32> to vector<16xf32>
    %19 = vector.shape_cast %18 : vector<16xf32> to vector<1x16xf32>
    %20 = tpu.concatenate %16, %19 in 1 : vector<1x16xf32>, vector<1x16xf32> -> vector<1x32xf32>
    %21 = vector.shape_cast %20 : vector<1x32xf32> to vector<1x1x32xf32>
    %c0_12 = arith.constant 0 : index
    %c0_13 = arith.constant 0 : index
    %c0_14 = arith.constant 0 : index
    %22 = vector.load %arg6[%c0_12, %c0_13, %c0_14] : memref<1x1x32xf32, #tpu.memory_space<vmem>>, vector<1x1x32xf32>
    tpu.vector_store %arg6[%c0_12, %c0_13, %c0_14], %21 {strides = array<i32>} : memref<1x1x32xf32, #tpu.memory_space<vmem>>, vector<1x1x32xf32>,
    return
  }
  func.func @transform_0(%arg0: i32) -> (i32, i32) {
    %c0_i32 = arith.constant 0 : i32
    %c0_i32_0 = arith.constant 0 : i32
    return %arg0, %c0_i32 : i32, i32
  }
  func.func @transform_1(%arg0: i32) -> (i32, i32) {
    %c0_i32 = arith.constant 0 : i32
    %c0_i32_0 = arith.constant 0 : i32
    %c0_i32_1 = arith.constant 0 : i32
    return %c0_i32, %c0_i32_0 : i32, i32
  }
  func.func @transform_2(%arg0: i32) -> (i32, i32) {
    %c0_i32 = arith.constant 0 : i32
    %c0_i32_0 = arith.constant 0 : i32
    %c0_i32_1 = arith.constant 0 : i32
    return %c0_i32, %c0_i32_0 : i32, i32
  }
  func.func @transform_3(%arg0: i32) -> (i32, i32) {
    %c0_i32 = arith.constant 0 : i32
    %c0_i32_0 = arith.constant 0 : i32
    %c0_i32_1 = arith.constant 0 : i32
    return %c0_i32, %c0_i32_0 : i32, i32
  }
  func.func @transform_4(%arg0: i32) -> (i32, i32) {
    %c0_i32 = arith.constant 0 : i32
    %c0_i32_0 = arith.constant 0 : i32
    return %arg0, %c0_i32 : i32, i32
  }
  func.func @transform_5(%arg0: i32) -> (i32, i32, i32) {
    %c0_i32 = arith.constant 0 : i32
    %c0_i32_0 = arith.constant 0 : i32
    %c0_i32_1 = arith.constant 0 : i32
    return %arg0, %c0_i32, %c0_i32_0 : i32, i32, i32
  }
}

</mosaic_0001>

<bundles_post_ra>
// kernel: bottleneck_forward.7
= control target key start
LH: loop header
LB: loop body
LE: loop exit
PB: predicated region body
PF: predicated region fallthrough
CT: control target
= control target key end

     0   :  { %9 = vsyncpa [#allocation3], 0  ;;  %s1111_s0 = inlined_call_operand.vmem [shape: bf16[512,16], index: 0, kind: input, shape index: {}]   ;;  %s1112_s1 = inlined_call_operand.vmem [shape: f32[1,16], index: 1, kind: input, shape index: {}]   ;;  %s1113_s2 = inlined_call_operand.vmem [shape: f32[1,16], index: 2, kind: input, shape index: {}]   ;;  %s1114_s3 = inlined_call_operand.vmem [shape: f32[512,16], index: 3, kind: input, shape index: {}]   ;;  %s1115_s4 = inlined_call_operand.hbm [shape: f32[512,16], index: 4, kind: output, shape index: {}]  }
   0x1   :  { %11 = vsyncpa [#allocation3 + $0x1], 0  ;;  %s807_s15 = smov 0   ;;  %s809_s16 = smov 0  }
   0x2   :  { %s811_s17 = smov 0   ;;  %s813_s18 = smov 0  }
   0x3 LB: > { %s828_s19 = sadd.s32 4294967295, %s777_s18   ;;  %s580_s20 = sadd.s32 4294967294, %s777_s18   ;;  %s777_s18 = sphi %s813_s18, %s1121_s18   ;;  %s773_s17 = sphi %s811_s17, %s1120_s17   ;;  %s769_s16 = sphi %s809_s16, %s1119_s16   ;;  %s765_s15 = sphi %s807_s15, %s1118_s15  }
   0x4   : > { %s832_s21 = sadd.s32 1, %s777_s18   ;;  %s118_s22 = sadd.s32 1, %s773_s17 }
   0x5   : > { %s115_s23 = ssub.s32 %s777_s18, %s832_s21  ;;  %p128_p0 = scmp.ne.s32.totalorder %s773_s17, %s769_s16 }
   0x6   : > { %p116_p1 = scmp.eq.s32.totalorder %s115_s23, 0  ;;  %p129_p2 = scmp.eq.s32.totalorder %s828_s19, 1 }
   0x7   : > { %p134_p3 = scmp.ne.s32.totalorder %s769_s16, %s765_s15  ;;  %p135_p4 = scmp.eq.s32.totalorder %s580_s20, 1 }
   0x8   : > { %s843_s24 = scalar_select %p116_p1, %s773_s17, %s118_s22  }
   0x9   : > { %p845_p5 = por %p129_p2, %p128_p0  ;;  %p849_p6 = por %p135_p4, %p134_p3 }
   0xa   : > { %p583_p7 = scmp.ge.s32.totalorder %s777_s18, 1  ;;  %p177_p8 = scmp.lt.s32.totalorder %s777_s18, 3 }
   0xc   : > { %p178_p9 = pnand %p583_p7, %p177_p8 }
   0xd   : > { %s585_s27 = sshll.u32 (!%p178_p9), %s828_s19, 5  ;;  %s205_s12 = sand.u32 (!%p178_p9), 1, %s769_s16  }
   0xe   : > { %181 = sbr.rel (%p178_p9) target bundleno = 79 (0x4f), region = 36  ;;  %p209_p10 = scmp.lt.s32.totalorder (!%p178_p9), %s585_s27, 63 }
   0xf   : > { %s889_s20 = sshll.u32 (!%p178_p9), %s205_s12, 8  ;;  %s596_s23 = sshll.u32 (!%p178_p9), %s828_s19, 12 }
  0x10   : > { %s913_s22 = scalar_lea.vmem (!%p178_p9), [#allocation2], %s889_s20  ;;  %s1071_s30 = scalar_lea.sflag (!%p178_p9), [#allocation3], %s205_s12 }
  0x13   : > { %s1123_s27 = smov (!%p209_p10, %s585_s27), 63  ;;  %v865_v1 = vld [vmem:[%s1112_s1] ss:$0 sm:$0xff]  ;;  %vm459_vm0 = vcmask 130048  }
  0x14   : > { %s586_s28 = sshll.u32 %s1123_s27, 2  ;;  %s588_s29 = sshll.u32 %s1123_s27, 3  ;;  %v877_v5 = vld [vmem:[%s1113_s2] ss:$0 sm:$0xff] }
  0x15   : > { %s859_s6 = scalar_lea.vmem %s1111_s0, %s586_s28  ;;  %s870_s11 = scalar_lea.vmem %s1114_s3, %s588_s29 }
  0x16   : > { %v598_v0 = vld [vmem:[%s859_s6] sm:$0xff]   ;;  %v661_v4 = vld [vmem:[%s859_s6 + $0x8] sm:$0xff]   ;;  %v662_v8 = vld [vmem:[%s859_s6 + $0x10] sm:$0xff]   ;;  %s506_s27 = sshll.u32 %s913_s22, 4  ;;  %s1053_s29 = scalar_lea.hbm %s1115_s4, %s596_s23  ;;  %s1055_s27 = int_to_ptr.vmem [resolvable:$true] %s506_s27 }
  0x17   : > { %v599_v2 = vunpack.c.l.bf16 %v598_v0  ;;  %v600_v3 = vunpack.c.h.bf16 %v598_v0  ;;  %v603_v6 = vunpack.c.l.bf16 %v661_v4  ;;  %v604_v7 = vunpack.c.h.bf16 %v661_v4  ;;  %v663_v13 = vld [vmem:[%s859_s6 + $0x18] sm:$0xff]   ;;  %v363_v14 = vld [vmem:[%s870_s11] sm:$0xff]  ;;  %v364_v15 = vld [vmem:[%s870_s11 + $0x8] sm:$0xff]  ;;  %s717_s5 = scalar_lea.vmem %s1055_s27, 4096 }
  0x18   : > { %v607_v11 = vunpack.c.l.bf16 %v662_v8  ;;  %v608_v12 = vunpack.c.h.bf16 %v662_v8  ;;  %v611_v18 = vunpack.c.l.bf16 %v663_v13  ;;  %v612_v19 = vunpack.c.h.bf16 %v663_v13  ;;  %v365_v22 = vld [vmem:[%s870_s11 + $0x10] sm:$0xff]  ;;  %v366_v23 = vld [vmem:[%s870_s11 + $0x18] sm:$0xff]  ;;  %v367_v28 = vld [vmem:[%s870_s11 + $0x20] sm:$0xff]  ;;  %p718_p11 = scmp.ne.s32.totalorder %s1055_s27, %s717_s5 }
  0x19   : > { %v292_v9 = vmul.f32 %v599_v2, %v865_v1  ;;  %v293_v10 = vmul.f32 %v600_v3, %v865_v1  ;;  %v294_v16 = vmul.f32 %v603_v6, %v865_v1  ;;  %v295_v17 = vmul.f32 %v604_v7, %v865_v1  ;;  %v368_v29 = vld [vmem:[%s870_s11 + $0x28] sm:$0xff]  ;;  %v369_v36 = vld [vmem:[%s870_s11 + $0x30] sm:$0xff]  ;;  %v370_v37 = vld [vmem:[%s870_s11 + $0x38] sm:$0xff] }
  0x1a   : > { %v296_v24 = vmul.f32 %v607_v11, %v865_v1  ;;  %v297_v25 = vmul.f32 %v608_v12, %v865_v1  ;;  %v298_v30 = vmul.f32 %v611_v18, %v865_v1  ;;  %v299_v31 = vmul.f32 %v612_v19, %v865_v1  ;;  %v664_v42 = vld [vmem:[%s859_s6 + $0x20] sm:$0xff]   ;;  %v665_v47 = vld [vmem:[%s859_s6 + $0x28] sm:$0xff]   ;;  %v666_v52 = vld [vmem:[%s859_s6 + $0x30] sm:$0xff]   ;;  %p719_p12 = pnand %p718_p11, %p845_p5 }
  0x1b   : > { %v331_v20 = vadd.f32 %v877_v5, %v292_v9  ;;  %v332_v21 = vadd.f32 %v877_v5, %v293_v10  ;;  %v333_v26 = vadd.f32 %v877_v5, %v294_v16  ;;  %v334_v27 = vadd.f32 %v877_v5, %v295_v17  ;;  %v667_v57 = vld [vmem:[%s859_s6 + $0x38] sm:$0xff]   ;;  %v371_v3 = vld [vmem:[%s870_s11 + $0x40] sm:$0xff]  ;;  %v372_v4 = vld [vmem:[%s870_s11 + $0x48] sm:$0xff] }
  0x1c   : > { %v335_v34 = vadd.f32 %v877_v5, %v296_v24  ;;  %v336_v35 = vadd.f32 %v877_v5, %v297_v25  ;;  %v337_v40 = vadd.f32 %v877_v5, %v298_v30  ;;  %v338_v41 = vadd.f32 %v877_v5, %v299_v31  ;;  %v373_v12 = vld [vmem:[%s870_s11 + $0x50] sm:$0xff]  ;;  %v374_v13 = vld [vmem:[%s870_s11 + $0x58] sm:$0xff]  ;;  %v375_v18 = vld [vmem:[%s870_s11 + $0x60] sm:$0xff]  ;;  %p720_p13 = pneg %p719_p12 }
  0x1d   : > { %v395_v32 = vadd.f32 %v363_v14, %v331_v20  ;;  %v396_v33 = vadd.f32 %v364_v15, %v332_v21  ;;  %v397_v38 = vadd.f32 %v365_v22, %v333_v26  ;;  %v398_v39 = vadd.f32 %v366_v23, %v334_v27  ;;  %v376_v19 = vld [vmem:[%s870_s11 + $0x68] sm:$0xff]  ;;  %v377_v26 = vld [vmem:[%s870_s11 + $0x70] sm:$0xff]  ;;  %v378_v27 = vld [vmem:[%s870_s11 + $0x78] sm:$0xff] }
  0x1e   : > { %v399_v45 = vadd.f32 %v367_v28, %v335_v34  ;;  %v400_v46 = vadd.f32 %v368_v29, %v336_v35  ;;  %v401_v50 = vadd.f32 %v369_v36, %v337_v40  ;;  %v402_v51 = vadd.f32 %v370_v37, %v338_v41  ;;  %v669_v37 = vld [vmem:[%s859_s6 + $0x48] sm:$0xff]  }
  0x1f   : > { %v427_v43 = vmax.f32 %v395_v32, 0.0  ;;  %v428_v44 = vmax.f32 %v396_v33, 0.0  ;;  %v429_v48 = vmax.f32 %v397_v38, 0.0  ;;  %v430_v49 = vmax.f32 %v398_v39, 0.0  ;;  %v668_v32 = vld [vmem:[%s859_s6 + $0x40] sm:$0xff]  }
  0x20   : > { %v431_v53 = vmax.f32 %v399_v45, 0.0  ;;  %v432_v54 = vmax.f32 %v400_v46, 0.0  ;;  %v615_v55 = vunpack.c.l.bf16 %v664_v42  ;;  %v616_v56 = vunpack.c.h.bf16 %v664_v42  ;;  %v670_v42 = vld [vmem:[%s859_s6 + $0x50] sm:$0xff]  }
  0x21   : > { %460 = vst.msk [vmem:[%s913_s22] sm:$0xff] %vm459_vm0, %v427_v43  ;;  %461 = vst.msk [vmem:[%s913_s22 + $0x8] sm:$0xff] %vm459_vm0, %v428_v44  ;;  %v433_v58 = vmax.f32 %v401_v50, 0.0  ;;  %v434_v59 = vmax.f32 %v402_v51, 0.0  ;;  %v619_v60 = vunpack.c.l.bf16 %v665_v47  ;;  %v620_v61 = vunpack.c.h.bf16 %v665_v47  ;;  %v671_v47 = vld [vmem:[%s859_s6 + $0x58] sm:$0xff]  }
  0x22   : > { %462 = vst.msk [vmem:[%s913_s22 + $0x10] sm:$0xff] %vm459_vm0, %v429_v48  ;;  %463 = vst.msk [vmem:[%s913_s22 + $0x18] sm:$0xff] %vm459_vm0, %v430_v49  ;;  %v300_v62 = vmul.f32 %v615_v55, %v865_v1  ;;  %v301_v63 = vmul.f32 %v616_v56, %v865_v1  ;;  %v623_v0 = vunpack.c.l.bf16 %v666_v52  ;;  %v624_v2 = vunpack.c.h.bf16 %v666_v52  ;;  %v379_v56 = vld [vmem:[%s870_s11 + $0x80] sm:$0xff] }
  0x23   : > { %464 = vst.msk [vmem:[%s913_s22 + $0x20] sm:$0xff] %vm459_vm0, %v431_v53  ;;  %465 = vst.msk [vmem:[%s913_s22 + $0x28] sm:$0xff] %vm459_vm0, %v432_v54  ;;  %v302_v6 = vmul.f32 %v619_v60, %v865_v1  ;;  %v303_v7 = vmul.f32 %v620_v61, %v865_v1  ;;  %v627_v8 = vunpack.c.l.bf16 %v667_v57  ;;  %v628_v9 = vunpack.c.h.bf16 %v667_v57  ;;  %v380_v57 = vld [vmem:[%s870_s11 + $0x88] sm:$0xff] }
  0x24   : > { %466 = vst.msk [vmem:[%s913_s22 + $0x30] sm:$0xff] %vm459_vm0, %v433_v58  ;;  %467 = vst.msk [vmem:[%s913_s22 + $0x38] sm:$0xff] %vm459_vm0, %v434_v59  ;;  %v339_v10 = vadd.f32 %v877_v5, %v300_v62  ;;  %v340_v11 = vadd.f32 %v877_v5, %v301_v63  ;;  %v304_v14 = vmul.f32 %v623_v0, %v865_v1  ;;  %v631_v45 = vunpack.c.l.bf16 %v668_v32  ;;  %v381_v0 = vld [vmem:[%s870_s11 + $0x90] sm:$0xff] }
  0x25   : > { %v305_v15 = vmul.f32 %v624_v2, %v865_v1  ;;  %v341_v16 = vadd.f32 %v877_v5, %v302_v6  ;;  %v342_v17 = vadd.f32 %v877_v5, %v303_v7  ;;  %v306_v20 = vmul.f32 %v627_v8, %v865_v1  ;;  %v382_v2 = vld [vmem:[%s870_s11 + $0x98] sm:$0xff]  ;;  %v383_v8 = vld [vmem:[%s870_s11 + $0xa0] sm:$0xff] }
  0x26   : > { %v307_v21 = vmul.f32 %v628_v9, %v865_v1  ;;  %v403_v22 = vadd.f32 %v371_v3, %v339_v10  ;;  %v404_v23 = vadd.f32 %v372_v4, %v340_v11  ;;  %v343_v24 = vadd.f32 %v877_v5, %v304_v14  ;;  %v384_v9 = vld [vmem:[%s870_s11 + $0xa8] sm:$0xff] }
  0x27   : > { %v344_v25 = vadd.f32 %v877_v5, %v305_v15  ;;  %v405_v28 = vadd.f32 %v373_v12, %v341_v16  ;;  %v406_v29 = vadd.f32 %v374_v13, %v342_v17  ;;  %v345_v30 = vadd.f32 %v877_v5, %v306_v20  ;;  %v385_v16 = vld [vmem:[%s870_s11 + $0xb0] sm:$0xff]  ;;  %v386_v17 = vld [vmem:[%s870_s11 + $0xb8] sm:$0xff] }
  0x28   : > { %v346_v31 = vadd.f32 %v877_v5, %v307_v21  ;;  %v435_v33 = vmax.f32 %v403_v22, 0.0  ;;  %v436_v34 = vmax.f32 %v404_v23, 0.0  ;;  %v407_v35 = vadd.f32 %v375_v18, %v343_v24  ;;  %v672_v22 = vld [vmem:[%s859_s6 + $0x60] sm:$0xff]  }
  0x29   : > { %v408_v36 = vadd.f32 %v376_v19, %v344_v25  ;;  %v437_v38 = vmax.f32 %v405_v28, 0.0  ;;  %v438_v39 = vmax.f32 %v406_v29, 0.0  ;;  %v409_v40 = vadd.f32 %v377_v26, %v345_v30 }
  0x2a   : > { %v410_v41 = vadd.f32 %v378_v27, %v346_v31  ;;  %468 = vst.msk [vmem:[%s913_s22 + $0x40] sm:$0xff] %vm459_vm0, %v435_v33  ;;  %469 = vst.msk [vmem:[%s913_s22 + $0x48] sm:$0xff] %vm459_vm0, %v436_v34  ;;  %v439_v43 = vmax.f32 %v407_v35, 0.0  ;;  %v632_v46 = vunpack.c.h.bf16 %v668_v32  ;;  %v635_v50 = vunpack.c.l.bf16 %v669_v37  ;;  %v673_v27 = vld [vmem:[%s859_s6 + $0x68] sm:$0xff]   ;;  %v674_v32 = vld [vmem:[%s859_s6 + $0x70] sm:$0xff]  }
  0x2b   : > { %v440_v44 = vmax.f32 %v408_v36, 0.0  ;;  %470 = vst.msk [vmem:[%s913_s22 + $0x50] sm:$0xff] %vm459_vm0, %v437_v38  ;;  %471 = vst.msk [vmem:[%s913_s22 + $0x58] sm:$0xff] %vm459_vm0, %v438_v39  ;;  %v441_v48 = vmax.f32 %v409_v40, 0.0  ;;  %v636_v51 = vunpack.c.h.bf16 %v669_v37  ;;  %v308_v52 = vmul.f32 %v631_v45, %v865_v1  ;;  %v675_v37 = vld [vmem:[%s859_s6 + $0x78] sm:$0xff]   ;;  %s779_s6 = smov [#allocation2]  }
  0x2c   : > { %v442_v49 = vmax.f32 %v410_v41, 0.0  ;;  %472 = vst.msk [vmem:[%s913_s22 + $0x60] sm:$0xff] %vm459_vm0, %v439_v43  ;;  %v309_v53 = vmul.f32 %v632_v46, %v865_v1  ;;  %v639_v54 = vunpack.c.l.bf16 %v670_v42  ;;  %v640_v55 = vunpack.c.h.bf16 %v670_v42  ;;  %v387_v46 = vld [vmem:[%s870_s11 + $0xc0] sm:$0xff]  ;;  %s721_s7 = sshll.u32 %s779_s6, 4  ;;  %s722_s7 = int_to_ptr.vmem [resolvable:$false] %s721_s7 }
  0x2d   : > { %473 = vst.msk [vmem:[%s913_s22 + $0x68] sm:$0xff] %vm459_vm0, %v440_v44  ;;  %474 = vst.msk [vmem:[%s913_s22 + $0x70] sm:$0xff] %vm459_vm0, %v441_v48  ;;  %v310_v58 = vmul.f32 %v635_v50, %v865_v1  ;;  %v311_v59 = vmul.f32 %v636_v51, %v865_v1  ;;  %v643_v60 = vunpack.c.l.bf16 %v671_v47  ;;  %v644_v61 = vunpack.c.h.bf16 %v671_v47  ;;  %v388_v47 = vld [vmem:[%s870_s11 + $0xc8] sm:$0xff]  ;;  %s723_s8 = scalar_lea.vmem %s722_s7, 8192  ;;  %p724_p0 = scmp.lt.s32.totalorder %s1055_s27, %s722_s7 }
  0x2e   : > { %475 = vst.msk [vmem:[%s913_s22 + $0x78] sm:$0xff] %vm459_vm0, %v442_v49  ;;  %v347_v62 = vadd.f32 %v877_v5, %v308_v52  ;;  %v348_v63 = vadd.f32 %v877_v5, %v309_v53  ;;  %v312_v3 = vmul.f32 %v639_v54, %v865_v1  ;;  %v313_v4 = vmul.f32 %v640_v55, %v865_v1  ;;  %v389_v54 = vld [vmem:[%s870_s11 + $0xd0] sm:$0xff]  ;;  %v390_v55 = vld [vmem:[%s870_s11 + $0xd8] sm:$0xff]  ;;  %p725_p1 = scmp.lt.s32.totalorder %s723_s8, %s717_s5 }
  0x2f   : > { %v349_v6 = vadd.f32 %v877_v5, %v310_v58  ;;  %v350_v7 = vadd.f32 %v877_v5, %v311_v59  ;;  %v314_v10 = vmul.f32 %v643_v60, %v865_v1  ;;  %v315_v11 = vmul.f32 %v644_v61, %v865_v1  ;;  %v391_v60 = vld [vmem:[%s870_s11 + $0xe0] sm:$0xff]  ;;  %v392_v61 = vld [vmem:[%s870_s11 + $0xe8] sm:$0xff] }
  0x30   : > { %v411_v12 = vadd.f32 %v379_v56, %v347_v62  ;;  %v412_v13 = vadd.f32 %v380_v57, %v348_v63  ;;  %v351_v14 = vadd.f32 %v877_v5, %v312_v3  ;;  %v352_v15 = vadd.f32 %v877_v5, %v313_v4  ;;  %p726_p2 = por %p725_p1, %p724_p0 }
  0x31   : > { %v413_v18 = vadd.f32 %v381_v0, %v349_v6  ;;  %v414_v19 = vadd.f32 %v382_v2, %v350_v7  ;;  %v353_v20 = vadd.f32 %v877_v5, %v314_v10  ;;  %v354_v21 = vadd.f32 %v877_v5, %v315_v11  ;;  %v393_v6 = vld [vmem:[%s870_s11 + $0xf0] sm:$0xff]  ;;  %v394_v7 = vld [vmem:[%s870_s11 + $0xf8] sm:$0xff] }
  0x32   : > { %v443_v23 = vmax.f32 %v411_v12, 0.0  ;;  %v444_v24 = vmax.f32 %v412_v13, 0.0  ;;  %v415_v25 = vadd.f32 %v383_v8, %v351_v14  ;;  %v416_v26 = vadd.f32 %v384_v9, %v352_v15  ;;  %p727_p3 = pnand %p726_p2, %p720_p13 }
  0x33   : > { %v445_v28 = vmax.f32 %v413_v18, 0.0  ;;  %v446_v29 = vmax.f32 %v414_v19, 0.0  ;;  %v417_v30 = vadd.f32 %v385_v16, %v353_v20  ;;  %v418_v31 = vadd.f32 %v386_v17, %v354_v21 }
  0x34   : > { %476 = vst.msk [vmem:[%s913_s22 + $0x80] sm:$0xff] %vm459_vm0, %v443_v23  ;;  %477 = vst.msk [vmem:[%s913_s22 + $0x88] sm:$0xff] %vm459_vm0, %v444_v24  ;;  %v447_v33 = vmax.f32 %v415_v25, 0.0  ;;  %v448_v34 = vmax.f32 %v416_v26, 0.0  ;;  %v647_v35 = vunpack.c.l.bf16 %v672_v22  ;;  %v648_v36 = vunpack.c.h.bf16 %v672_v22 }
  0x35   : > { %478 = vst.msk [vmem:[%s913_s22 + $0x90] sm:$0xff] %vm459_vm0, %v445_v28  ;;  %479 = vst.msk [vmem:[%s913_s22 + $0x98] sm:$0xff] %vm459_vm0, %v446_v29  ;;  %v449_v38 = vmax.f32 %v417_v30, 0.0  ;;  %v450_v39 = vmax.f32 %v418_v31, 0.0  ;;  %v651_v40 = vunpack.c.l.bf16 %v673_v27  ;;  %v652_v41 = vunpack.c.h.bf16 %v673_v27 }
  0x36   : > { %480 = vst.msk [vmem:[%s913_s22 + $0xa0] sm:$0xff] %vm459_vm0, %v447_v33  ;;  %481 = vst.msk [vmem:[%s913_s22 + $0xa8] sm:$0xff] %vm459_vm0, %v448_v34  ;;  %v316_v42 = vmul.f32 %v647_v35, %v865_v1  ;;  %v317_v43 = vmul.f32 %v648_v36, %v865_v1  ;;  %v655_v44 = vunpack.c.l.bf16 %v674_v32  ;;  %v656_v45 = vunpack.c.h.bf16 %v674_v32 }
  0x37   : > { %482 = vst.msk [vmem:[%s913_s22 + $0xb0] sm:$0xff] %vm459_vm0, %v449_v38  ;;  %483 = vst.msk [vmem:[%s913_s22 + $0xb8] sm:$0xff] %vm459_vm0, %v450_v39  ;;  %v318_v48 = vmul.f32 %v651_v40, %v865_v1  ;;  %v319_v49 = vmul.f32 %v652_v41, %v865_v1  ;;  %v659_v50 = vunpack.c.l.bf16 %v675_v37  ;;  %v660_v51 = vunpack.c.h.bf16 %v675_v37 }
  0x38   : > { %v355_v52 = vadd.f32 %v877_v5, %v316_v42  ;;  %v356_v53 = vadd.f32 %v877_v5, %v317_v43  ;;  %v320_v56 = vmul.f32 %v655_v44, %v865_v1  ;;  %v321_v57 = vmul.f32 %v656_v45, %v865_v1 }
  0x39   : > { %v357_v58 = vadd.f32 %v877_v5, %v318_v48  ;;  %v358_v59 = vadd.f32 %v877_v5, %v319_v49  ;;  %v322_v62 = vmul.f32 %v659_v50, %v865_v1  ;;  %v323_v63 = vmul.f32 %v660_v51, %v865_v1 }
  0x3a   : > { %v419_v0 = vadd.f32 %v387_v46, %v355_v52  ;;  %v420_v2 = vadd.f32 %v388_v47, %v356_v53  ;;  %v359_v3 = vadd.f32 %v877_v5, %v320_v56  ;;  %v360_v4 = vadd.f32 %v877_v5, %v321_v57 }
  0x3b   : > { %v421_v8 = vadd.f32 %v389_v54, %v357_v58  ;;  %v422_v9 = vadd.f32 %v390_v55, %v358_v59  ;;  %v361_v10 = vadd.f32 %v877_v5, %v322_v62  ;;  %v362_v11 = vadd.f32 %v877_v5, %v323_v63 }
  0x3c   : > { %v451_v1 = vmax.f32 %v419_v0, 0.0  ;;  %v452_v12 = vmax.f32 %v420_v2, 0.0  ;;  %v423_v13 = vadd.f32 %v391_v60, %v359_v3  ;;  %v424_v14 = vadd.f32 %v392_v61, %v360_v4 }
  0x3d   : > { %v453_v15 = vmax.f32 %v421_v8, 0.0  ;;  %v454_v16 = vmax.f32 %v422_v9, 0.0  ;;  %v425_v17 = vadd.f32 %v393_v6, %v361_v10  ;;  %v426_v18 = vadd.f32 %v394_v7, %v362_v11 }
  0x3e   : > { %484 = vst.msk [vmem:[%s913_s22 + $0xc0] sm:$0xff] %vm459_vm0, %v451_v1  ;;  %485 = vst.msk [vmem:[%s913_s22 + $0xc8] sm:$0xff] %vm459_vm0, %v452_v12  ;;  %v455_v5 = vmax.f32 %v423_v13, 0.0  ;;  %v456_v19 = vmax.f32 %v424_v14, 0.0 }
  0x3f   : > { %486 = vst.msk [vmem:[%s913_s22 + $0xd0] sm:$0xff] %vm459_vm0, %v453_v15  ;;  %487 = vst.msk [vmem:[%s913_s22 + $0xd8] sm:$0xff] %vm459_vm0, %v454_v16  ;;  %v457_v20 = vmax.f32 %v425_v17, 0.0  ;;  %v458_v21 = vmax.f32 %v426_v18, 0.0 }
  0x40   : > { %488 = vst.msk [vmem:[%s913_s22 + $0xe0] sm:$0xff] %vm459_vm0, %v455_v5  ;;  %489 = vst.msk [vmem:[%s913_s22 + $0xe8] sm:$0xff] %vm459_vm0, %v456_v19 }
  0x41   : > { %490 = vst.msk [vmem:[%s913_s22 + $0xf0] sm:$0xff] %vm459_vm0, %v457_v20  ;;  %491 = vst.msk [vmem:[%s913_s22 + $0xf8] sm:$0xff] %vm459_vm0, %v458_v21 }
  0x42   : > { %730 = shalt.err (!%p727_p3)
}
  0x43   : > { %s731_s9 = scalar_lea.hbm %s1053_s29, 4096  ;;  %s735_s12 = scalar_lea.hbm %s1115_s4, 8192 }
  0x44   : > { %p732_p4 = scmp.ne.s32.totalorder %s1053_s29, %s731_s9  ;;  %p736_p9 = scmp.lt.s32.totalorder %s1053_s29, %s1115_s4 }
  0x45   : > { %p737_p10 = scmp.lt.s32.totalorder %s735_s12, %s731_s9 }
  0x46   : > { %p733_p7 = pnand %p732_p4, %p845_p5 }
  0x47   : > { %p738_p11 = por %p737_p10, %p736_p9 }
  0x48   : > { %p734_p8 = pneg %p733_p7 }
  0x4a   : > { %p739_p12 = pnand %p738_p11, %p734_p8 }
  0x4c   : > { %742 = shalt.err (!%p739_p12)
}
  0x4d   : > { %s780_s20 = smov 128   ;;  %s781_s22 = smov 8  }
  0x4e   : > { %676 = dma.vmem_to_hbm [thread:$0]  (%p845_p5), %s1055_s27, 4096, %s1053_s29, %s1071_s30, %s780_s20, %s780_s20, %s781_s22  }
  0x4f PF: > { %p682_p13 = scmp.ge.s32.totalorder %s777_s18, 2  ;;  %s521_s23 = sand.u32 1, %s765_s15  }
  0x50   : > { %s522_s19 = scalar_lea.sflag [#allocation3], %s521_s23 }
  0x51   : > { %p679_p0 = pnand %p682_p13, %p849_p6 }
  0x53   : > { %p680_p1 = pneg %p679_p0 }
  0x55   : > { %760 = dma.done.wait (%p680_p1), %s522_s19, 4096  }
  0x56   : > { %762 = vsyncadd (%p680_p1), %s522_s19, 4294963200  ;;  %p14_p2 = scmp.ge.s32.totalorder %s832_s21, 4   ;;  %s1118_s15 = smov %s769_s16 }
  0x57   : > { %s1119_s16 = smov %s773_s17  ;;  %s1120_s17 = smov %s843_s24 }
  0x58   : > { %s1121_s18 = smov %s832_s21  ;;  %16 = sbr.rel (!%p14_p2) target bundleno = 3 (0x3), region = 74 }
  0x5d   :  { %527 = vsyncpa [#allocation3], 1 }
  0x5e   :  { %529 = vsyncpa [#allocation3 + $0x1], 1 }

// kernel: bottleneck_forward.4
= control target key start
LH: loop header
LB: loop body
LE: loop exit
PB: predicated region body
PF: predicated region fallthrough
CT: control target
= control target key end

     0   :  { %9 = vsyncpa [#allocation3], 0  ;;  %s1580_s0 = inlined_call_operand.hbm [shape: f32[512,16], index: 0, kind: input, shape index: {}]   ;;  %s1581_s1 = inlined_call_operand.vmem [shape: bf16[16,4], index: 1, kind: input, shape index: {}]   ;;  %s1582_s2 = inlined_call_operand.vmem [shape: bf16[512,4], index: 2, kind: output, shape index: {0}]   ;;  %s1583_s3 = inlined_call_operand.vmem [shape: f32[2,1,8], index: 3, kind: output, shape index: {1}]  }
   0x1   :  { %11 = vsyncpa [#allocation3 + $0x1], 0  ;;  %s1179_s12 = smov 0   ;;  %s1181_s13 = smov 0  }
   0x2   :  { %s1183_s14 = smov 0   ;;  %s1185_s15 = smov 0  }
   0x3 LB: > { %s1198_s16 = sadd.s32 4294967295, %s1153_s15   ;;  %s1201_s17 = sadd.s32 1, %s1153_s15   ;;  %s1153_s15 = sphi %s1185_s15, %s1592_s15   ;;  %s1149_s14 = sphi %s1183_s14, %s1591_s14   ;;  %s1145_s13 = sphi %s1181_s13, %s1590_s13   ;;  %s1141_s12 = sphi %s1179_s12, %s1589_s12  }
   0x4   : > { %s21_s18 = ssub.s32 %s1153_s15, %s1201_s17  ;;  %s24_s19 = sadd.s32 1, %s1149_s14 }
   0x5   : > { %p22_p0 = scmp.eq.s32.totalorder %s21_s18, 0  ;;  %p31_p1 = scmp.ne.s32.totalorder %s1149_s14, %s1145_s13 }
   0x6   : > { %p32_p2 = scmp.eq.s32.totalorder %s1153_s15, 0  ;;  %p37_p3 = scmp.ne.s32.totalorder %s1145_s13, %s1141_s12 }
   0x7   : > { %s1211_s20 = scalar_select %p22_p0, %s1149_s14, %s24_s19  }
   0x8   : > { %p33_p4 = por %p32_p2, %p31_p1  ;;  %p38_p5 = scmp.eq.s32.totalorder %s1198_s16, 0 }
   0x9   : > { %p1054_p6 = scmp.lt.s32.totalorder %s1153_s15, 2  ;;  %s137_s22 = sand.u32 1, %s1149_s14  }
   0xa   : > { %p1215_p7 = por %p38_p5, %p37_p3  ;;  %s904_s23 = sshll.u32 %s137_s22, 8 }
   0xb   : > { %s962_s24 = sshll.u32 %s1153_s15, 12  ;;  %s141_s28 = scalar_lea.vmem [#allocation2], %s904_s23 }
   0xc   : > { %s1585_s21 = scalar_select %p1215_p7, 1, 0 }
   0xd   : > { %s1224_s27 = scalar_lea.hbm %s1580_s0, %s962_s24  ;;  %s148_s29 = sshll.u32 %s141_s28, 4  ;;  %s1226_s29 = int_to_ptr.vmem [resolvable:$true] %s148_s29 }
   0xe   : > { %p1228_p8 = pnand %p1054_p6, %p33_p4  ;;  %s1233_s4 = scalar_lea.sflag [#allocation3], %s137_s22 }
   0xf   : > { %s1091_s5 = scalar_lea.hbm %s1224_s27, 4096  ;;  %s1096_s8 = scalar_lea.hbm %s1580_s0, 8192 }
  0x10   : > { %p1092_p10 = scmp.ne.s32.totalorder %s1224_s27, %s1091_s5  ;;  %p1093_p11 = pneg %p1228_p8 }
  0x11   : > { %p1097_p0 = scmp.lt.s32.totalorder %s1224_s27, %s1580_s0  ;;  %p1098_p1 = scmp.lt.s32.totalorder %s1096_s8, %s1091_s5 }
  0x12   : > { %p1094_p12 = pnand %p1093_p11, %p1092_p10 }
  0x13   : > { %p1099_p2 = por %p1098_p1, %p1097_p0 }
  0x14   : > { %p1095_p13 = pneg %p1094_p12 }
  0x16   : > { %p1100_p3 = pnand %p1099_p2, %p1095_p13 }
  0x18   : > { %1103 = shalt.err (!%p1100_p3)
}
  0x19   : > { %s1104_s11 = scalar_lea.vmem %s1226_s29, 4096  ;;  %s1155_s12 = smov [#allocation2]  }
  0x1a   : > { %p1105_p4 = scmp.ne.s32.totalorder %s1226_s29, %s1104_s11  ;;  %s1109_s18 = sshll.u32 %s1155_s12, 4  ;;  %s1110_s18 = int_to_ptr.vmem [resolvable:$false] %s1109_s18 }
  0x1b   : > { %s1111_s19 = scalar_lea.vmem %s1110_s18, 8192  ;;  %p1112_p10 = scmp.lt.s32.totalorder %s1226_s29, %s1110_s18 }
  0x1c   : > { %p1107_p5 = pnand %p1105_p4, %p1093_p11  ;;  %p1113_p12 = scmp.lt.s32.totalorder %s1111_s19, %s1104_s11 }
  0x1e   : > { %p1108_p6 = pneg %p1107_p5  ;;  %p1114_p9 = por %p1113_p12, %p1112_p10 }
  0x20   : > { %p1115_p7 = pnand %p1114_p9, %p1108_p6 }
  0x22   : > { %1118 = shalt.err (!%p1115_p7)
}
  0x23   : > { %s1156_s22 = smov 128   ;;  %s1157_s23 = smov 8  }
  0x24   : > { %1053 = dma.hbm_to_vmem [thread:$0]  (!%p1228_p8), %s1224_s27, 4096, %s1226_s29, %s1233_s4, %s1156_s22, %s1156_s22, %s1157_s23  }
  0x25   : > { %p156_p11 = scmp.lt.s32.totalorder %s1153_s15, 3  ;;  %p1587_p13 = scmp.ge.s32.totalorder %s1153_s15, 1 }
  0x27   : > { %p157_p0 = pnand %p1587_p13, %p156_p11 }
  0x28   : > { %s162_s24 = sand.u32 (!%p157_p0), 1, %s1145_s13   ;;  %p1588_p7 = scmp.ne.s32.totalorder (!%p157_p0), %s1585_s21, 0 }
  0x29   : > { %160 = sbr.rel (%p157_p0) target bundleno = 445 (0x1bd), region = 28  ;;  %s908_s25 = sshll.u32 (!%p157_p0), %s162_s24, 8 }
  0x2a   : > { %s163_s26 = scalar_lea.sflag (!%p157_p0), [#allocation3], %s162_s24  ;;  %s1258_s28 = scalar_lea.vmem (!%p157_p0), [#allocation2], %s908_s25 }
  0x2e   : > { %1136 = dma.done.wait (%p1588_p7), %s163_s26, 4096  }
  0x2f   : > { %1138 = vsyncadd (%p1588_p7), %s163_s26, 4294963200  ;;  %v1090_v0 = vld [vmem:[%s1581_s1] sm:$0xff]   ;;  %v204_v2 = vld [vmem:[%s1258_s28 + $0x8] sm:$0xff]  ;;  %vm259_vm0 = vcmask 130048   ;;  %s909_s15 = sshll.u32 %s1198_s16, 5  ;;  %vm597_vm1 = vcmask 27648  }
  0x30   : > { %v203_v1 = vld [vmem:[%s1258_s28] sm:$0xff]  ;;  %v205_v3 = vld [vmem:[%s1258_s28 + $0x10] sm:$0xff]  ;;  %1012 = vmatprep.subr.bf16.mxu0 %v1090_v0  ;;  %v206_v5 = vld [vmem:[%s1258_s28 + $0x18] sm:$0xff]  ;;  %1046 = vmatprep.subr.bf16.mxu1 %v1090_v0  ;;  %p194_p8 = scmp.lt.s32.totalorder %s909_s15, 63  ;;  %vm630_vm2 = vcmask 31744   ;;  %s1158_s4 = smov 4  }
  0x31   : > { %v235_v4 = vpack.c.bf16 %v204_v2, %v203_v1  ;;  %v207_v6 = vld [vmem:[%s1258_s28 + $0x20] sm:$0xff]  ;;  %v208_v7 = vld [vmem:[%s1258_s28 + $0x28] sm:$0xff]  ;;  %1013 = vmatpush3.bf16.msra.mxu0 %v1090_v0  ;;  %v236_v8 = vpack.c.bf16 %v206_v5, %v205_v3  ;;  %1047 = vmatpush3.bf16.msra.mxu1 %v1090_v0  ;;  %v209_v10 = vld [vmem:[%s1258_s28 + $0x30] sm:$0xff]  ;;  %p199_p9 = scmp.lt.s32.totalorder %s1198_s16, 1  ;;  %vm806_vm3 = vcmask 57344  }
  0x32   : > { %v237_v9 = vpack.c.bf16 %v208_v7, %v207_v6  ;;  %v210_v11 = vld [vmem:[%s1258_s28 + $0x38] sm:$0xff]  ;;  %v219_v12 = vld [vmem:[%s1258_s28 + $0x80] sm:$0xff]  ;;  %v220_v13 = vld [vmem:[%s1258_s28 + $0x88] sm:$0xff]  ;;  %s1594_s15 = smov (!%p194_p8, %s909_s15), 63 }
  0x33   : > { %1014 = vmatprep.mubr.msk.bf16.mxu0 %vm259_vm0, %v235_v4  ;;  %v243_v14 = vpack.c.bf16 %v220_v13, %v219_v12  ;;  %v221_v15 = vld [vmem:[%s1258_s28 + $0x90] sm:$0xff]  ;;  %v222_v16 = vld [vmem:[%s1258_s28 + $0x98] sm:$0xff]  ;;  %v223_v17 = vld [vmem:[%s1258_s28 + $0xa0] sm:$0xff]  ;;  %v238_v23 = vpack.c.bf16 %v210_v11, %v209_v10  ;;  %s910_s21 = sshll.u32 %s1594_s15, 2  ;;  %s1596_s16 = smov (!%p199_p9, %s1198_s16), 1 }
  0x34   : > { %1015 = vmatmul.mubr.msk.bf16.vlgmr.msra.gmra.mxu0 %vm259_vm0, %v236_v8  ;;  %v211_v18 = vld [vmem:[%s1258_s28 + $0x40] sm:$0xff]  ;;  %v212_v19 = vld [vmem:[%s1258_s28 + $0x48] sm:$0xff]  ;;  %v244_v20 = vpack.c.bf16 %v222_v16, %v221_v15  ;;  %v225_v25 = vld [vmem:[%s1258_s28 + $0xb0] sm:$0xff]  ;;  %s1319_s30 = scalar_lea.vmem %s1582_s2, %s910_s21  ;;  %s201_s9 = scalar_lea.vmem %s1583_s3, %s1596_s16 }
  0x35   : > { %1018 = vmatprep.mubr.msk.bf16.mxu0 %vm259_vm0, %v237_v9  ;;  %v224_v21 = vld [vmem:[%s1258_s28 + $0xa8] sm:$0xff]  ;;  %1030 = vmatprep.mubr.msk.bf16.mxu1 %vm259_vm0, %v243_v14  ;;  %v239_v24 = vpack.c.bf16 %v212_v19, %v211_v18  ;;  %v226_v26 = vld [vmem:[%s1258_s28 + $0xb8] sm:$0xff]  ;;  %v227_v27 = vld [vmem:[%s1258_s28 + $0xc0] sm:$0xff] }
  0x36   : > { %v245_v22 = vpack.c.bf16 %v224_v21, %v223_v17  ;;  %1031 = vmatmul.mubr.msk.bf16.vlgmr.msra.gmra.mxu1 %vm259_vm0, %v244_v20  ;;  %v228_v28 = vld [vmem:[%s1258_s28 + $0xc8] sm:$0xff]  ;;  %v246_v29 = vpack.c.bf16 %v226_v26, %v225_v25  ;;  %v213_v30 = vld [vmem:[%s1258_s28 + $0x50] sm:$0xff]  ;;  %v214_v31 = vld [vmem:[%s1258_s28 + $0x58] sm:$0xff] }
  0x37   : > { %v247_v32 = vpack.c.bf16 %v228_v28, %v227_v27  ;;  %v215_v33 = vld [vmem:[%s1258_s28 + $0x60] sm:$0xff]  ;;  %v216_v34 = vld [vmem:[%s1258_s28 + $0x68] sm:$0xff]  ;;  %v240_v35 = vpack.c.bf16 %v214_v31, %v213_v30  ;;  %v229_v37 = vld [vmem:[%s1258_s28 + $0xd0] sm:$0xff] }
  0x38   : > { %1034 = vmatprep.mubr.msk.bf16.mxu1 %vm259_vm0, %v245_v22  ;;  %v241_v36 = vpack.c.bf16 %v216_v34, %v215_v33  ;;  %v230_v38 = vld [vmem:[%s1258_s28 + $0xd8] sm:$0xff]  ;;  %v231_v39 = vld [vmem:[%s1258_s28 + $0xe0] sm:$0xff]  ;;  %v232_v40 = vld [vmem:[%s1258_s28 + $0xe8] sm:$0xff] }
  0x39   : > { %v248_v41 = vpack.c.bf16 %v230_v38, %v229_v37  ;;  %v217_v42 = vld [vmem:[%s1258_s28 + $0x70] sm:$0xff]  ;;  %v218_v43 = vld [vmem:[%s1258_s28 + $0x78] sm:$0xff]  ;;  %v249_v44 = vpack.c.bf16 %v232_v40, %v231_v39 }
  0x3a   : > { %v242_v45 = vpack.c.bf16 %v218_v43, %v217_v42  ;;  %v233_v46 = vld [vmem:[%s1258_s28 + $0xf0] sm:$0xff]  ;;  %v234_v47 = vld [vmem:[%s1258_s28 + $0xf8] sm:$0xff] }
  0x3b   : > { %v250_v48 = vpack.c.bf16 %v234_v47, %v233_v46 }
  0x3c   : > { %1019 = vmatmul.mubr.msk.bf16.gmra.mxu0 %vm259_vm0, %v238_v23 }
  0x3d   : > { %1022 = vmatprep.mubr.msk.bf16.mxu0 %vm259_vm0, %v239_v24 }
  0x3e   : > { %1035 = vmatmul.mubr.msk.bf16.gmra.mxu1 %vm259_vm0, %v246_v29 }
  0x3f   : > { %1038 = vmatprep.mubr.msk.bf16.mxu1 %vm259_vm0, %v247_v32 }
  0x44   : > { %1023 = vmatmul.mubr.msk.bf16.gmra.mxu0 %vm259_vm0, %v240_v35 }
  0x45   : > { %1026 = vmatprep.mubr.msk.bf16.mxu0 %vm259_vm0, %v241_v36 }
  0x46   : > { %1039 = vmatmul.mubr.msk.bf16.gmra.mxu1 %vm259_vm0, %v248_v41 }
  0x47   : > { %1042 = vmatprep.mubr.msk.bf16.mxu1 %vm259_vm0, %v249_v44 }
  0x4c   : > { %1027 = vmatmul.mubr.msk.bf16.gmra.mxu0 %vm259_vm0, %v242_v45 }
  0x4e   : > { %1043 = vmatmul.mubr.msk.bf16.gmra.mxu1 %vm259_vm0, %v250_v48 }
  0xf4   : > { %v1016_v49 = vpop.f32.mrf.mxu0 }
  0xf5   : > { %v965_v50 = vpack.c.bf16 %v1016_v49, %v1016_v49  ;;  %v702_v57 = vmul.f32 %v1016_v49, %v1016_v49  ;;  %v634_v1 = vsel %vm630_vm2, %v1016_v49, 0.0 }
  0xf6   : > { %v342_v51 = vpop.f32.mrf.mxu0  ;;  %v1323_v54 = vpop.f32.mrf.mxu1 }
  0xf7   : > { %600 = vst.msk [vmem:[%s1319_s30 + $0x8] sm:$0xf] %vm597_vm1, %v965_v50  ;;  %v963_v52 = vpack.c.bf16 %v342_v51, %v342_v51  ;;  %v700_v55 = vmul.f32 %v342_v51, %v342_v51  ;;  %v981_v59 = vpack.c.bf16 %v1323_v54, %v1323_v54  ;;  %v631_v61 = vsel %vm630_vm2, %v342_v51, 0.0 }
  0xf8   : > { %v1017_v53 = vpop.f32.mrf.mxu0  ;;  %v1329_v60 = vpop.f32.mrf.mxu1  ;;  %v735_v15 = vsel %vm630_vm2, %v702_v57, 0.0 }
  0xf9   : > { %598 = vst.msk [vmem:[%s1319_s30] sm:$0xf] %vm597_vm1, %v963_v52  ;;  %v966_v56 = vpack.c.bf16 %v1017_v53, %v1017_v53  ;;  %616 = vst.msk [vmem:[%s1319_s30 + $0x48] sm:$0xf] %vm597_vm1, %v981_v59  ;;  %v979_v4 = vpack.c.bf16 %v1329_v60, %v1329_v60  ;;  %v732_v6 = vsel %vm630_vm2, %v700_v55, 0.0  ;;  %v703_v7 = vmul.f32 %v1017_v53, %v1017_v53 }
  0xfa   : > { %v345_v58 = vpop.f32.mrf.mxu0  ;;  %v1340_v5 = vpop.f32.mrf.mxu1  ;;  %v636_v16 = vsel %vm630_vm2, %v1017_v53, 0.0 }
  0xfb   : > { %601 = vst.msk [vmem:[%s1319_s30 + $0xc] sm:$0xf] %vm597_vm1, %v966_v56  ;;  %v964_v62 = vpack.c.bf16 %v345_v58, %v345_v58  ;;  %v632_v63 = vsel %vm630_vm2, %v345_v58, 0.0  ;;  %v701_v0 = vmul.f32 %v345_v58, %v345_v58  ;;  %614 = vst.msk [vmem:[%s1319_s30 + $0x40] sm:$0xf] %vm597_vm1, %v979_v4  ;;  %v982_v13 = vpack.c.bf16 %v1340_v5, %v1340_v5 }
  0xfc   : > { %v633_v2 = vadd.f32 %v632_v63, %v631_v61  ;;  %v1020_v3 = vpop.f32.mrf.mxu0  ;;  %v1350_v14 = vpop.f32.mrf.mxu1  ;;  %v737_v23 = vsel %vm630_vm2, %v703_v7, 0.0 }
  0xfd   : > { %599 = vst.msk [vmem:[%s1319_s30 + $0x4] sm:$0xf] %vm597_vm1, %v964_v62  ;;  %v733_v8 = vsel %vm630_vm2, %v701_v0, 0.0  ;;  %v969_v9 = vpack.c.bf16 %v1020_v3, %v1020_v3  ;;  %617 = vst.msk [vmem:[%s1319_s30 + $0x4c] sm:$0xf] %vm597_vm1, %v982_v13  ;;  %v706_v26 = vmul.f32 %v1020_v3, %v1020_v3  ;;  %v980_v30 = vpack.c.bf16 %v1350_v14, %v1350_v14 }
  0xfe   : > { %v635_v10 = vadd.f32 %v634_v1, %v633_v2  ;;  %v734_v11 = vadd.f32 %v733_v8, %v732_v6  ;;  %v358_v12 = vpop.f32.mrf.mxu0  ;;  %v1358_v22 = vpop.f32.mrf.mxu1  ;;  %v642_v40 = vsel %vm630_vm2, %v1020_v3, 0.0 }
  0xff   : > { %604 = vst.msk [vmem:[%s1319_s30 + $0x18] sm:$0xf] %vm597_vm1, %v969_v9  ;;  %v967_v17 = vpack.c.bf16 %v358_v12, %v358_v12  ;;  %v704_v18 = vmul.f32 %v358_v12, %v358_v12  ;;  %v638_v24 = vsel %vm630_vm2, %v358_v12, 0.0  ;;  %615 = vst.msk [vmem:[%s1319_s30 + $0x44] sm:$0xf] %vm597_vm1, %v980_v30  ;;  %v985_v47 = vpack.c.bf16 %v1358_v22, %v1358_v22 }
 0x100   : > { %v736_v19 = vadd.f32 %v735_v15, %v734_v11  ;;  %v637_v20 = vadd.f32 %v636_v16, %v635_v10  ;;  %v1021_v21 = vpop.f32.mrf.mxu0  ;;  %v1366_v31 = vpop.f32.mrf.mxu1  ;;  %v743_v49 = vsel %vm630_vm2, %v706_v26, 0.0 }
 0x101   : > { %602 = vst.msk [vmem:[%s1319_s30 + $0x10] sm:$0xf] %vm597_vm1, %v967_v17  ;;  %v970_v25 = vpack.c.bf16 %v1021_v21, %v1021_v21  ;;  %v739_v32 = vsel %vm630_vm2, %v704_v18, 0.0  ;;  %v707_v41 = vmul.f32 %v1021_v21, %v1021_v21  ;;  %v644_v50 = vsel %vm630_vm2, %v1021_v21, 0.0  ;;  %620 = vst.msk [vmem:[%s1319_s30 + $0x58] sm:$0xf] %vm597_vm1, %v985_v47 }
 0x102   : > { %v639_v27 = vadd.f32 %v638_v24, %v637_v20  ;;  %v738_v28 = vadd.f32 %v737_v23, %v736_v19  ;;  %v361_v29 = vpop.f32.mrf.mxu0  ;;  %v1374_v39 = vpop.f32.mrf.mxu1  ;;  %v983_v2 = vpack.c.bf16 %v1366_v31, %v1366_v31 }
 0x103   : > { %605 = vst.msk [vmem:[%s1319_s30 + $0x1c] sm:$0xf] %vm597_vm1, %v970_v25  ;;  %v968_v33 = vpack.c.bf16 %v361_v29, %v361_v29  ;;  %v640_v34 = vsel %vm630_vm2, %v361_v29, 0.0  ;;  %v705_v35 = vmul.f32 %v361_v29, %v361_v29  ;;  %v745_v58 = vsel %vm630_vm2, %v707_v41, 0.0 }
 0x104   : > { %v740_v36 = vadd.f32 %v739_v32, %v738_v28  ;;  %v641_v37 = vadd.f32 %v640_v34, %v639_v27  ;;  %v1024_v38 = vpop.f32.mrf.mxu0  ;;  %v1382_v48 = vpop.f32.mrf.mxu1  ;;  %618 = vst.msk [vmem:[%s1319_s30 + $0x50] sm:$0xf] %vm597_vm1, %v983_v2  ;;  %v986_v21 = vpack.c.bf16 %v1374_v39, %v1374_v39 }
 0x105   : > { %603 = vst.msk [vmem:[%s1319_s30 + $0x14] sm:$0xf] %vm597_vm1, %v968_v33  ;;  %v741_v42 = vsel %vm630_vm2, %v705_v35, 0.0  ;;  %v973_v43 = vpack.c.bf16 %v1024_v38, %v1024_v38  ;;  %v710_v62 = vmul.f32 %v1024_v38, %v1024_v38  ;;  %v650_v13 = vsel %vm630_vm2, %v1024_v38, 0.0 }
 0x106   : > { %v643_v44 = vadd.f32 %v642_v40, %v641_v37  ;;  %v742_v45 = vadd.f32 %v741_v42, %v740_v36  ;;  %v374_v46 = vpop.f32.mrf.mxu0  ;;  %v1390_v57 = vpop.f32.mrf.mxu1  ;;  %621 = vst.msk [vmem:[%s1319_s30 + $0x5c] sm:$0xf] %vm597_vm1, %v986_v21  ;;  %v984_v41 = vpack.c.bf16 %v1382_v48, %v1382_v48  ;;  %v719_v21 = vmul.f32 %v1340_v5, %v1340_v5 }
 0x107   : > { %608 = vst.msk [vmem:[%s1319_s30 + $0x28] sm:$0xf] %vm597_vm1, %v973_v43  ;;  %v971_v51 = vpack.c.bf16 %v374_v46, %v374_v46  ;;  %v708_v52 = vmul.f32 %v374_v46, %v374_v46  ;;  %v646_v59 = vsel %vm630_vm2, %v374_v46, 0.0  ;;  %v751_v24 = vsel %vm630_vm2, %v710_v62, 0.0 }
 0x108   : > { %v744_v53 = vadd.f32 %v743_v49, %v742_v45  ;;  %v645_v55 = vadd.f32 %v644_v50, %v643_v44  ;;  %v1025_v56 = vpop.f32.mrf.mxu0  ;;  %v1398_v3 = vpop.f32.mrf.mxu1  ;;  %619 = vst.msk [vmem:[%s1319_s30 + $0x54] sm:$0xf] %vm597_vm1, %v984_v41  ;;  %v716_v62 = vmul.f32 %v1329_v60, %v1329_v60  ;;  %v672_v41 = vsel %vm630_vm2, %v1382_v48, 0.0 }
 0x109   : > { %606 = vst.msk [vmem:[%s1319_s30 + $0x20] sm:$0xf] %vm597_vm1, %v971_v51  ;;  %v974_v61 = vpack.c.bf16 %v1025_v56, %v1025_v56  ;;  %v747_v4 = vsel %vm630_vm2, %v708_v52, 0.0  ;;  %v711_v15 = vmul.f32 %v1025_v56, %v1025_v56  ;;  %v652_v25 = vsel %vm630_vm2, %v1025_v56, 0.0 }
 0x10a   : > { %v647_v63 = vadd.f32 %v646_v59, %v645_v55  ;;  %v746_v0 = vadd.f32 %v745_v58, %v744_v53  ;;  %v377_v1 = vpop.f32.mrf.mxu0  ;;  %v1406_v12 = vpop.f32.mrf.mxu1  ;;  %v989_v53 = vpack.c.bf16 %v1390_v57, %v1390_v57  ;;  %v987_v58 = vpack.c.bf16 %v1398_v3, %v1398_v3 }
 0x10b   : > { %609 = vst.msk [vmem:[%s1319_s30 + $0x2c] sm:$0xf] %vm597_vm1, %v974_v61  ;;  %v972_v6 = vpack.c.bf16 %v377_v1, %v377_v1  ;;  %v648_v7 = vsel %vm630_vm2, %v377_v1, 0.0  ;;  %v709_v8 = vmul.f32 %v377_v1, %v377_v1  ;;  %v753_v33 = vsel %vm630_vm2, %v711_v15, 0.0 }
 0x10c   : > { %v748_v9 = vadd.f32 %v747_v4, %v746_v0  ;;  %v649_v10 = vadd.f32 %v648_v7, %v647_v63  ;;  %v1028_v11 = vpop.f32.mrf.mxu0  ;;  %v1414_v23 = vpop.f32.mrf.mxu1  ;;  %624 = vst.msk [vmem:[%s1319_s30 + $0x68] sm:$0xf] %vm597_vm1, %v989_v53  ;;  %v990_v63 = vpack.c.bf16 %v1406_v12, %v1406_v12  ;;  %622 = vst.msk [vmem:[%s1319_s30 + $0x60] sm:$0xf] %vm597_vm1, %v987_v58  ;;  %v763_v15 = vsel %vm630_vm2, %v716_v62, 0.0 }
 0x10d   : > { %607 = vst.msk [vmem:[%s1319_s30 + $0x24] sm:$0xf] %vm597_vm1, %v972_v6  ;;  %v749_v16 = vsel %vm630_vm2, %v709_v8, 0.0  ;;  %v977_v17 = vpack.c.bf16 %v1028_v11, %v1028_v11  ;;  %v714_v36 = vmul.f32 %v1028_v11, %v1028_v11  ;;  %v658_v50 = vsel %vm630_vm2, %v1028_v11, 0.0 }
 0x10e   : > { %v651_v18 = vadd.f32 %v650_v13, %v649_v10  ;;  %v750_v19 = vadd.f32 %v749_v16, %v748_v9  ;;  %v390_v20 = vpop.f32.mrf.mxu0  ;;  %v1422_v32 = vpop.f32.mrf.mxu1  ;;  %v662_v6 = vsel %vm630_vm2, %v1329_v60, 0.0  ;;  %v717_v7 = vmul.f32 %v1350_v14, %v1350_v14  ;;  %625 = vst.msk [vmem:[%s1319_s30 + $0x6c] sm:$0xf] %vm597_vm1, %v990_v63 }
 0x10f   : > { %612 = vst.msk [vmem:[%s1319_s30 + $0x38] sm:$0xf] %vm597_vm1, %v977_v17  ;;  %v975_v26 = vpack.c.bf16 %v390_v20, %v390_v20  ;;  %v712_v27 = vmul.f32 %v390_v20, %v390_v20  ;;  %v654_v34 = vsel %vm630_vm2, %v390_v20, 0.0  ;;  %v759_v59 = vsel %vm630_vm2, %v714_v36, 0.0 }
 0x110   : > { %v752_v28 = vadd.f32 %v751_v24, %v750_v19  ;;  %v653_v29 = vadd.f32 %v652_v25, %v651_v18  ;;  %v1029_v30 = vpop.f32.mrf.mxu0  ;;  %v1434_v46 = vpop.f32.mrf.mxu1  ;;  %v988_v8 = vpack.c.bf16 %v1414_v23, %v1414_v23  ;;  %v993_v11 = vpack.c.bf16 %v1422_v32, %v1422_v32 }
 0x111   : > { %610 = vst.msk [vmem:[%s1319_s30 + $0x30] sm:$0xf] %vm597_vm1, %v975_v26  ;;  %v978_v35 = vpack.c.bf16 %v1029_v30, %v1029_v30  ;;  %v755_v42 = vsel %vm630_vm2, %v712_v27, 0.0  ;;  %v715_v51 = vmul.f32 %v1029_v30, %v1029_v30  ;;  %v660_v61 = vsel %vm630_vm2, %v1029_v30, 0.0 }
 0x112   : > { %v655_v37 = vadd.f32 %v654_v34, %v653_v29  ;;  %v754_v38 = vadd.f32 %v753_v33, %v752_v28  ;;  %v393_v40 = vpop.f32.mrf.mxu0  ;;  %v1454_v0 = vpop.f32.mrf.mxu1  ;;  %v718_v13 = vmul.f32 %v1323_v54, %v1323_v54  ;;  %v664_v60 = vsel %vm630_vm2, %v1350_v14, 0.0  ;;  %623 = vst.msk [vmem:[%s1319_s30 + $0x64] sm:$0xf] %vm597_vm1, %v988_v8  ;;  %628 = vst.msk [vmem:[%s1319_s30 + $0x78] sm:$0xf] %vm597_vm1, %v993_v11 }
 0x113   : > { %613 = vst.msk [vmem:[%s1319_s30 + $0x3c] sm:$0xf] %vm597_vm1, %v978_v35  ;;  %v976_v43 = vpack.c.bf16 %v393_v40, %v393_v40  ;;  %v656_v44 = vsel %vm630_vm2, %v393_v40, 0.0  ;;  %v713_v45 = vmul.f32 %v393_v40, %v393_v40  ;;  %v761_v4 = vsel %vm630_vm2, %v715_v51, 0.0 }
 0x114   : > { %v756_v47 = vadd.f32 %v755_v42, %v754_v38  ;;  %v657_v49 = vadd.f32 %v656_v44, %v655_v37  ;;  %v991_v16 = vpack.c.bf16 %v1434_v46, %v1434_v46  ;;  %v1478_v17 = vpop.f32.mrf.mxu1  ;;  %v666_v20 = vsel %vm630_vm2, %v1323_v54, 0.0 }
 0x115   : > { %611 = vst.msk [vmem:[%s1319_s30 + $0x34] sm:$0xf] %vm597_vm1, %v976_v43  ;;  %v757_v52 = vsel %vm630_vm2, %v713_v45, 0.0  ;;  %v765_v14 = vsel %vm630_vm2, %v717_v7, 0.0  ;;  %v994_v24 = vpack.c.bf16 %v1454_v0, %v1454_v0  ;;  %v992_v27 = vpack.c.bf16 %v1478_v17, %v1478_v17 }
 0x116   : > { %v659_v55 = vadd.f32 %v658_v50, %v657_v49  ;;  %v758_v56 = vadd.f32 %v757_v52, %v756_v47  ;;  %626 = vst.msk [vmem:[%s1319_s30 + $0x70] sm:$0xf] %vm597_vm1, %v991_v16  ;;  %v767_v28 = vsel %vm630_vm2, %v718_v13, 0.0  ;;  %v668_v54 = vsel %vm630_vm2, %v1340_v5, 0.0 }
 0x117   : > { %v720_v29 = vmul.f32 %v1366_v31, %v1366_v31  ;;  %629 = vst.msk [vmem:[%s1319_s30 + $0x7c] sm:$0xf] %vm597_vm1, %v994_v24  ;;  %627 = vst.msk [vmem:[%s1319_s30 + $0x74] sm:$0xf] %vm597_vm1, %v992_v27  ;;  %v769_v34 = vsel %vm630_vm2, %v719_v21, 0.0  ;;  %v670_v35 = vsel %vm630_vm2, %v1366_v31, 0.0  ;;  %v721_v36 = vmul.f32 %v1382_v48, %v1382_v48 }
 0x118   : > { %v661_v1 = vadd.f32 %v660_v61, %v659_v55  ;;  %v760_v2 = vadd.f32 %v759_v59, %v758_v56  ;;  %v722_v5 = vmul.f32 %v1358_v22, %v1358_v22  ;;  %v674_v44 = vsel %vm630_vm2, %v1358_v22, 0.0 }
 0x119   : > { %v771_v40 = vsel %vm630_vm2, %v720_v29, 0.0  ;;  %v723_v31 = vmul.f32 %v1374_v39, %v1374_v39  ;;  %v773_v45 = vsel %vm630_vm2, %v721_v36, 0.0  ;;  %v676_v51 = vsel %vm630_vm2, %v1374_v39, 0.0 }
 0x11a   : > { %v762_v9 = vadd.f32 %v761_v4, %v760_v2  ;;  %v663_v10 = vadd.f32 %v662_v6, %v661_v1  ;;  %v775_v50 = vsel %vm630_vm2, %v722_v5, 0.0  ;;  %v724_v48 = vmul.f32 %v1398_v3, %v1398_v3 }
 0x11b   : > { %v777_v55 = vsel %vm630_vm2, %v723_v31, 0.0  ;;  %v678_v22 = vsel %vm630_vm2, %v1398_v3, 0.0  ;;  %v725_v56 = vmul.f32 %v1414_v23, %v1414_v23  ;;  %v726_v61 = vmul.f32 %v1390_v57, %v1390_v57 }
 0x11c   : > { %v665_v18 = vadd.f32 %v664_v60, %v663_v10  ;;  %v764_v19 = vadd.f32 %v763_v15, %v762_v9  ;;  %v779_v39 = vsel %vm630_vm2, %v724_v48, 0.0  ;;  %v680_v62 = vsel %vm630_vm2, %v1414_v23, 0.0 }
 0x11d   : > { %v682_v2 = vsel %vm630_vm2, %v1390_v57, 0.0  ;;  %v727_v3 = vmul.f32 %v1406_v12, %v1406_v12  ;;  %v781_v4 = vsel %vm630_vm2, %v725_v56, 0.0  ;;  %v783_v8 = vsel %vm630_vm2, %v726_v61, 0.0 }
 0x11e   : > { %v667_v25 = vadd.f32 %v666_v20, %v665_v18  ;;  %v766_v26 = vadd.f32 %v765_v14, %v764_v19  ;;  %v684_v9 = vsel %vm630_vm2, %v1406_v12, 0.0  ;;  %v728_v23 = vmul.f32 %v1434_v46, %v1434_v46 }
 0x11f   : > { %v785_v13 = vsel %vm630_vm2, %v727_v3, 0.0  ;;  %v686_v57 = vsel %vm630_vm2, %v1434_v46, 0.0  ;;  %v729_v15 = vmul.f32 %v1478_v17, %v1478_v17  ;;  %v730_v18 = vmul.f32 %v1422_v32, %v1422_v32 }
 0x120   : > { %v768_v30 = vadd.f32 %v767_v28, %v766_v26  ;;  %v669_v33 = vadd.f32 %v668_v54, %v667_v25  ;;  %v787_v12 = vsel %vm630_vm2, %v728_v23, 0.0  ;;  %v688_v19 = vsel %vm630_vm2, %v1478_v17, 0.0 }
 0x121   : > { %v690_v14 = vsel %vm630_vm2, %v1422_v32, 0.0  ;;  %v731_v46 = vmul.f32 %v1454_v0, %v1454_v0  ;;  %v789_v24 = vsel %vm630_vm2, %v729_v15, 0.0  ;;  %v791_v27 = vsel %vm630_vm2, %v730_v18, 0.0 }
 0x122   : > { %v671_v37 = vadd.f32 %v670_v35, %v669_v33  ;;  %v770_v38 = vadd.f32 %v769_v34, %v768_v30  ;;  %v692_v28 = vsel %vm630_vm2, %v1454_v0, 0.0 }
 0x123   : > { %v793_v29 = vsel %vm630_vm2, %v731_v46, 0.0 }
 0x124   : > { %v772_v42 = vadd.f32 %v771_v40, %v770_v38  ;;  %v673_v43 = vadd.f32 %v672_v41, %v671_v37 }
 0x126   : > { %v675_v47 = vadd.f32 %v674_v44, %v673_v43  ;;  %v774_v49 = vadd.f32 %v773_v45, %v772_v42 }
 0x128   : > { %v776_v52 = vadd.f32 %v775_v50, %v774_v49  ;;  %v677_v53 = vadd.f32 %v676_v51, %v675_v47 }
 0x12a   : > { %v679_v58 = vadd.f32 %v678_v22, %v677_v53  ;;  %v778_v59 = vadd.f32 %v777_v55, %v776_v52 }
 0x12c   : > { %v780_v63 = vadd.f32 %v779_v39, %v778_v59  ;;  %v681_v1 = vadd.f32 %v680_v62, %v679_v58 }
 0x12e   : > { %v683_v6 = vadd.f32 %v682_v2, %v681_v1  ;;  %v782_v7 = vadd.f32 %v781_v4, %v780_v63 }
 0x130   : > { %v784_v10 = vadd.f32 %v783_v8, %v782_v7  ;;  %v685_v11 = vadd.f32 %v684_v9, %v683_v6 }
 0x132   : > { %v687_v60 = vadd.f32 %v686_v57, %v685_v11  ;;  %v786_v16 = vadd.f32 %v785_v13, %v784_v10 }
 0x134   : > { %v788_v20 = vadd.f32 %v787_v12, %v786_v16  ;;  %v689_v21 = vadd.f32 %v688_v19, %v687_v60 }
 0x136   : > { %v691_v25 = vadd.f32 %v690_v14, %v689_v21  ;;  %v790_v26 = vadd.f32 %v789_v24, %v788_v20 }
 0x138   : > { %v693_v54 = vadd.f32 %v692_v28, %v691_v25  ;;  %v792_v17 = vadd.f32 %v791_v27, %v790_v26 }
 0x13a   : > { %v794_v30 = vadd.f32 %v793_v29, %v792_v17  ;;  %v694_v38 = vrot.slane %v693_v54, 4 }
 0x13c   : > { %v795_v32 = vrot.slane %v794_v30, 4  ;;  %v695_v5 = vadd.f32 %v694_v38, %v693_v54 }
 0x13e   : > { %v796_v33 = vadd.f32 %v795_v32, %v794_v30  ;;  %v696_v40 = vrot.slane %v695_v5, 2 }
 0x140   : > { %v797_v34 = vrot.slane %v796_v33, 2  ;;  %v697_v0 = vadd.f32 %v696_v40, %v695_v5 }
 0x142   : > { %v798_v35 = vadd.f32 %v797_v34, %v796_v33  ;;  %v698_v41 = vrot.slane %v697_v0, 1 }
 0x144   : > { %v799_v36 = vrot.slane %v798_v35, 1  ;;  %v699_v42 = vadd.f32 %v698_v41, %v697_v0 }
 0x146   : > { %v800_v37 = vadd.f32 %v799_v36, %v798_v35 }
 0x148   : > { %802 = vrot.lane.b32.xlu0 %v800_v37, %s1158_s4 }
 0x1ba   : > { %v803_v43 = vpop.permute.xlu0 %802 }
 0x1bb   : > { %v805_v44 = vsel %vm630_vm2, %v699_v42, %v803_v43 }
 0x1bc   : > { %807 = vst.msk [vmem:[%s201_s9] sm:$0x1] %vm806_vm3, %v805_v44 }
 0x1bd PF: > { %p14_p1 = scmp.ge.s32.totalorder %s1201_s17, 4   ;;  %s1589_s12 = smov %s1145_s13 }
 0x1be   : > { %s1590_s13 = smov %s1149_s14  ;;  %s1591_s14 = smov %s1211_s20 }
 0x1bf   : > { %s1592_s15 = smov %s1201_s17  ;;  %16 = sbr.rel (!%p14_p1) target bundleno = 3 (0x3), region = 80 }
 0x1c4   :  { %842 = vsyncpa [#allocation3], 1 }
 0x1c5   :  { %844 = vsyncpa [#allocation3 + $0x1], 1 }

// kernel: bottleneck_forward.6
= control target key start
LH: loop header
LB: loop body
LE: loop exit
PB: predicated region body
PF: predicated region fallthrough
CT: control target
= control target key end

     0   :  { %s1338_s18 = smov 0   ;;  %s1704_s0 = inlined_call_operand.vmem [shape: bf16[512,4], index: 0, kind: input, shape index: {}]   ;;  %s1705_s1 = inlined_call_operand.vmem [shape: f32[1,4], index: 1, kind: input, shape index: {}]   ;;  %s1706_s2 = inlined_call_operand.vmem [shape: f32[1,4], index: 2, kind: input, shape index: {}]   ;;  %s1707_s3 = inlined_call_operand.vmem [shape: bf16[4,16], index: 3, kind: input, shape index: {}]   ;;  %s1708_s4 = inlined_call_operand.vmem [shape: bf16[512,16], index: 4, kind: output, shape index: {0}]   ;;  %s1709_s5 = inlined_call_operand.vmem [shape: f32[2,1,32], index: 5, kind: output, shape index: {1}]  }
   0x1 LB: > { %s1344_s19 = sadd.s32 4294967295, %s1305_s18   ;;  %p1067_p0 = scmp.ge.s32.totalorder %s1305_s18, 1  ;;  %s1305_s18 = sphi %s1338_s18, %s16_s18  }
   0x2   : > { %p191_p1 = scmp.lt.s32.totalorder %s1305_s18, 3 }
   0x4   : > { %p192_p2 = pnand %p1067_p0, %p191_p1 }
   0x5   : > { %s1068_s22 = sshll.u32 (!%p192_p2), %s1344_s19, 5  ;;  %s1307_s9 = smov (!%p192_p2), 16  }
   0x6   : > { %195 = sbr.rel (%p192_p2) target bundleno = 419 (0x1a3), region = 36  ;;  %p223_p3 = scmp.lt.s32.totalorder (!%p192_p2), %s1068_s22, 63 }
   0x7   : > { %p234_p4 = scmp.lt.s32.totalorder (!%p192_p2), %s1344_s19, 1 }
   0xb   : > { %v428_v0 = vld [vmem:[%s1707_s3] sm:$0x3]  ;;  %vm478_vm0 = vcmask 1041408   ;;  %s1711_s22 = smov (!%p223_p3, %s1068_s22), 63  ;;  %vm429_vm1 = vcmask 31744   ;;  %vm771_vm2 = vcmask 125952  }
   0xc   : > { %1288 = vmatprep.subr.msk.bf16.mxu0 %vm478_vm0, %v428_v0  ;;  %v480_v1 = vsel %vm478_vm0, %v428_v0, 0  ;;  %1289 = vmatprep.subr.msk.bf16.mxu1 %vm478_vm0, %v428_v0  ;;  %s1069_s23 = sshll.u32 %s1711_s22, 2  ;;  %v1365_v2 = vld [vmem:[%s1705_s1] ss:$0 sm:$0xff]  ;;  %vm804_vm3 = vcmask 130048   ;;  %s1713_s19 = smov (!%p234_p4, %s1344_s19), 1 }
   0xd   : > { %1253 = vmatpush3.bf16.msra.mxu0 %v480_v1  ;;  %1287 = vmatpush3.bf16.msra.mxu1 %v480_v1  ;;  %s1360_s26 = scalar_lea.vmem %s1704_s0, %s1069_s23  ;;  %v1374_v11 = vld [vmem:[%s1706_s2] ss:$0 sm:$0xff]  ;;  %s1481_s8 = scalar_lea.vmem %s1708_s4, %s1069_s23  ;;  %vm980_vm4 = vcmask 253952  }
   0xe   : > { %v1157_v3 = vld [vmem:[%s1360_s26] sm:$0xff]   ;;  %v1220_v4 = vld [vmem:[%s1360_s26 + $0x8] sm:$0xff]   ;;  %v1221_v5 = vld [vmem:[%s1360_s26 + $0x10] sm:$0xff]   ;;  %s236_s12 = scalar_lea.vmem %s1709_s5, %s1713_s19 }
   0xf   : > { %v1158_v6 = vunpack.c.l.bf16 %v1157_v3  ;;  %v1159_v7 = vunpack.c.h.bf16 %v1157_v3  ;;  %v1162_v8 = vunpack.c.l.bf16 %v1220_v4  ;;  %v1163_v9 = vunpack.c.h.bf16 %v1220_v4  ;;  %v1222_v10 = vld [vmem:[%s1360_s26 + $0x18] sm:$0xff]   ;;  %v1223_v32 = vld [vmem:[%s1360_s26 + $0x20] sm:$0xff]   ;;  %v1224_v37 = vld [vmem:[%s1360_s26 + $0x28] sm:$0xff]  }
  0x10   : > { %v1166_v12 = vunpack.c.l.bf16 %v1221_v5  ;;  %v1167_v13 = vunpack.c.h.bf16 %v1221_v5  ;;  %v1170_v14 = vunpack.c.l.bf16 %v1222_v10  ;;  %v1171_v15 = vunpack.c.h.bf16 %v1222_v10  ;;  %v1225_v42 = vld [vmem:[%s1360_s26 + $0x30] sm:$0xff]   ;;  %v1226_v47 = vld [vmem:[%s1360_s26 + $0x38] sm:$0xff]   ;;  %v1227_v5 = vld [vmem:[%s1360_s26 + $0x40] sm:$0xff]  }
  0x11   : > { %v309_v16 = vmul.f32 %v1158_v6, %v1365_v2  ;;  %v310_v17 = vmul.f32 %v1159_v7, %v1365_v2  ;;  %v311_v18 = vmul.f32 %v1162_v8, %v1365_v2  ;;  %v312_v19 = vmul.f32 %v1163_v9, %v1365_v2 }
  0x12   : > { %v313_v20 = vmul.f32 %v1166_v12, %v1365_v2  ;;  %v314_v21 = vmul.f32 %v1167_v13, %v1365_v2  ;;  %v315_v22 = vmul.f32 %v1170_v14, %v1365_v2  ;;  %v316_v23 = vmul.f32 %v1171_v15, %v1365_v2  ;;  %v1228_v15 = vld [vmem:[%s1360_s26 + $0x48] sm:$0xff]  }
  0x13   : > { %v348_v24 = vadd.f32 %v1374_v11, %v309_v16  ;;  %v349_v25 = vadd.f32 %v1374_v11, %v310_v17  ;;  %v350_v26 = vadd.f32 %v1374_v11, %v311_v18  ;;  %v351_v27 = vadd.f32 %v1374_v11, %v312_v19 }
  0x14   : > { %v352_v28 = vadd.f32 %v1374_v11, %v313_v20  ;;  %v353_v29 = vadd.f32 %v1374_v11, %v314_v21  ;;  %v354_v30 = vadd.f32 %v1374_v11, %v315_v22  ;;  %v355_v31 = vadd.f32 %v1374_v11, %v316_v23  ;;  %v1229_v20 = vld [vmem:[%s1360_s26 + $0x50] sm:$0xff]  }
  0x15   : > { %v380_v33 = vmax.f32 %v348_v24, 0.0  ;;  %v381_v34 = vmax.f32 %v349_v25, 0.0  ;;  %v382_v35 = vmax.f32 %v350_v26, 0.0  ;;  %v383_v36 = vmax.f32 %v351_v27, 0.0  ;;  %v1230_v24 = vld [vmem:[%s1360_s26 + $0x58] sm:$0xff]  }
  0x16   : > { %v384_v38 = vmax.f32 %v352_v28, 0.0  ;;  %v385_v39 = vmax.f32 %v353_v29, 0.0  ;;  %v386_v40 = vmax.f32 %v354_v30, 0.0  ;;  %v387_v41 = vmax.f32 %v355_v31, 0.0 }
  0x17   : > { %v412_v43 = vpack.c.bf16 %v381_v34, %v380_v33  ;;  %v413_v44 = vpack.c.bf16 %v383_v36, %v382_v35  ;;  %v1174_v45 = vunpack.c.l.bf16 %v1223_v32  ;;  %v1175_v46 = vunpack.c.h.bf16 %v1223_v32 }
  0x18   : > { %v414_v48 = vpack.c.bf16 %v385_v39, %v384_v38  ;;  %v415_v49 = vpack.c.bf16 %v387_v41, %v386_v40  ;;  %v1178_v50 = vunpack.c.l.bf16 %v1224_v37  ;;  %v1179_v51 = vunpack.c.h.bf16 %v1224_v37  ;;  %v1231_v41 = vld [vmem:[%s1360_s26 + $0x60] sm:$0xff]  }
  0x19   : > { %1254 = vmatprep.mubr.msk.bf16.mxu0 %vm429_vm1, %v412_v43  ;;  %v317_v52 = vmul.f32 %v1174_v45, %v1365_v2  ;;  %v318_v53 = vmul.f32 %v1175_v46, %v1365_v2  ;;  %v1182_v54 = vunpack.c.l.bf16 %v1225_v42  ;;  %v1183_v55 = vunpack.c.h.bf16 %v1225_v42 }
  0x1a   : > { %1255 = vmatmul.mubr.msk.bf16.vlgmr.msra.gmra.mxu0 %vm429_vm1, %v413_v44  ;;  %v319_v56 = vmul.f32 %v1178_v50, %v1365_v2  ;;  %v320_v57 = vmul.f32 %v1179_v51, %v1365_v2  ;;  %v1186_v58 = vunpack.c.l.bf16 %v1226_v47  ;;  %v1187_v59 = vunpack.c.h.bf16 %v1226_v47 }
  0x1b   : > { %1258 = vmatprep.mubr.msk.bf16.mxu0 %vm429_vm1, %v414_v48  ;;  %v356_v60 = vadd.f32 %v1374_v11, %v317_v52  ;;  %v357_v61 = vadd.f32 %v1374_v11, %v318_v53  ;;  %v321_v62 = vmul.f32 %v1182_v54, %v1365_v2  ;;  %v322_v63 = vmul.f32 %v1183_v55, %v1365_v2  ;;  %v1232_v54 = vld [vmem:[%s1360_s26 + $0x68] sm:$0xff]  }
  0x1c   : > { %v358_v0 = vadd.f32 %v1374_v11, %v319_v56  ;;  %v359_v1 = vadd.f32 %v1374_v11, %v320_v57  ;;  %v323_v3 = vmul.f32 %v1186_v58, %v1365_v2  ;;  %v324_v4 = vmul.f32 %v1187_v59, %v1365_v2  ;;  %v1233_v59 = vld [vmem:[%s1360_s26 + $0x70] sm:$0xff]  }
  0x1d   : > { %v388_v6 = vmax.f32 %v356_v60, 0.0  ;;  %v389_v7 = vmax.f32 %v357_v61, 0.0  ;;  %v360_v8 = vadd.f32 %v1374_v11, %v321_v62  ;;  %v361_v9 = vadd.f32 %v1374_v11, %v322_v63 }
  0x1e   : > { %v390_v10 = vmax.f32 %v358_v0, 0.0  ;;  %v391_v12 = vmax.f32 %v359_v1, 0.0  ;;  %v1415_v13 = vadd.f32 %v1374_v11, %v323_v3  ;;  %v1418_v14 = vadd.f32 %v1374_v11, %v324_v4 }
  0x1f   : > { %v416_v16 = vpack.c.bf16 %v389_v7, %v388_v6  ;;  %v392_v17 = vmax.f32 %v360_v8, 0.0  ;;  %v393_v18 = vmax.f32 %v361_v9, 0.0  ;;  %v1190_v19 = vunpack.c.l.bf16 %v1227_v5  ;;  %v1234_v9 = vld [vmem:[%s1360_s26 + $0x78] sm:$0xff]  }
  0x20   : > { %v417_v21 = vpack.c.bf16 %v391_v12, %v390_v10  ;;  %v394_v22 = vmax.f32 %v1415_v13, 0.0  ;;  %v1191_v23 = vunpack.c.h.bf16 %v1227_v5  ;;  %v395_v25 = vmax.f32 %v1418_v14, 0.0 }
  0x21   : > { %v325_v26 = vmul.f32 %v1190_v19, %v1365_v2  ;;  %v1194_v27 = vunpack.c.l.bf16 %v1228_v15  ;;  %v1195_v28 = vunpack.c.h.bf16 %v1228_v15  ;;  %v418_v29 = vpack.c.bf16 %v393_v18, %v392_v17 }
  0x22   : > { %1259 = vmatmul.mubr.msk.bf16.gmra.mxu0 %vm429_vm1, %v415_v49  ;;  %v326_v30 = vmul.f32 %v1191_v23, %v1365_v2  ;;  %v1198_v31 = vunpack.c.l.bf16 %v1229_v20  ;;  %v1199_v32 = vunpack.c.h.bf16 %v1229_v20  ;;  %v1202_v36 = vunpack.c.l.bf16 %v1230_v24 }
  0x23   : > { %1262 = vmatprep.mubr.msk.bf16.mxu0 %vm429_vm1, %v416_v16  ;;  %v364_v33 = vadd.f32 %v1374_v11, %v325_v26  ;;  %v327_v34 = vmul.f32 %v1194_v27, %v1365_v2  ;;  %v328_v35 = vmul.f32 %v1195_v28, %v1365_v2  ;;  %v1203_v40 = vunpack.c.h.bf16 %v1230_v24 }
  0x24   : > { %v365_v37 = vadd.f32 %v1374_v11, %v326_v30  ;;  %v329_v38 = vmul.f32 %v1198_v31, %v1365_v2  ;;  %v330_v39 = vmul.f32 %v1199_v32, %v1365_v2  ;;  %v331_v45 = vmul.f32 %v1202_v36, %v1365_v2 }
  0x25   : > { %v396_v42 = vmax.f32 %v364_v33, 0.0  ;;  %v366_v43 = vadd.f32 %v1374_v11, %v327_v34  ;;  %v367_v44 = vadd.f32 %v1374_v11, %v328_v35  ;;  %v332_v49 = vmul.f32 %v1203_v40, %v1365_v2 }
  0x26   : > { %v397_v46 = vmax.f32 %v365_v37, 0.0  ;;  %v368_v47 = vadd.f32 %v1374_v11, %v329_v38  ;;  %v369_v48 = vadd.f32 %v1374_v11, %v330_v39  ;;  %v370_v52 = vadd.f32 %v1374_v11, %v331_v45 }
  0x27   : > { %v398_v50 = vmax.f32 %v366_v43, 0.0  ;;  %v399_v51 = vmax.f32 %v367_v44, 0.0  ;;  %v1206_v53 = vunpack.c.l.bf16 %v1231_v41  ;;  %v371_v58 = vadd.f32 %v1374_v11, %v332_v49 }
  0x28   : > { %v420_v55 = vpack.c.bf16 %v397_v46, %v396_v42  ;;  %v400_v56 = vmax.f32 %v368_v47, 0.0  ;;  %v401_v57 = vmax.f32 %v369_v48, 0.0  ;;  %v402_v61 = vmax.f32 %v370_v52, 0.0 }
  0x29   : > { %v421_v60 = vpack.c.bf16 %v399_v51, %v398_v50  ;;  %v1207_v62 = vunpack.c.h.bf16 %v1231_v41  ;;  %v333_v63 = vmul.f32 %v1206_v53, %v1365_v2  ;;  %v403_v1 = vmax.f32 %v371_v58, 0.0 }
  0x2a   : > { %1263 = vmatmul.mubr.msk.bf16.gmra.mxu0 %vm429_vm1, %v417_v21  ;;  %1270 = vmatprep.mubr.msk.bf16.mxu1 %vm429_vm1, %v420_v55  ;;  %v422_v0 = vpack.c.bf16 %v401_v57, %v400_v56  ;;  %v1210_v3 = vunpack.c.l.bf16 %v1232_v54  ;;  %v1211_v4 = vunpack.c.h.bf16 %v1232_v54  ;;  %v1214_v7 = vunpack.c.l.bf16 %v1233_v59 }
  0x2b   : > { %1266 = vmatprep.mubr.msk.bf16.mxu0 %vm429_vm1, %v418_v29  ;;  %1271 = vmatmul.mubr.msk.bf16.vlgmr.msra.gmra.mxu1 %vm429_vm1, %v421_v60  ;;  %v334_v5 = vmul.f32 %v1207_v62, %v1365_v2  ;;  %v372_v6 = vadd.f32 %v1374_v11, %v333_v63  ;;  %v1215_v8 = vunpack.c.h.bf16 %v1233_v59  ;;  %v419_v18 = vpack.c.bf16 %v395_v25, %v394_v22 }
  0x2c   : > { %1274 = vmatprep.mubr.msk.bf16.mxu1 %vm429_vm1, %v422_v0  ;;  %v335_v10 = vmul.f32 %v1210_v3, %v1365_v2  ;;  %v336_v12 = vmul.f32 %v1211_v4, %v1365_v2  ;;  %v337_v16 = vmul.f32 %v1214_v7, %v1365_v2  ;;  %v423_v19 = vpack.c.bf16 %v403_v1, %v402_v61 }
  0x2d   : > { %v373_v14 = vadd.f32 %v1374_v11, %v334_v5  ;;  %v404_v15 = vmax.f32 %v372_v6, 0.0  ;;  %v338_v17 = vmul.f32 %v1215_v8, %v1365_v2  ;;  %v1218_v20 = vunpack.c.l.bf16 %v1234_v9 }
  0x2e   : > { %v374_v23 = vadd.f32 %v1374_v11, %v335_v10  ;;  %v375_v24 = vadd.f32 %v1374_v11, %v336_v12  ;;  %v1219_v26 = vunpack.c.h.bf16 %v1234_v9  ;;  %v376_v27 = vadd.f32 %v1374_v11, %v337_v16 }
  0x2f   : > { %v405_v21 = vmax.f32 %v373_v14, 0.0  ;;  %v377_v28 = vadd.f32 %v1374_v11, %v338_v17  ;;  %v339_v22 = vmul.f32 %v1218_v20, %v1365_v2 }
  0x30   : > { %v406_v30 = vmax.f32 %v374_v23, 0.0  ;;  %v407_v13 = vmax.f32 %v375_v24, 0.0  ;;  %v340_v25 = vmul.f32 %v1219_v26, %v1365_v2  ;;  %v408_v31 = vmax.f32 %v376_v27, 0.0 }
  0x31   : > { %v424_v29 = vpack.c.bf16 %v405_v21, %v404_v15  ;;  %v409_v32 = vmax.f32 %v377_v28, 0.0  ;;  %v378_v34 = vadd.f32 %v1374_v11, %v339_v22 }
  0x32   : > { %1267 = vmatmul.mubr.msk.bf16.gmra.mxu0 %vm429_vm1, %v419_v18  ;;  %v425_v33 = vpack.c.bf16 %v407_v13, %v406_v30  ;;  %v379_v35 = vadd.f32 %v1374_v11, %v340_v25 }
  0x33   : > { %1275 = vmatmul.mubr.msk.bf16.gmra.mxu1 %vm429_vm1, %v423_v19  ;;  %v426_v36 = vpack.c.bf16 %v409_v32, %v408_v31  ;;  %v410_v37 = vmax.f32 %v378_v34, 0.0 }
  0x34   : > { %1278 = vmatprep.mubr.msk.bf16.mxu1 %vm429_vm1, %v424_v29  ;;  %v411_v38 = vmax.f32 %v379_v35, 0.0 }
  0x36   : > { %v427_v39 = vpack.c.bf16 %v411_v38, %v410_v37 }
  0x3b   : > { %1279 = vmatmul.mubr.msk.bf16.gmra.mxu1 %vm429_vm1, %v425_v33 }
  0x3c   : > { %1282 = vmatprep.mubr.msk.bf16.mxu1 %vm429_vm1, %v426_v36 }
  0x43   : > { %1283 = vmatmul.mubr.msk.bf16.gmra.mxu1 %vm429_vm1, %v427_v39 }
  0xda   : > { %v1256_v2 = vpop.f32.mrf.mxu0 }
  0xdb   : > { %v1126_v11 = vpack.c.bf16 %v1256_v2, %v1256_v2  ;;  %v876_v45 = vmul.f32 %v1256_v2, %v1256_v2  ;;  %v808_v51 = vsel %vm804_vm3, %v1256_v2, 0.0 }
  0xdc   : > { %v516_v40 = vpop.f32.mrf.mxu0 }
  0xdd   : > { %774 = vst.msk [vmem:[%s1481_s8 + $0x8] sm:$0xf] %vm771_vm2, %v1126_v11  ;;  %v1124_v41 = vpack.c.bf16 %v516_v40, %v516_v40  ;;  %v874_v43 = vmul.f32 %v516_v40, %v516_v40  ;;  %v805_v47 = vsel %vm804_vm3, %v516_v40, 0.0  ;;  %v909_v61 = vsel %vm804_vm3, %v876_v45, 0.0 }
  0xde   : > { %v1257_v42 = vpop.f32.mrf.mxu0 }
  0xdf   : > { %772 = vst.msk [vmem:[%s1481_s8] sm:$0xf] %vm771_vm2, %v1124_v41  ;;  %v1127_v44 = vpack.c.bf16 %v1257_v42, %v1257_v42  ;;  %v906_v54 = vsel %vm804_vm3, %v874_v43, 0.0  ;;  %v877_v55 = vmul.f32 %v1257_v42, %v1257_v42  ;;  %v810_v62 = vsel %vm804_vm3, %v1257_v42, 0.0 }
  0xe0   : > { %v519_v46 = vpop.f32.mrf.mxu0 }
  0xe1   : > { %775 = vst.msk [vmem:[%s1481_s8 + $0xc] sm:$0xf] %vm771_vm2, %v1127_v44  ;;  %v1125_v48 = vpack.c.bf16 %v519_v46, %v519_v46  ;;  %v806_v49 = vsel %vm804_vm3, %v519_v46, 0.0  ;;  %v875_v50 = vmul.f32 %v519_v46, %v519_v46  ;;  %v911_v5 = vsel %vm804_vm3, %v877_v55, 0.0 }
  0xe2   : > { %v807_v52 = vadd.f32 %v806_v49, %v805_v47  ;;  %v1260_v53 = vpop.f32.mrf.mxu0 }
  0xe3   : > { %773 = vst.msk [vmem:[%s1481_s8 + $0x4] sm:$0xf] %vm771_vm2, %v1125_v48  ;;  %v907_v56 = vsel %vm804_vm3, %v875_v50, 0.0  ;;  %v1130_v57 = vpack.c.bf16 %v1260_v53, %v1260_v53  ;;  %v880_v8 = vmul.f32 %v1260_v53, %v1260_v53  ;;  %v816_v21 = vsel %vm804_vm3, %v1260_v53, 0.0 }
  0xe4   : > { %v809_v58 = vadd.f32 %v808_v51, %v807_v52  ;;  %v908_v59 = vadd.f32 %v907_v56, %v906_v54  ;;  %v532_v60 = vpop.f32.mrf.mxu0 }
  0xe5   : > { %778 = vst.msk [vmem:[%s1481_s8 + $0x18] sm:$0xf] %vm771_vm2, %v1130_v57  ;;  %v1128_v63 = vpack.c.bf16 %v532_v60, %v532_v60  ;;  %v878_v0 = vmul.f32 %v532_v60, %v532_v60  ;;  %v812_v6 = vsel %vm804_vm3, %v532_v60, 0.0  ;;  %v917_v22 = vsel %vm804_vm3, %v880_v8, 0.0 }
  0xe6   : > { %v910_v1 = vadd.f32 %v909_v61, %v908_v59  ;;  %v811_v3 = vadd.f32 %v810_v62, %v809_v58  ;;  %v1261_v4 = vpop.f32.mrf.mxu0 }
  0xe7   : > { %776 = vst.msk [vmem:[%s1481_s8 + $0x10] sm:$0xf] %vm771_vm2, %v1128_v63  ;;  %v1131_v7 = vpack.c.bf16 %v1261_v4, %v1261_v4  ;;  %v913_v14 = vsel %vm804_vm3, %v878_v0, 0.0  ;;  %v881_v23 = vmul.f32 %v1261_v4, %v1261_v4  ;;  %v818_v25 = vsel %vm804_vm3, %v1261_v4, 0.0 }
  0xe8   : > { %v813_v9 = vadd.f32 %v812_v6, %v811_v3  ;;  %v912_v10 = vadd.f32 %v911_v5, %v910_v1  ;;  %v535_v12 = vpop.f32.mrf.mxu0 }
  0xe9   : > { %779 = vst.msk [vmem:[%s1481_s8 + $0x1c] sm:$0xf] %vm771_vm2, %v1131_v7  ;;  %v1129_v15 = vpack.c.bf16 %v535_v12, %v535_v12  ;;  %v814_v16 = vsel %vm804_vm3, %v535_v12, 0.0  ;;  %v879_v17 = vmul.f32 %v535_v12, %v535_v12  ;;  %v919_v38 = vsel %vm804_vm3, %v881_v23, 0.0 }
  0xea   : > { %v914_v18 = vadd.f32 %v913_v14, %v912_v10  ;;  %v815_v19 = vadd.f32 %v814_v16, %v813_v9  ;;  %v1264_v20 = vpop.f32.mrf.mxu0 }
  0xeb   : > { %777 = vst.msk [vmem:[%s1481_s8 + $0x14] sm:$0xf] %vm771_vm2, %v1129_v15  ;;  %v915_v24 = vsel %vm804_vm3, %v879_v17, 0.0  ;;  %v1134_v26 = vpack.c.bf16 %v1264_v20, %v1264_v20  ;;  %v1512_v27 = vpop.f32.mrf.mxu1  ;;  %v884_v40 = vmul.f32 %v1264_v20, %v1264_v20  ;;  %v824_v53 = vsel %vm804_vm3, %v1264_v20, 0.0 }
  0xec   : > { %v817_v28 = vadd.f32 %v816_v21, %v815_v19  ;;  %v916_v29 = vadd.f32 %v915_v24, %v914_v18  ;;  %v548_v30 = vpop.f32.mrf.mxu0  ;;  %v1142_v13 = vpack.c.bf16 %v1512_v27, %v1512_v27 }
  0xed   : > { %782 = vst.msk [vmem:[%s1481_s8 + $0x28] sm:$0xf] %vm771_vm2, %v1134_v26  ;;  %v1132_v31 = vpack.c.bf16 %v548_v30, %v548_v30  ;;  %v882_v32 = vmul.f32 %v548_v30, %v548_v30  ;;  %v1520_v33 = vpop.f32.mrf.mxu1  ;;  %v820_v39 = vsel %vm804_vm3, %v548_v30, 0.0  ;;  %v925_v61 = vsel %vm804_vm3, %v884_v40, 0.0 }
  0xee   : > { %v918_v34 = vadd.f32 %v917_v22, %v916_v29  ;;  %v819_v35 = vadd.f32 %v818_v25, %v817_v28  ;;  %v1265_v36 = vpop.f32.mrf.mxu0  ;;  %790 = vst.msk [vmem:[%s1481_s8 + $0x48] sm:$0xf] %vm771_vm2, %v1142_v13  ;;  %v1140_v37 = vpack.c.bf16 %v1520_v33, %v1520_v33 }
  0xef   : > { %780 = vst.msk [vmem:[%s1481_s8 + $0x20] sm:$0xf] %vm771_vm2, %v1132_v31  ;;  %v1135_v2 = vpack.c.bf16 %v1265_v36, %v1265_v36  ;;  %v1530_v11 = vpop.f32.mrf.mxu1  ;;  %v921_v44 = vsel %vm804_vm3, %v882_v32, 0.0  ;;  %v885_v54 = vmul.f32 %v1265_v36, %v1265_v36  ;;  %v826_v62 = vsel %vm804_vm3, %v1265_v36, 0.0 }
  0xf0   : > { %v821_v41 = vadd.f32 %v820_v39, %v819_v35  ;;  %v920_v42 = vadd.f32 %v919_v38, %v918_v34  ;;  %v551_v43 = vpop.f32.mrf.mxu0  ;;  %788 = vst.msk [vmem:[%s1481_s8 + $0x40] sm:$0xf] %vm771_vm2, %v1140_v37  ;;  %v1143_v52 = vpack.c.bf16 %v1530_v11, %v1530_v11  ;;  %v890_v35 = vmul.f32 %v1520_v33, %v1520_v33 }
  0xf1   : > { %783 = vst.msk [vmem:[%s1481_s8 + $0x2c] sm:$0xf] %vm771_vm2, %v1135_v2  ;;  %v1133_v45 = vpack.c.bf16 %v551_v43, %v551_v43  ;;  %v822_v46 = vsel %vm804_vm3, %v551_v43, 0.0  ;;  %v883_v47 = vmul.f32 %v551_v43, %v551_v43  ;;  %v1538_v48 = vpop.f32.mrf.mxu1  ;;  %v927_v7 = vsel %vm804_vm3, %v885_v54, 0.0 }
  0xf2   : > { %v922_v49 = vadd.f32 %v921_v44, %v920_v42  ;;  %v823_v50 = vadd.f32 %v822_v46, %v821_v41  ;;  %v1268_v51 = vpop.f32.mrf.mxu0  ;;  %791 = vst.msk [vmem:[%s1481_s8 + $0x4c] sm:$0xf] %vm771_vm2, %v1143_v52  ;;  %v1141_v6 = vpack.c.bf16 %v1538_v48, %v1538_v48  ;;  %v836_v41 = vsel %vm804_vm3, %v1520_v33, 0.0 }
  0xf3   : > { %781 = vst.msk [vmem:[%s1481_s8 + $0x24] sm:$0xf] %vm771_vm2, %v1133_v45  ;;  %v923_v55 = vsel %vm804_vm3, %v883_v47, 0.0  ;;  %v1138_v56 = vpack.c.bf16 %v1268_v51, %v1268_v51  ;;  %v1546_v57 = vpop.f32.mrf.mxu1  ;;  %v888_v12 = vmul.f32 %v1268_v51, %v1268_v51  ;;  %v832_v28 = vsel %vm804_vm3, %v1268_v51, 0.0 }
  0xf4   : > { %v825_v58 = vadd.f32 %v824_v53, %v823_v50  ;;  %v924_v59 = vadd.f32 %v923_v55, %v922_v49  ;;  %v564_v60 = vpop.f32.mrf.mxu0  ;;  %789 = vst.msk [vmem:[%s1481_s8 + $0x44] sm:$0xf] %vm771_vm2, %v1141_v6  ;;  %v1146_v26 = vpack.c.bf16 %v1546_v57, %v1546_v57  ;;  %v891_v42 = vmul.f32 %v1538_v48, %v1538_v48 }
  0xf5   : > { %786 = vst.msk [vmem:[%s1481_s8 + $0x38] sm:$0xf] %vm771_vm2, %v1138_v56  ;;  %v1136_v63 = vpack.c.bf16 %v564_v60, %v564_v60  ;;  %v886_v0 = vmul.f32 %v564_v60, %v564_v60  ;;  %v1554_v1 = vpop.f32.mrf.mxu1  ;;  %v828_v8 = vsel %vm804_vm3, %v564_v60, 0.0  ;;  %v933_v32 = vsel %vm804_vm3, %v888_v12, 0.0 }
  0xf6   : > { %v926_v3 = vadd.f32 %v925_v61, %v924_v59  ;;  %v827_v4 = vadd.f32 %v826_v62, %v825_v58  ;;  %v1269_v5 = vpop.f32.mrf.mxu0  ;;  %v1144_v13 = vpack.c.bf16 %v1554_v1, %v1554_v1  ;;  %794 = vst.msk [vmem:[%s1481_s8 + $0x58] sm:$0xf] %vm771_vm2, %v1146_v26  ;;  %v892_v47 = vmul.f32 %v1512_v27, %v1512_v27 }
  0xf7   : > { %784 = vst.msk [vmem:[%s1481_s8 + $0x30] sm:$0xf] %vm771_vm2, %v1136_v63  ;;  %v1139_v9 = vpack.c.bf16 %v1269_v5, %v1269_v5  ;;  %v1562_v10 = vpop.f32.mrf.mxu1  ;;  %v929_v17 = vsel %vm804_vm3, %v886_v0, 0.0  ;;  %v889_v29 = vmul.f32 %v1269_v5, %v1269_v5  ;;  %v834_v34 = vsel %vm804_vm3, %v1269_v5, 0.0 }
  0xf8   : > { %v829_v14 = vadd.f32 %v828_v8, %v827_v4  ;;  %v928_v15 = vadd.f32 %v927_v7, %v926_v3  ;;  %v567_v16 = vpop.f32.mrf.mxu0  ;;  %792 = vst.msk [vmem:[%s1481_s8 + $0x50] sm:$0xf] %vm771_vm2, %v1144_v13  ;;  %v1147_v36 = vpack.c.bf16 %v1562_v10, %v1562_v10  ;;  %v937_v33 = vsel %vm804_vm3, %v890_v35, 0.0 }
  0xf9   : > { %787 = vst.msk [vmem:[%s1481_s8 + $0x3c] sm:$0xf] %vm771_vm2, %v1139_v9  ;;  %v1137_v18 = vpack.c.bf16 %v567_v16, %v567_v16  ;;  %v830_v19 = vsel %vm804_vm3, %v567_v16, 0.0  ;;  %v887_v20 = vmul.f32 %v567_v16, %v567_v16  ;;  %v1570_v21 = vpop.f32.mrf.mxu1  ;;  %v935_v40 = vsel %vm804_vm3, %v889_v29, 0.0 }
  0xfa   : > { %v930_v23 = vadd.f32 %v929_v17, %v928_v15  ;;  %v831_v24 = vadd.f32 %v830_v19, %v829_v14  ;;  %v1145_v2 = vpack.c.bf16 %v1570_v21, %v1570_v21  ;;  %795 = vst.msk [vmem:[%s1481_s8 + $0x5c] sm:$0xf] %vm771_vm2, %v1147_v36  ;;  %v838_v49 = vsel %vm804_vm3, %v1538_v48, 0.0 }
  0xfb   : > { %785 = vst.msk [vmem:[%s1481_s8 + $0x34] sm:$0xf] %vm771_vm2, %v1137_v18  ;;  %v931_v30 = vsel %vm804_vm3, %v887_v20, 0.0  ;;  %v1580_v22 = vpop.f32.mrf.mxu1  ;;  %v840_v55 = vsel %vm804_vm3, %v1512_v27, 0.0  ;;  %v893_v56 = vmul.f32 %v1530_v11, %v1530_v11  ;;  %v939_v48 = vsel %vm804_vm3, %v891_v42, 0.0 }
  0xfc   : > { %v833_v25 = vadd.f32 %v832_v28, %v831_v24  ;;  %v932_v31 = vadd.f32 %v931_v30, %v930_v23  ;;  %v1150_v43 = vpack.c.bf16 %v1580_v22, %v1580_v22  ;;  %793 = vst.msk [vmem:[%s1481_s8 + $0x54] sm:$0xf] %vm771_vm2, %v1145_v2  ;;  %v941_v62 = vsel %vm804_vm3, %v892_v47, 0.0 }
  0xfd   : > { %v1592_v37 = vpop.f32.mrf.mxu1  ;;  %v842_v27 = vsel %vm804_vm3, %v1530_v11, 0.0  ;;  %v894_v63 = vmul.f32 %v1554_v1, %v1554_v1  ;;  %v943_v7 = vsel %vm804_vm3, %v893_v56, 0.0  ;;  %v844_v8 = vsel %vm804_vm3, %v1554_v1, 0.0 }
  0xfe   : > { %v835_v38 = vadd.f32 %v834_v34, %v833_v25  ;;  %v934_v39 = vadd.f32 %v933_v32, %v932_v31  ;;  %798 = vst.msk [vmem:[%s1481_s8 + $0x68] sm:$0xf] %vm771_vm2, %v1150_v43  ;;  %v1148_v50 = vpack.c.bf16 %v1592_v37, %v1592_v37  ;;  %v895_v11 = vmul.f32 %v1570_v21, %v1570_v21 }
  0xff   : > { %v1605_v44 = vpop.f32.mrf.mxu1  ;;  %v896_v16 = vmul.f32 %v1546_v57, %v1546_v57  ;;  %v945_v17 = vsel %vm804_vm3, %v894_v63, 0.0  ;;  %v846_v1 = vsel %vm804_vm3, %v1570_v21, 0.0  ;;  %v848_v24 = vsel %vm804_vm3, %v1546_v57, 0.0 }
 0x100   : > { %v936_v45 = vadd.f32 %v935_v40, %v934_v39  ;;  %v837_v46 = vadd.f32 %v836_v41, %v835_v38  ;;  %v1151_v54 = vpack.c.bf16 %v1605_v44, %v1605_v44  ;;  %796 = vst.msk [vmem:[%s1481_s8 + $0x60] sm:$0xf] %vm771_vm2, %v1148_v50  ;;  %v897_v26 = vmul.f32 %v1562_v10, %v1562_v10 }
 0x101   : > { %v615_v51 = vpop.f32.mrf.mxu1  ;;  %v947_v28 = vsel %vm804_vm3, %v895_v11, 0.0  ;;  %v949_v21 = vsel %vm804_vm3, %v896_v16, 0.0  ;;  %v850_v13 = vsel %vm804_vm3, %v1562_v10, 0.0  ;;  %v898_v25 = vmul.f32 %v1592_v37, %v1592_v37 }
 0x102   : > { %v839_v52 = vadd.f32 %v838_v49, %v837_v46  ;;  %v938_v53 = vadd.f32 %v937_v33, %v936_v45  ;;  %v1149_v58 = vpack.c.bf16 %v615_v51, %v615_v51  ;;  %799 = vst.msk [vmem:[%s1481_s8 + $0x6c] sm:$0xf] %vm771_vm2, %v1151_v54  ;;  %v951_v57 = vsel %vm804_vm3, %v897_v26, 0.0 }
 0x103   : > { %v1627_v59 = vpop.f32.mrf.mxu1  ;;  %v852_v34 = vsel %vm804_vm3, %v1592_v37, 0.0  ;;  %v899_v35 = vmul.f32 %v615_v51, %v615_v51  ;;  %v900_v39 = vmul.f32 %v1580_v22, %v1580_v22  ;;  %v953_v2 = vsel %vm804_vm3, %v898_v25, 0.0 }
 0x104   : > { %v841_v60 = vadd.f32 %v840_v55, %v839_v52  ;;  %v940_v61 = vadd.f32 %v939_v48, %v938_v53  ;;  %797 = vst.msk [vmem:[%s1481_s8 + $0x64] sm:$0xf] %vm771_vm2, %v1149_v58  ;;  %v1154_v0 = vpack.c.bf16 %v1627_v59, %v1627_v59  ;;  %v854_v10 = vsel %vm804_vm3, %v615_v51, 0.0 }
 0x105   : > { %v628_v3 = vpop.f32.mrf.mxu1  ;;  %v856_v42 = vsel %vm804_vm3, %v1580_v22, 0.0  ;;  %v901_v43 = vmul.f32 %v1605_v44, %v1605_v44  ;;  %v955_v37 = vsel %vm804_vm3, %v899_v35, 0.0  ;;  %v957_v47 = vsel %vm804_vm3, %v900_v39, 0.0 }
 0x106   : > { %v942_v4 = vadd.f32 %v941_v62, %v940_v61  ;;  %v843_v5 = vadd.f32 %v842_v27, %v841_v60  ;;  %v1152_v6 = vpack.c.bf16 %v628_v3, %v628_v3  ;;  %802 = vst.msk [vmem:[%s1481_s8 + $0x78] sm:$0xf] %vm771_vm2, %v1154_v0  ;;  %v858_v33 = vsel %vm804_vm3, %v1605_v44, 0.0 }
 0x107   : > { %v1285_v9 = vpop.f32.mrf.mxu1  ;;  %v902_v49 = vmul.f32 %v628_v3, %v628_v3  ;;  %v959_v52 = vsel %vm804_vm3, %v901_v43, 0.0  ;;  %v860_v53 = vsel %vm804_vm3, %v628_v3, 0.0  ;;  %v904_v56 = vmul.f32 %v1627_v59, %v1627_v59 }
 0x108   : > { %v845_v12 = vadd.f32 %v844_v8, %v843_v5  ;;  %v944_v14 = vadd.f32 %v943_v7, %v942_v4  ;;  %800 = vst.msk [vmem:[%s1481_s8 + $0x70] sm:$0xf] %vm771_vm2, %v1152_v6  ;;  %v1155_v15 = vpack.c.bf16 %v1285_v9, %v1285_v9  ;;  %v864_v44 = vsel %vm804_vm3, %v1627_v59, 0.0 }
 0x109   : > { %v631_v18 = vpop.f32.mrf.mxu1  ;;  %v961_v48 = vsel %vm804_vm3, %v902_v49, 0.0  ;;  %v905_v62 = vmul.f32 %v1285_v9, %v1285_v9  ;;  %v965_v3 = vsel %vm804_vm3, %v904_v56, 0.0  ;;  %v866_v4 = vsel %vm804_vm3, %v1285_v9, 0.0 }
 0x10a   : > { %v946_v19 = vadd.f32 %v945_v17, %v944_v14  ;;  %v847_v20 = vadd.f32 %v846_v1, %v845_v12  ;;  %803 = vst.msk [vmem:[%s1481_s8 + $0x7c] sm:$0xf] %vm771_vm2, %v1155_v15  ;;  %v1153_v23 = vpack.c.bf16 %v631_v18, %v631_v18  ;;  %v903_v22 = vmul.f32 %v631_v18, %v631_v18 }
 0x10b   : > { %v862_v58 = vsel %vm804_vm3, %v631_v18, 0.0  ;;  %v967_v7 = vsel %vm804_vm3, %v905_v62, 0.0 }
 0x10c   : > { %v849_v29 = vadd.f32 %v848_v24, %v847_v20  ;;  %v948_v30 = vadd.f32 %v947_v28, %v946_v19  ;;  %801 = vst.msk [vmem:[%s1481_s8 + $0x74] sm:$0xf] %vm771_vm2, %v1153_v23  ;;  %v963_v27 = vsel %vm804_vm3, %v903_v22, 0.0 }
 0x10e   : > { %v950_v31 = vadd.f32 %v949_v21, %v948_v30  ;;  %v851_v32 = vadd.f32 %v850_v13, %v849_v29 }
 0x110   : > { %v853_v36 = vadd.f32 %v852_v34, %v851_v32  ;;  %v952_v38 = vadd.f32 %v951_v57, %v950_v31 }
 0x112   : > { %v954_v40 = vadd.f32 %v953_v2, %v952_v38  ;;  %v855_v41 = vadd.f32 %v854_v10, %v853_v36 }
 0x114   : > { %v857_v45 = vadd.f32 %v856_v42, %v855_v41  ;;  %v956_v46 = vadd.f32 %v955_v37, %v954_v40 }
 0x116   : > { %v958_v50 = vadd.f32 %v957_v47, %v956_v46  ;;  %v859_v51 = vadd.f32 %v858_v33, %v857_v45 }
 0x118   : > { %v861_v54 = vadd.f32 %v860_v53, %v859_v51  ;;  %v960_v55 = vadd.f32 %v959_v52, %v958_v50 }
 0x11a   : > { %v962_v60 = vadd.f32 %v961_v48, %v960_v55  ;;  %v863_v61 = vadd.f32 %v862_v58, %v861_v54 }
 0x11c   : > { %v865_v63 = vadd.f32 %v864_v44, %v863_v61  ;;  %v964_v0 = vadd.f32 %v963_v27, %v962_v60 }
 0x11e   : > { %v867_v5 = vadd.f32 %v866_v4, %v865_v63  ;;  %v966_v6 = vadd.f32 %v965_v3, %v964_v0 }
 0x120   : > { %v968_v8 = vadd.f32 %v967_v7, %v966_v6  ;;  %v868_v17 = vrot.slane %v867_v5, 4 }
 0x122   : > { %v969_v11 = vrot.slane %v968_v8, 4  ;;  %v869_v1 = vadd.f32 %v868_v17, %v867_v5 }
 0x124   : > { %v970_v12 = vadd.f32 %v969_v11, %v968_v8  ;;  %v870_v18 = vrot.slane %v869_v1, 2 }
 0x126   : > { %v971_v14 = vrot.slane %v970_v12, 2  ;;  %v871_v9 = vadd.f32 %v870_v18, %v869_v1 }
 0x128   : > { %v972_v59 = vadd.f32 %v971_v14, %v970_v12  ;;  %v872_v19 = vrot.slane %v871_v9, 1 }
 0x12a   : > { %v973_v15 = vrot.slane %v972_v59, 1  ;;  %v873_v20 = vadd.f32 %v872_v19, %v871_v9 }
 0x12c   : > { %v974_v16 = vadd.f32 %v973_v15, %v972_v59 }
 0x12e   : > { %976 = vrot.lane.b32.xlu0 %v974_v16, %s1307_s9 }
 0x1a0   : > { %v977_v23 = vpop.permute.xlu0 %976 }
 0x1a1   : > { %v979_v24 = vsel %vm804_vm3, %v873_v20, %v977_v23 }
 0x1a2   : > { %981 = vst.msk [vmem:[%s236_s12] sm:$0x1] %vm980_vm4, %v979_v24 }
 0x1a3 PF: > { %s16_s18 = sadd.s32 1, %s1305_s18  }
 0x1a4   : > { %p13_p5 = scmp.ge.s32.totalorder %s16_s18, 4  }
 0x1a6   :  { %15 = sbr.rel (!%p13_p5) target bundleno = 1 (0x1), region = 78 }

// kernel: bottleneck_forward.5
= control target key start
LH: loop header
LB: loop body
LE: loop exit
PB: predicated region body
PF: predicated region fallthrough
CT: control target
= control target key end

     0   :  { %s2407_s24 = smov 0   ;;  %s2409_s25 = smov 0   ;;  %s3266_s0 = inlined_call_operand.vmem [shape: bf16[2,16,16,4], index: 0, kind: input, shape index: {}, may-alias: {0,1,2}]   ;;  %s3267_s1 = inlined_call_operand.vmem [shape: bf16[2,16,16,4], index: 1, kind: input, shape index: {}, may-alias: {0,1,2}]   ;;  %s3268_s2 = inlined_call_operand.vmem [shape: bf16[2,16,16,4], index: 2, kind: input, shape index: {}, may-alias: {0,1,2}]   ;;  %s3269_s3 = inlined_call_operand.vmem [shape: bf16[3,12,4], index: 3, kind: input, shape index: {}]   ;;  %s3270_s4 = inlined_call_operand.vmem [shape: f32[1,4], index: 4, kind: input, shape index: {}]   ;;  %s3271_s5 = inlined_call_operand.vmem [shape: f32[1,4], index: 5, kind: input, shape index: {}]   ;;  %s3272_s6 = inlined_call_operand.vmem [shape: bf16[512,4], index: 6, kind: output, shape index: {0}]   ;;  %s3273_s7 = inlined_call_operand.vmem [shape: f32[4,1,8], index: 7, kind: output, shape index: {1}]  }
   0x1   :  { %s2411_s26 = smov 0   ;;  %s2413_s27 = smov 0  }
   0x2   :  { %s2415_s28 = smov 0  }
   0x3 LB: > { %s27_s29 = sadd.s32 1, %s2355_s26  ;;  %s30_s30 = sadd.s32 1, %s2359_s27  ;;  %s2363_s28 = sphi %s2415_s28, %s18_s28   ;;  %s2359_s27 = sphi %s2413_s27, %s3314_s27   ;;  %s2355_s26 = sphi %s2411_s26, %s3313_s26   ;;  %s2351_s25 = sphi %s2409_s25, %s3312_s25   ;;  %s2347_s24 = sphi %s2407_s24, %s3311_s24  }
   0x4   : > { %p28_p0 = scmp.ge.s32.totalorder %s27_s29, 2  ;;  %p1945_p1 = scmp.ge.s32.totalorder %s2363_s28, 1 }
   0x5   : > { %p332_p2 = scmp.lt.s32.totalorder %s2363_s28, 5 }
   0x6   : > { %s3316_s29 = smov (%p28_p0, %s27_s29), 0  ;;  %s3318_s30 = smov (!%p28_p0, %s30_s30), %s2359_s27 }
   0x7   : > { %p333_p3 = pnand %p1945_p1, %p332_p2  ;;  %p32_p4 = scmp.ge.s32.totalorder %s3318_s30, 2 }
   0x8   : > { %s2442_s8 = sshll.u32 (!%p333_p3), %s2347_s24, 3  ;;  %p403_p5 = scmp.lt.s32.totalorder (!%p333_p3), %s2351_s25, 1 }
   0x9   : > { %s3320_s30 = smov (%p32_p4, %s3318_s30), 0  ;;  %336 = sbr.rel (%p333_p3) target bundleno = 559 (0x22f), region = 44 }
   0xa   : > { %p405_p6 = scmp.lt.s32.totalorder (!%p333_p3), %s2442_s8, 15  ;;  %s2029_s13 = sadd.s32 (!%p333_p3), 8, %s2442_s8 }
   0xb   : > { %p2483_p7 = scmp.lt.s32.totalorder (!%p333_p3), %s2029_s13, 15  ;;  %s2503_s22 = sadd.s32 (!%p333_p3), 4294967295, %s2442_s8 }
   0xc   : > { %p415_p8 = scmp.gt.s32.totalorder (!%p333_p3), %s2503_s22, 0  ;;  %p1952_p9 = scmp.lt.s32.totalorder (!%p333_p3), %s2503_s22, 15 }
   0xd   : > { %p585_p10 = scmp.lt.s32.totalorder (!%p333_p3), %s2347_s24, 1  ;;  %p569_p11 = scmp.gt.s32.totalorder (!%p333_p3), %s2347_s24, 0 }
   0xe   : > { %v591_v0 = vlaneseq  ;;  %s404_s9 = scalar_select %p403_p5, %s2351_s25, 1  ;;  %v2469_v6 = vld [vmem:[%s3270_s4] ss:$0 sm:$0xff]  ;;  %vm1261_vm12 = vcmask 1045504  }
   0xf   : > { %s406_s10 = scalar_select %p405_p6, %s2442_s8, 15  ;;  %v2508_v23 = vld [vmem:[%s3271_s5] ss:$0 sm:$0xff] }
  0x10   : > { %v2447_v1 = vshrl.u32 %v591_v0, 7  ;;  %s2450_s11 = sshll.u32 %s404_s9, 5  ;;  %s3322_s13 = smov (!%p2483_p7, %s2029_s13), 15 }
  0x11   : > { %s1947_s12 = sshll.u32 %s406_s10, 1  ;;  %s3324_s13 = smov (!%p2483_p7, %s3322_s13), 15 }
  0x12   : > { %v2453_v2 = vadd.s32 104, %v2447_v1  ;;  %v2456_v3 = vadd.s32 88, %v2447_v1  ;;  %v2459_v4 = vadd.s32 24, %v2447_v1  ;;  %v2462_v5 = vadd.s32 40, %v2447_v1  ;;  %s409_s14 = sadd.s32 %s2450_s11, %s1947_s12  ;;  %s2365_s10 = smov 4  }
  0x13   : > { %s1949_s15 = sshll.u32 %s409_s14, 2  ;;  %v2472_v7 = vadd.s32 120, %v2447_v1  ;;  %v2488_v10 = vadd.s32 136, %v2447_v1  ;;  %v2491_v11 = vadd.s32 72, %v2447_v1  ;;  %v2499_v17 = vadd.s32 56, %v2447_v1  ;;  %s2586_s12 = sshll.u32 %s3324_s13, 1 }
  0x14   : > { %s2477_s20 = scalar_lea.vmem %s3266_s0, %s1949_s15  ;;  %v707_v8 = vand.u32 15, %v2453_v2  ;;  %v693_v9 = vand.u32 15, %v2456_v3  ;;  %v637_v15 = vand.u32 15, %v2459_v4  ;;  %v651_v16 = vand.u32 15, %v2462_v5  ;;  %s440_s13 = sadd.s32 %s2586_s12, %s2450_s11 }
  0x15   : > { %v2089_v12 = vld [vmem:[%s2477_s20 + $0x20] sm:$0xff]   ;;  %v2090_v14 = vld [vmem:[%s2477_s20 + $0x28] sm:$0xff]   ;;  %vm953_vm0 = vcmp.lt.s32.totalorder %v2447_v1, 7  ;;  %v2091_v48 = vld [vmem:[%s2477_s20 + $0x30] sm:$0xff]   ;;  %s416_s8 = scalar_select %p415_p8, %s2503_s22, 0  ;;  %v721_v56 = vand.u32 15, %v2472_v7 }
  0x16   : > { %v2047_v13 = vld [vmem:[%s2477_s20] sm:$0xff]   ;;  %v2064_v18 = vunpack.c.l.bf16 %v2089_v12  ;;  %v2065_v19 = vunpack.c.h.bf16 %v2089_v12  ;;  %v2086_v22 = vld [vmem:[%s2477_s20 + $0x8] sm:$0xff]   ;;  %v2068_v24 = vunpack.c.l.bf16 %v2090_v14  ;;  %v2069_v25 = vunpack.c.h.bf16 %v2090_v14  ;;  %v2092_v53 = vld [vmem:[%s2477_s20 + $0x38] sm:$0xff]   ;;  %s2637_s15 = sshll.u32 %s440_s13, 2 }
  0x17   : > { %v2048_v20 = vunpack.c.l.bf16 %v2047_v13  ;;  %v2049_v21 = vunpack.c.h.bf16 %v2047_v13  ;;  %v2052_v26 = vunpack.c.l.bf16 %v2086_v22  ;;  %v2053_v27 = vunpack.c.h.bf16 %v2086_v22  ;;  %v2087_v55 = vld [vmem:[%s2477_s20 + $0x10] sm:$0xff]   ;;  %s3326_s8 = smov (!%p1952_p9, %s416_s8), 15  ;;  %s442_s19 = scalar_lea.vmem %s3268_s2, %s2637_s15 }
  0x18   : > { %v513_v28 = vmul.f32 %v2064_v18, %v2469_v6  ;;  %v514_v29 = vmul.f32 %v2065_v19, %v2469_v6  ;;  %v515_v32 = vmul.f32 %v2068_v24, %v2469_v6  ;;  %v516_v33 = vmul.f32 %v2069_v25, %v2469_v6  ;;  %s1957_s14 = sshll.u32 %s3326_s8, 1  ;;  %s2366_s8 = smov 8  }
  0x19   : > { %v505_v30 = vmul.f32 %v2048_v20, %v2469_v6  ;;  %v506_v31 = vmul.f32 %v2049_v21, %v2469_v6  ;;  %v507_v34 = vmul.f32 %v2052_v26, %v2469_v6  ;;  %v508_v35 = vmul.f32 %v2053_v27, %v2469_v6  ;;  %s2640_s16 = sadd.s32 %s1957_s14, %s2450_s11 }
  0x1a   : > { %v535_v36 = vadd.f32 %v2508_v23, %v513_v28  ;;  %v536_v37 = vadd.f32 %v2508_v23, %v514_v29  ;;  %v537_v40 = vadd.f32 %v2508_v23, %v515_v32  ;;  %v538_v41 = vadd.f32 %v2508_v23, %v516_v33  ;;  %s2660_s11 = scalar_select %p585_p10, 1, 0 }
  0x1b   : > { %v527_v38 = vadd.f32 %v2508_v23, %v505_v30  ;;  %v528_v39 = vadd.f32 %v2508_v23, %v506_v31  ;;  %v529_v42 = vadd.f32 %v2508_v23, %v507_v34  ;;  %v530_v43 = vadd.f32 %v2508_v23, %v508_v35  ;;  %s1959_s21 = sshll.u32 %s2640_s16, 2 }
  0x1c   : > { %v2535_v44 = vmax.f32 %v535_v36, 0.0  ;;  %v2537_v45 = vmax.f32 %v536_v37, 0.0  ;;  %v2547_v49 = vmax.f32 %v537_v40, 0.0  ;;  %v2549_v50 = vmax.f32 %v538_v41, 0.0  ;;  %s425_s9 = scalar_lea.vmem %s3267_s1, %s1959_s21 }
  0x1d   : > { %v2539_v46 = vmax.f32 %v527_v38, 0.0  ;;  %v2541_v47 = vmax.f32 %v528_v39, 0.0  ;;  %v2551_v51 = vmax.f32 %v529_v42, 0.0  ;;  %v2553_v52 = vmax.f32 %v530_v43, 0.0  ;;  %s2716_s12 = scalar_select %p569_p11, 1, 0 }
  0x1e   : > { %v2222_v54 = vpack.i.bf16 %v2537_v45, %v2535_v44  ;;  %v735_v57 = vand.u32 15, %v2488_v10  ;;  %v679_v58 = vand.u32 15, %v2491_v11  ;;  %v2227_v60 = vpack.i.bf16 %v2549_v50, %v2547_v49 }
  0x1f   : > { %v2232_v59 = vpack.i.bf16 %v2541_v47, %v2539_v46  ;;  %v2237_v61 = vpack.i.bf16 %v2553_v52, %v2551_v51  ;;  %vm2571_vm1 = vcmp.eq.s32.totalorder %v693_v9, 15  ;;  %v2072_v63 = vunpack.c.l.bf16 %v2091_v48  ;;  %s571_s13 = scvt.s32.f32 %s2716_s12 }
  0x20   : > { %2223 = vrot.lane.b32.xlu0 %v2222_v54, %s2365_s10  ;;  %v2073_v0 = vunpack.c.h.bf16 %v2091_v48  ;;  %v2076_v3 = vunpack.c.l.bf16 %v2092_v53  ;;  %v2077_v7 = vunpack.c.h.bf16 %v2092_v53  ;;  %vm2582_vm2 = vcmp.eq.s32.totalorder %v707_v8, 15 }
  0x21   : > { %2233 = vrot.lane.b32.xlu1 %v2232_v59, %s2365_s10  ;;  %v945_v9 = vrot.slane %v2547_v49, 1  ;;  %v946_v13 = vrot.slane %v2549_v50, 1  ;;  %v2056_v14 = vunpack.c.l.bf16 %v2087_v55  ;;  %v2057_v18 = vunpack.c.h.bf16 %v2087_v55 }
  0x22   : > { %vm2593_vm3 = vcmp.eq.s32.totalorder %v637_v15, 15  ;;  %v517_v8 = vmul.f32 %v2072_v63, %v2469_v6  ;;  %v518_v19 = vmul.f32 %v2073_v0, %v2469_v6  ;;  %v519_v20 = vmul.f32 %v2076_v3, %v2469_v6 }
  0x23   : > { %v520_v21 = vmul.f32 %v2077_v7, %v2469_v6  ;;  %vm2603_vm4 = vcmp.eq.s32.totalorder %v651_v16, 15  ;;  %v509_v4 = vmul.f32 %v2056_v14, %v2469_v6  ;;  %v510_v15 = vmul.f32 %v2057_v18, %v2469_v6  ;;  %v2088_v7 = vld [vmem:[%s2477_s20 + $0x18] sm:$0xff]   ;;  %v2083_v18 = vld [vmem:[%s442_s19] sm:$0xff]   ;;  %s587_s20 = scvt.s32.f32 %s2660_s11  ;;  %s1967_s19 = sshll.u32 %s2351_s25, 1 }
  0x24   : > { %v943_v24 = vrot.slane %v2535_v44, 1  ;;  %vm2610_vm5 = vcmp.eq.s32.totalorder %v721_v56, 15  ;;  %2228 = vrot.lane.b32.xlu0 %v2227_v60, %s2365_s10  ;;  %v539_v5 = vadd.f32 %v2508_v23, %v517_v8  ;;  %v540_v16 = vadd.f32 %v2508_v23, %v518_v19  ;;  %s3156_s21 = sadd.s32 %s2347_s24, %s1967_s19 }
  0x25   : > { %v541_v26 = vadd.f32 %v2508_v23, %v519_v20  ;;  %v542_v27 = vadd.f32 %v2508_v23, %v520_v21  ;;  %2238 = vrot.lane.b32.xlu1 %v2237_v61, %s2365_s10  ;;  %v960_v28 = vsel %vm953_vm0, %v945_v9, %v946_v13  ;;  %v531_v29 = vadd.f32 %v2508_v23, %v509_v4  ;;  %s1968_s22 = sshll.u32 %s3156_s21, 4  ;;  %p459_p13 = scmp.lt.s32.totalorder %s3156_s21, 3 }
  0x26   : > { %v532_v30 = vadd.f32 %v2508_v23, %v510_v15  ;;  %v944_v31 = vrot.slane %v2537_v45, 1  ;;  %v2629_v32 = vmax.f32 %v539_v5, 0.0  ;;  %v2631_v33 = vmax.f32 %v540_v16, 0.0  ;;  %p450_p12 = scmp.lt.s32.totalorder %s1968_s22, 63 }
  0x27   : > { %v2633_v34 = vmax.f32 %v541_v26, 0.0  ;;  %v2635_v35 = vmax.f32 %v542_v27, 0.0  ;;  %v2642_v36 = vmax.f32 %v531_v29, 0.0  ;;  %v935_v39 = vrot.slane %v2539_v46, 1  ;;  %s3330_s21 = smov (!%p459_p13, %s3156_s21), 3 }
  0x28   : > { %v2644_v37 = vmax.f32 %v532_v30, 0.0  ;;  %v961_v38 = vsel %vm953_vm0, %v944_v31, %v945_v9  ;;  %v2242_v40 = vpack.i.bf16 %v2631_v33, %v2629_v32  ;;  %v947_v42 = vrot.slane %v2629_v32, 1  ;;  %s3328_s22 = smov (!%p450_p12, %s1968_s22), 63  ;;  %s461_s12 = scalar_lea.vmem %s3273_s7, %s3330_s21 }
  0x29   : > { %v2247_v41 = vpack.i.bf16 %v2635_v35, %v2633_v34  ;;  %v962_v43 = vsel %vm953_vm0, %v943_v24, %v944_v31  ;;  %v1005_v53 = vsel %vm2571_vm1, 0.0, %v961_v38  ;;  %v936_v54 = vrot.slane %v2541_v47, 1  ;;  %s1969_s24 = sshll.u32 %s3328_s22, 2 }
  0x2a   : > { %v2252_v48 = vpack.i.bf16 %v2644_v37, %v2642_v36  ;;  %v937_v55 = vrot.slane %v2551_v51, 1  ;;  %2243 = vrot.lane.b32.xlu0 %v2242_v40, %s2365_s10  ;;  %v959_v56 = vsel %vm953_vm0, %v946_v13, %v947_v42  ;;  %v938_v59 = vrot.slane %v2553_v52, 1 }
  0x2b   : > { %2248 = vrot.lane.b32.xlu1 %v2247_v41, %s2365_s10  ;;  %v939_v60 = vrot.slane %v2642_v36, 1  ;;  %v948_v61 = vrot.slane %v2631_v33, 1  ;;  %v1007_v62 = vsel %vm2582_vm2, 0.0, %v959_v56  ;;  %v970_v0 = vsel %vm953_vm0, %v935_v39, %v936_v54 }
  0x2c   : > { %v969_v63 = vsel %vm953_vm0, %v936_v54, %v937_v55  ;;  %v949_v3 = vrot.slane %v2633_v34, 1  ;;  %v2262_v9 = vpack.i.bf16 %v1007_v62, %v960_v28  ;;  %v2257_v13 = vpack.i.bf16 %v1005_v53, %v962_v43  ;;  %v2079_v28 = vld [vmem:[%s425_s9] sm:$0xff]   ;;  %s3170_s9 = scalar_lea.vmem %s3272_s6, %s1969_s24 }
  0x2d   : > { %v997_v14 = vsel %vm2593_vm3, 0.0, %v969_v63  ;;  %v967_v12 = vsel %vm953_vm0, %v938_v59, %v939_v60  ;;  %v968_v19 = vsel %vm953_vm0, %v937_v55, %v938_v59  ;;  %v958_v21 = vsel %vm953_vm0, %v947_v42, %v948_v61 }
  0x2e   : > { %v2267_v8 = vpack.i.bf16 %v997_v14, %v970_v0  ;;  %v999_v20 = vsel %vm2603_vm4, 0.0, %v967_v12  ;;  %v957_v2 = vsel %vm953_vm0, %v948_v61, %v949_v3  ;;  %2263 = vrot.lane.b32.xlu0 %v2262_v9, %s2366_s8  ;;  %v2060_v15 = vunpack.c.l.bf16 %v2088_v7 }
  0x2f   : > { %2253 = vrot.lane.b32.xlu1 %v2252_v48, %s2365_s10  ;;  %v1009_v4 = vsel %vm2610_vm5, 0.0, %v957_v2  ;;  %v2061_v5 = vunpack.c.h.bf16 %v2088_v7  ;;  %v863_v22 = vrot.slane %v2537_v45, 7  ;;  %v2084_v16 = vunpack.c.l.bf16 %v2083_v18 }
  0x30   : > { %v950_v26 = vrot.slane %v2635_v35, 1  ;;  %v665_v27 = vand.u32 15, %v2499_v17  ;;  %v862_v29 = vrot.slane %v2535_v44, 7  ;;  %v2272_v30 = vpack.i.bf16 %v999_v20, %v968_v19 }
  0x31   : > { %v511_v31 = vmul.f32 %v2060_v15, %v2469_v6  ;;  %v512_v25 = vmul.f32 %v2061_v5, %v2469_v6  ;;  %v2282_v38 = vpack.i.bf16 %v1009_v4, %v958_v21  ;;  %v579_v40 = vmul.f32 %v2084_v16, %v2469_v6 }
  0x32   : > { %v588_v41 = vstv %s587_s20  ;;  %v940_v42 = vrot.slane %v2644_v37, 1  ;;  %2268 = vrot.lane.b32.xlu0 %v2267_v8, %s2366_s8  ;;  %v2080_v48 = vunpack.c.l.bf16 %v2079_v28  ;;  %v2081_v53 = vunpack.c.h.bf16 %v2079_v28 }
  0x33   : > { %2258 = vrot.lane.b32.xlu1 %v2257_v13, %s2366_s8  ;;  %v533_v17 = vadd.f32 %v2508_v23, %v511_v31  ;;  %v534_v43 = vadd.f32 %v2508_v23, %v512_v25  ;;  %v581_v54 = vadd.f32 %v2508_v23, %v579_v40  ;;  %v956_v55 = vsel %vm953_vm0, %v949_v3, %v950_v26 }
  0x34   : > { %vm2732_vm6 = vcmp.eq.s32.totalorder %v735_v57, 15  ;;  %vm2738_vm7 = vcmp.eq.s32.totalorder %v679_v58, 15  ;;  %v563_v63 = vmul.f32 %v2080_v48, %v2469_v6  ;;  %v564_v0 = vmul.f32 %v2081_v53, %v2469_v6 }
  0x35   : > { %v2743_v61 = vmax.f32 %v533_v17, 0.0  ;;  %v2745_v62 = vmax.f32 %v534_v43, 0.0  ;;  %v583_v10 = vmax.f32 %v581_v54, 0.0  ;;  %v966_v57 = vsel %vm953_vm0, %v939_v60, %v940_v42 }
  0x36   : > { %vm2751_vm8 = vcmp.eq.s32.totalorder %v665_v27, 15  ;;  %v2085_v11 = vunpack.c.h.bf16 %v2083_v18  ;;  %2283 = vrot.lane.b32.xlu0 %v2282_v38, %s2366_s8  ;;  %v593_v13 = vadd.s32 8, %v2447_v1  ;;  %v565_v60 = vadd.f32 %v2508_v23, %v563_v63 }
  0x37   : > { %2273 = vrot.lane.b32.xlu1 %v2272_v30, %s2366_s8  ;;  %v2277_v58 = vpack.i.bf16 %v2745_v62, %v2743_v61  ;;  %v941_v7 = vrot.slane %v2743_v61, 1  ;;  %v942_v9 = vrot.slane %v2745_v62, 1  ;;  %v2762_v14 = vmul.f32 %v588_v41, %v583_v10 }
  0x38   : > { %v566_v12 = vadd.f32 %v2508_v23, %v564_v0  ;;  %v572_v18 = vstv %s571_s13  ;;  %v580_v2 = vmul.f32 %v2085_v11, %v2469_v6  ;;  %v567_v15 = vmax.f32 %v565_v60, 0.0 }
  0x39   : > { %v963_v8 = vsel %vm953_vm0, %v942_v9, %v943_v24  ;;  %v964_v19 = vsel %vm953_vm0, %v941_v7, %v942_v9  ;;  %v965_v20 = vsel %vm953_vm0, %v940_v42, %v941_v7  ;;  %v951_v21 = vrot.slane %v2762_v14, 1 }
  0x3a   : > { %v1003_v4 = vsel %vm2738_vm7, 0.0, %v963_v8  ;;  %v611_v5 = vadd.s32 152, %v2447_v1  ;;  %v568_v24 = vmax.f32 %v566_v12, 0.0  ;;  %v623_v27 = vand.u32 15, %v593_v13  ;;  %v2322_v12 = vld [vmem:[%s3269_s3 + $0x8] sm:$0x3f]  }
  0x3b   : > { %2278 = vrot.lane.b32.xlu1 %v2277_v58, %s2365_s10  ;;  %v2297_v16 = vpack.i.bf16 %v1003_v4, %v964_v19  ;;  %v582_v28 = vadd.f32 %v2508_v23, %v580_v2  ;;  %v861_v30 = vrot.slane %v2745_v62, 7  ;;  %v955_v6 = vsel %vm953_vm0, %v950_v26, %v951_v21  ;;  %2177 = vmatprep.subr.msk.bf16.mxu1 %vm1261_vm12, %v2322_v12 }
  0x3c   : > { %v1001_v31 = vsel %vm2751_vm8, 0.0, %v965_v20  ;;  %v2786_v25 = vmul.f32 %v572_v18, %v567_v15  ;;  %v1011_v38 = vsel %vm2732_vm6, 0.0, %v955_v6  ;;  %v2790_v40 = vmul.f32 %v572_v18, %v568_v24  ;;  %v2324_v20 = vld [vmem:[%s3269_s3 + $0x10] sm:$0x3f]   ;;  %2176 = vmatprep.subr.msk.bf16.mxu0 %vm1261_vm12, %v2322_v12 }
  0x3d   : > { %v584_v42 = vmax.f32 %v582_v28, 0.0  ;;  %vm872_vm9 = vcmp.lt.s32.totalorder %v2447_v1, 1  ;;  %v2287_v17 = vpack.i.bf16 %v1011_v38, %v956_v55  ;;  %v749_v43 = vand.u32 15, %v611_v5 }
  0x3e   : > { %v933_v23 = vrot.slane %v2786_v25, 1  ;;  %v934_v26 = vrot.slane %v2790_v40, 1  ;;  %vm975_vm10 = vcmp.eq.s32.totalorder %v623_v27, 15  ;;  %v2804_v53 = vsel %vm872_vm9, %v862_v29, %v863_v22 }
  0x3f   : > { %2298 = vrot.lane.b32.xlu1 %v2297_v16, %s2366_s8  ;;  %v2796_v48 = vmul.f32 %v588_v41, %v584_v42  ;;  %2288 = vrot.lane.b32.xlu0 %v2287_v17, %s2366_s8  ;;  %v2292_v54 = vpack.i.bf16 %v1001_v31, %v966_v57  ;;  %v2813_v55 = vsel %vm872_vm9, %v861_v30, %v862_v29  ;;  %v864_v41 = vrot.slane %v2547_v49, 7 }
  0x40   : > { %v971_v56 = vsel %vm953_vm0, %v934_v26, %v935_v39  ;;  %v972_v59 = vsel %vm953_vm0, %v933_v23, %v934_v26  ;;  %vm993_vm11 = vcmp.eq.s32.totalorder %v749_v43, 15  ;;  %v855_v44 = vrot.slane %v2541_v47, 7 }
  0x41   : > { %v995_v63 = vsel %vm975_vm10, 0.0, %v971_v56  ;;  %v952_v0 = vrot.slane %v2796_v48, 1  ;;  %v865_v29 = vrot.slane %v2549_v50, 7  ;;  %v2829_v49 = vsel %vm872_vm9, %v863_v22, %v864_v41 }
  0x42   : > { %v2307_v10 = vpack.i.bf16 %v995_v63, %v972_v59  ;;  %v2302_v39 = vpack.i.bf16 %v2790_v40, %v2786_v25  ;;  %v856_v3 = vrot.slane %v2551_v51, 7  ;;  %v857_v11 = vrot.slane %v2553_v52, 7 }
  0x43   : > { %2293 = vrot.lane.b32.xlu0 %v2292_v54, %s2366_s8  ;;  %v954_v57 = vsel %vm953_vm0, %v951_v21, %v952_v0  ;;  %v973_v47 = vsel %vm953_vm0, %v952_v0, %v933_v23  ;;  %v2842_v50 = vsel %vm872_vm9, %v864_v41, %v865_v29  ;;  %v866_v7 = vrot.slane %v2629_v32, 7 }
  0x44   : > { %2308 = vrot.lane.b32.xlu1 %v2307_v10, %s2366_s8  ;;  %v1013_v45 = vsel %vm993_vm11, 0.0, %v973_v47  ;;  %v2847_v58 = vsel %vm872_vm9, %v855_v44, %v856_v3  ;;  %v867_v9 = vrot.slane %v2631_v33, 7  ;;  %v2312_v51 = vpack.i.bf16 %v2796_v48, %v2762_v14 }
  0x45   : > { %v2317_v22 = vpack.i.bf16 %v1013_v45, %v954_v57  ;;  %v2856_v13 = vsel %vm872_vm9, %v856_v3, %v857_v11  ;;  %v868_v60 = vrot.slane %v2633_v34, 7  ;;  %v2866_v32 = vsel %vm872_vm9, %v865_v29, %v866_v7 }
  0x46   : > { %v2862_v52 = vsel %vm872_vm9, %v866_v7, %v867_v9  ;;  %v869_v33 = vrot.slane %v2635_v35, 7  ;;  %v854_v18 = vrot.slane %v2539_v46, 7  ;;  %v858_v19 = vrot.slane %v2642_v36, 7  ;;  %v2323_v35 = vld [vmem:[%s3269_s3] sm:$0x3f]  }
  0x47   : > { %2303 = vrot.lane.b32.xlu0 %v2302_v39, %s2365_s10  ;;  %v2875_v34 = vsel %vm872_vm9, %v867_v9, %v868_v60  ;;  %v859_v46 = vrot.slane %v2644_v37, 7  ;;  %v1263_v36 = vsel %vm1261_vm12, %v2322_v12, 0  ;;  %v853_v21 = vrot.slane %v2790_v40, 7 }
  0x48   : > { %2318 = vrot.lane.b32.xlu1 %v2317_v22, %s2366_s8  ;;  %v2879_v8 = vsel %vm872_vm9, %v868_v60, %v869_v33  ;;  %v2892_v2 = vsel %vm872_vm9, %v857_v11, %v858_v19  ;;  %2175 = vmatpush3.bf16.msra.mxu1 %v1263_v36  ;;  %v2904_v37 = vsel %vm872_vm9, %v854_v18, %v855_v44  ;;  %v871_v15 = vrot.slane %v2796_v48, 7 }
  0x49   : > { %v2900_v4 = vsel %vm872_vm9, %v858_v19, %v859_v46  ;;  %2121 = vmatpush3.bf16.msra.mxu0 %v1263_v36  ;;  %v2909_v5 = vsel %vm872_vm9, %v853_v21, %v854_v18  ;;  %2178 = vmatprep.subr.msk.bf16.mxu1 %vm1261_vm12, %v2323_v35  ;;  %v860_v16 = vrot.slane %v2743_v61, 7  ;;  %v2915_v24 = vsel %vm1261_vm12, %v2323_v35, 0 }
  0x4a   : > { %2179 = vmatprep.subr.msk.bf16.mxu0 %vm1261_vm12, %v2324_v20  ;;  %v2918_v27 = vsel %vm1261_vm12, %v2324_v20, 0  ;;  %v852_v28 = vrot.slane %v2786_v25, 7  ;;  %v870_v25 = vrot.slane %v2762_v14, 7  ;;  %v602_v40 = vadd.s32 80, %v2447_v1 }
  0x4b   : > { %2313 = vrot.lane.b32.xlu0 %v2312_v51, %s2365_s10  ;;  %v2925_v6 = vsel %vm872_vm9, %v860_v16, %v861_v30  ;;  %v2929_v31 = vsel %vm872_vm9, %v859_v46, %v860_v16  ;;  %v604_v23 = vadd.s32 96, %v2447_v1  ;;  %v596_v43 = vadd.s32 32, %v2447_v1 }
  0x4c   : > { %v2933_v61 = vsel %vm872_vm9, %v852_v28, %v853_v21  ;;  %v2937_v38 = vsel %vm872_vm9, %v871_v15, %v852_v28  ;;  %v2942_v62 = vsel %vm872_vm9, %v870_v25, %v871_v15  ;;  %v2946_v30 = vsel %vm872_vm9, %v869_v33, %v870_v25 }
  0x4d   : > { %v686_v26 = vand.u32 15, %v602_v40  ;;  %v606_v14 = vadd.s32 112, %v2447_v1  ;;  %v594_v54 = vadd.s32 16, %v2447_v1  ;;  %v700_v56 = vand.u32 15, %v604_v23 }
  0x4e   : > { %v644_v59 = vand.u32 15, %v596_v43  ;;  %v2960_v10 = vadd.s32 128, %v2447_v1  ;;  %vm1174_vm0 = vcmask 31744   ;;  %vm1195_vm3 = vcmask 64512  }
  0x4f   : > { %vm2955_vm13 = vcmp.eq.s32.totalorder %v686_v26, 0  ;;  %v714_v0 = vand.u32 15, %v606_v14  ;;  %v630_v44 = vand.u32 15, %v594_v54  ;;  %vm2962_vm14 = vcmp.eq.s32.totalorder %v700_v56, 0 }
  0x50   : > { %vm2966_vm15 = vcmp.eq.s32.totalorder %v644_v59, 0  ;;  %v923_v3 = vsel %vm2955_vm13, 0.0, %v2813_v55  ;;  %v925_v51 = vsel %vm2962_vm14, 0.0, %v2829_v49  ;;  %v728_v55 = vand.u32 15, %v2960_v10 }
  0x51   : > { %vm2975_vm1 = vcmp.eq.s32.totalorder %v714_v0, 0  ;;  %vm2979_vm2 = vcmp.eq.s32.totalorder %v630_v44, 0  ;;  %v917_v60 = vsel %vm2966_vm15, 0.0, %v2847_v58  ;;  %v2991_v19 = vadd.s32 48, %v2447_v1 }
  0x52   : > { %v927_v20 = vsel %vm2975_vm1, 0.0, %v2866_v32  ;;  %v915_v58 = vsel %vm2979_vm2, 0.0, %v2909_v5  ;;  %vm1236_vm4 = vcmask 97280   ;;  %v600_v32 = vadd.s32 64, %v2447_v1 }
  0x53   : > { %vm3031_vm5 = vcmp.eq.s32.totalorder %v728_v55, 0  ;;  %v658_v55 = vand.u32 15, %v2991_v19  ;;  %vm1661_vm10 = vcmask 27648   ;;  %vm1773_vm11 = vcmask 57344  }
  0x55   : > { %vm3068_vm7 = vcmp.eq.s32.totalorder %v658_v55, 0 }
  0x92   : > { %v2224_v42 = vpop.permute.xlu0 %2223 }
  0x93   : > { %v2234_v17 = vpop.permute.xlu1 %2233  ;;  %v2225_v9 = vunpack.i.l.bf16 %v2224_v42  ;;  %v2226_v33 = vunpack.i.h.bf16 %v2224_v42 }
  0x94   : > { %v2235_v12 = vunpack.i.l.bf16 %v2234_v17  ;;  %v2236_v36 = vunpack.i.h.bf16 %v2234_v17 }
  0x95   : > { %v1185_v16 = vsel %vm1174_vm0, %v923_v3, %v2225_v9  ;;  %v1186_v40 = vsel %vm1174_vm0, %v2804_v53, %v2226_v33 }
  0x96   : > { %v2229_v48 = vpop.permute.xlu0 %2228  ;;  %v1177_v23 = vsel %vm1174_vm0, %v915_v58, %v2235_v12  ;;  %v1178_v63 = vsel %vm1174_vm0, %v2904_v37, %v2236_v36 }
  0x97   : > { %v2953_v41 = vpop.permute.xlu1 %2238  ;;  %v2231_v45 = vunpack.i.h.bf16 %v2229_v48  ;;  %v2230_v22 = vunpack.i.l.bf16 %v2229_v48 }
  0x98   : > { %v2241_v5 = vunpack.i.h.bf16 %v2953_v41  ;;  %v2240_v54 = vunpack.i.l.bf16 %v2953_v41 }
  0x99   : > { %v1188_v21 = vsel %vm1174_vm0, %v2842_v50, %v2231_v45  ;;  %v1187_v15 = vsel %vm1174_vm0, %v925_v51, %v2230_v22 }
  0x9a   : > { %v1180_v29 = vsel %vm1174_vm0, %v2856_v13, %v2241_v5  ;;  %v1179_v9 = vsel %vm1174_vm0, %v917_v60, %v2240_v54 }
  0x9c   : > { %v2244_v57 = vpop.permute.xlu0 %2243 }
  0x9d   : > { %v2970_v47 = vpop.permute.xlu1 %2248  ;;  %v2246_v56 = vunpack.i.h.bf16 %v2244_v57  ;;  %v2245_v59 = vunpack.i.l.bf16 %v2244_v57  ;;  %v672_v57 = vand.u32 15, %v600_v32 }
  0x9e   : > { %v2251_v36 = vunpack.i.h.bf16 %v2970_v47 }
  0x9f   : > { %v1190_v51 = vsel %vm1174_vm0, %v2862_v52, %v2246_v56  ;;  %v1189_v33 = vsel %vm1174_vm0, %v927_v20, %v2245_v59  ;;  %vm3050_vm6 = vcmp.eq.s32.totalorder %v672_v57, 0 }
  0xa0   : > { %v2264_v18 = vpop.permute.xlu0 %2263  ;;  %v1192_v32 = vsel %vm1174_vm0, %v2879_v8, %v2251_v36 }
  0xa1   : > { %v2993_v35 = vpop.permute.xlu1 %2253  ;;  %v2266_v49 = vunpack.i.h.bf16 %v2264_v18  ;;  %v2265_v46 = vunpack.i.l.bf16 %v2264_v18 }
  0xa3   : > { %v1208_v28 = vsel %vm1195_vm3, %v1187_v15, %v2265_v46  ;;  %v1209_v25 = vsel %vm1195_vm3, %v1188_v21, %v2266_v49  ;;  %v2250_v21 = vunpack.i.l.bf16 %v2970_v47  ;;  %v929_v15 = vsel %vm3031_vm5, 0.0, %v2875_v34 }
  0xa4   : > { %v3011_v42 = vpack.c.bf16 %v1209_v25, %v1208_v28  ;;  %v2269_v50 = vpop.permute.xlu0 %2268  ;;  %v616_v34 = vand.u32 15, %v2447_v1  ;;  %v610_v25 = vadd.s32 144, %v2447_v1 }
  0xa5   : > { %v2259_v17 = vpop.permute.xlu1 %2258  ;;  %v2271_v48 = vunpack.i.h.bf16 %v2269_v50  ;;  %v2270_v14 = vunpack.i.l.bf16 %v2269_v50 }
  0xa6   : > { %v2261_v43 = vunpack.i.h.bf16 %v2259_v17  ;;  %v2260_v26 = vunpack.i.l.bf16 %v2259_v17  ;;  %vm3089_vm8 = vcmp.eq.s32.totalorder %v616_v34, 0 }
  0xa7   : > { %v1198_v53 = vsel %vm1195_vm3, %v1177_v23, %v2270_v14  ;;  %v1199_v0 = vsel %vm1195_vm3, %v1178_v63, %v2271_v48  ;;  %v2255_v48 = vunpack.i.l.bf16 %v2993_v35  ;;  %v919_v14 = vsel %vm3068_vm7, 0.0, %v2892_v2 }
  0xa8   : > { %v1206_v44 = vsel %vm1195_vm3, %v1185_v16, %v2260_v26  ;;  %v1207_v10 = vsel %vm1195_vm3, %v1186_v40, %v2261_v43  ;;  %v2284_v3 = vpop.permute.xlu0 %2283  ;;  %v3023_v45 = vpack.c.bf16 %v1199_v0, %v1198_v53  ;;  %v1191_v40 = vsel %vm1174_vm0, %v929_v15, %v2250_v21 }
  0xa9   : > { %v2274_v39 = vpop.permute.xlu1 %2273  ;;  %v3025_v41 = vpack.c.bf16 %v1207_v10, %v1206_v44  ;;  %v2286_v11 = vunpack.i.h.bf16 %v2284_v3  ;;  %v2285_v7 = vunpack.i.l.bf16 %v2284_v3  ;;  %v2256_v26 = vunpack.i.h.bf16 %v2993_v35 }
  0xaa   : > { %v2276_v22 = vunpack.i.h.bf16 %v2274_v39  ;;  %v2275_v37 = vunpack.i.l.bf16 %v2274_v39  ;;  %2122 = vmatprep.mubr.msk.bf16.mxu0 %vm1236_vm4, %v3023_v45  ;;  %v742_v35 = vand.u32 15, %v610_v25  ;;  %v1181_v2 = vsel %vm1174_vm0, %v919_v14, %v2255_v48 }
  0xab   : > { %2130 = vmatprep.mubr.msk.bf16.mxu1 %vm1236_vm4, %v3025_v41  ;;  %v1211_v60 = vsel %vm1195_vm3, %v1190_v51, %v2286_v11  ;;  %v1210_v52 = vsel %vm1195_vm3, %v1189_v33, %v2285_v7  ;;  %v913_v57 = vsel %vm3089_vm8, 0.0, %v2937_v38 }
  0xac   : > { %v1200_v12 = vsel %vm1195_vm3, %v1179_v9, %v2275_v37  ;;  %v1201_v18 = vsel %vm1195_vm3, %v1180_v29, %v2276_v22  ;;  %2131 = vmatmul.mubr.msk.bf16.vlgmr.msra.gmra.mxu1 %vm1236_vm4, %v3011_v42  ;;  %v3048_v49 = vpack.c.bf16 %v1211_v60, %v1210_v52  ;;  %v1182_v29 = vsel %vm1174_vm0, %v2900_v4, %v2256_v26 }
  0xad   : > { %v3046_v20 = vpack.c.bf16 %v1201_v18, %v1200_v12  ;;  %v2279_v58 = vpop.permute.xlu1 %2278  ;;  %2139 = vmatpush3.bf16.msra.mxu1 %v2915_v24  ;;  %v921_v24 = vsel %vm3050_vm6, 0.0, %v2929_v31  ;;  %vm3102_vm9 = vcmp.eq.s32.totalorder %v742_v35, 0 }
  0xae   : > { %v2281_v19 = vunpack.i.h.bf16 %v2279_v58  ;;  %v2280_v16 = vunpack.i.l.bf16 %v2279_v58  ;;  %2134 = vmatprep.mubr.msk.bf16.mxu1 %vm1236_vm4, %v3048_v49  ;;  %v931_v38 = vsel %vm3102_vm9, 0.0, %v2946_v30 }
  0xaf   : > { %2123 = vmatmul.mubr.msk.bf16.vlgmr.msra.gmra.mxu0 %vm1236_vm4, %v3046_v20 }
  0xb0   : > { %2157 = vmatpush3.bf16.msra.mxu0 %v2918_v27  ;;  %v1184_v27 = vsel %vm1174_vm0, %v2925_v6, %v2281_v19  ;;  %v1183_v31 = vsel %vm1174_vm0, %v921_v24, %v2280_v16 }
  0xb1   : > { %v2299_v28 = vpop.permute.xlu1 %2298  ;;  %v2289_v5 = vpop.permute.xlu0 %2288 }
  0xb2   : > { %v2301_v17 = vunpack.i.h.bf16 %v2299_v28  ;;  %v2300_v50 = vunpack.i.l.bf16 %v2299_v28  ;;  %v2291_v23 = vunpack.i.h.bf16 %v2289_v5  ;;  %v2290_v43 = vunpack.i.l.bf16 %v2289_v5 }
  0xb4   : > { %v1204_v1 = vsel %vm1195_vm3, %v1183_v31, %v2300_v50  ;;  %v1205_v8 = vsel %vm1195_vm3, %v1184_v27, %v2301_v17  ;;  %v1213_v54 = vsel %vm1195_vm3, %v1192_v32, %v2291_v23  ;;  %v1212_v6 = vsel %vm1195_vm3, %v1191_v40, %v2290_v43 }
  0xb5   : > { %v1220_v56 = vpack.c.bf16 %v1205_v8, %v1204_v1  ;;  %v1224_v59 = vpack.c.bf16 %v1213_v54, %v1212_v6  ;;  %v2294_v63 = vpop.permute.xlu0 %2293 }
  0xb6   : > { %v2296_v0 = vunpack.i.h.bf16 %v2294_v63  ;;  %v2295_v44 = vunpack.i.l.bf16 %v2294_v63  ;;  %v2309_v10 = vpop.permute.xlu1 %2308 }
  0xb7   : > { %2135 = vmatmul.mubr.msk.bf16.gmra.mxu1 %vm1236_vm4, %v1224_v59  ;;  %v2311_v11 = vunpack.i.h.bf16 %v2309_v10  ;;  %v2310_v7 = vunpack.i.l.bf16 %v2309_v10 }
  0xb8   : > { %v1203_v39 = vsel %vm1195_vm3, %v1182_v29, %v2296_v0  ;;  %v1202_v3 = vsel %vm1195_vm3, %v1181_v2, %v2295_v44 }
  0xb9   : > { %v1219_v22 = vpack.c.bf16 %v1203_v39, %v1202_v3  ;;  %v2304_v37 = vpop.permute.xlu0 %2303 }
  0xba   : > { %v2306_v4 = vunpack.i.h.bf16 %v2304_v37  ;;  %v2305_v51 = vunpack.i.l.bf16 %v2304_v37  ;;  %v2319_v33 = vpop.permute.xlu1 %2318 }
  0xbb   : > { %2126 = vmatprep.mubr.msk.bf16.mxu0 %vm1236_vm4, %v1219_v22  ;;  %v2321_v55 = vunpack.i.h.bf16 %v2319_v33  ;;  %v2320_v46 = vunpack.i.l.bf16 %v2319_v33 }
  0xbc   : > { %v1176_v13 = vsel %vm1174_vm0, %v2933_v61, %v2306_v4  ;;  %v1175_v12 = vsel %vm1174_vm0, %v913_v57, %v2305_v51  ;;  %2127 = vmatmul.mubr.msk.bf16.gmra.mxu0 %vm1236_vm4, %v1220_v56 }
  0xbd   : > { %v1196_v18 = vsel %vm1195_vm3, %v1175_v12, %v2310_v7  ;;  %v1197_v60 = vsel %vm1195_vm3, %v1176_v13, %v2311_v11  ;;  %2158 = vmatprep.mubr.msk.bf16.mxu0 %vm1236_vm4, %v3046_v20  ;;  %v2314_v52 = vpop.permute.xlu0 %2313 }
  0xbe   : > { %v1216_v58 = vpack.c.bf16 %v1197_v60, %v1196_v18  ;;  %v2316_v61 = vunpack.i.h.bf16 %v2314_v52  ;;  %v2315_v36 = vunpack.i.l.bf16 %v2314_v52 }
  0xc0   : > { %2140 = vmatprep.mubr.msk.bf16.mxu1 %vm1236_vm4, %v1216_v58  ;;  %v1194_v21 = vsel %vm1174_vm0, %v2942_v62, %v2316_v61  ;;  %v1193_v30 = vsel %vm1174_vm0, %v931_v38, %v2315_v36 }
  0xc1   : > { %2141 = vmatmul.mubr.msk.bf16.vlgmr.msra.gmra.mxu1 %vm1236_vm4, %v3023_v45  ;;  %v1214_v15 = vsel %vm1195_vm3, %v1193_v30, %v2320_v46  ;;  %v1215_v19 = vsel %vm1195_vm3, %v1194_v21, %v2321_v55 }
  0xc2   : > { %2144 = vmatprep.mubr.msk.bf16.mxu1 %vm1236_vm4, %v3046_v20  ;;  %v1225_v16 = vpack.c.bf16 %v1215_v19, %v1214_v15 }
  0xc4   : > { %2159 = vmatmul.mubr.msk.bf16.vlgmr.msra.gmra.mxu0 %vm1236_vm4, %v1219_v22 }
  0xc5   : > { %2162 = vmatprep.mubr.msk.bf16.mxu0 %vm1236_vm4, %v1220_v56 }
  0xc9   : > { %2145 = vmatmul.mubr.msk.bf16.gmra.mxu1 %vm1236_vm4, %v1219_v22 }
  0xca   : > { %2148 = vmatprep.mubr.msk.bf16.mxu1 %vm1236_vm4, %v1220_v56 }
  0xcc   : > { %2163 = vmatmul.mubr.msk.bf16.gmra.mxu0 %vm1236_vm4, %v3025_v41 }
  0xcd   : > { %2166 = vmatprep.mubr.msk.bf16.mxu0 %vm1236_vm4, %v3011_v42 }
  0xd1   : > { %2149 = vmatmul.mubr.msk.bf16.gmra.mxu1 %vm1236_vm4, %v3025_v41 }
  0xd2   : > { %2152 = vmatprep.mubr.msk.bf16.mxu1 %vm1236_vm4, %v3011_v42 }
  0xd4   : > { %2167 = vmatmul.mubr.msk.bf16.gmra.mxu0 %vm1236_vm4, %v3048_v49 }
  0xd5   : > { %2170 = vmatprep.mubr.msk.bf16.mxu0 %vm1236_vm4, %v1224_v59 }
  0xd9   : > { %2153 = vmatmul.mubr.msk.bf16.gmra.mxu1 %vm1236_vm4, %v3048_v49 }
  0xdc   : > { %2171 = vmatmul.mubr.msk.bf16.gmra.mxu0 %vm1236_vm4, %v1225_v16 }
 0x16c   : > { %v3146_v62 = vpop.f32.mrf.mxu1 }
 0x16e   : > { %v3148_v45 = vpop.f32.mrf.mxu1 }
 0x16f   : > { %v2124_v20 = vpop.f32.mrf.mxu0 }
 0x170   : > { %v3150_v24 = vpop.f32.mrf.mxu1 }
 0x171   : > { %v1299_v41 = vpop.f32.mrf.mxu0 }
 0x172   : > { %v3153_v42 = vpop.f32.mrf.mxu1 }
 0x173   : > { %v2125_v47 = vpop.f32.mrf.mxu0 }
 0x175   : > { %v1302_v49 = vpop.f32.mrf.mxu0 }
 0x177   : > { %v3158_v28 = vpop.f32.mrf.mxu1 }
 0x179   : > { %v3161_v34 = vpop.f32.mrf.mxu1 }
 0x17b   : > { %v3163_v25 = vpop.f32.mrf.mxu1 }
 0x17c   : > { %v2128_v32 = vpop.f32.mrf.mxu0 }
 0x17d   : > { %v3165_v40 = vpop.f32.mrf.mxu1 }
 0x17e   : > { %v1315_v5 = vpop.f32.mrf.mxu0 }
 0x180   : > { %v2129_v17 = vpop.f32.mrf.mxu0 }
 0x181   : > { %v2142_v50 = vpop.f32.mrf.mxu1 }
 0x182   : > { %v1416_v27 = vadd.f32 %v2142_v50, %v2124_v20  ;;  %v1318_v31 = vpop.f32.mrf.mxu0 }
 0x183   : > { %v1407_v23 = vpop.f32.mrf.mxu1 }
 0x184   : > { %v1408_v43 = vadd.f32 %v1407_v23, %v1299_v41  ;;  %v2160_v26 = vpop.f32.mrf.mxu0 }
 0x185   : > { %v1583_v48 = vadd.f32 %v2160_v26, %v1416_v27  ;;  %v2143_v1 = vpop.f32.mrf.mxu1 }
 0x186   : > { %v1419_v8 = vadd.f32 %v2143_v1, %v2125_v47  ;;  %v1518_v14 = vpop.f32.mrf.mxu0 }
 0x187   : > { %v2032_v54 = vpack.c.bf16 %v1583_v48, %v1583_v48  ;;  %v1581_v6 = vadd.f32 %v1518_v14, %v1408_v43  ;;  %v1410_v56 = vpop.f32.mrf.mxu1  ;;  %v1717_v3 = vmul.f32 %v1583_v48, %v1583_v48  ;;  %v1681_v13 = vsel %vm1174_vm0, %v1583_v48, 0.0 }
 0x188   : > { %v1411_v59 = vadd.f32 %v1410_v56, %v1302_v49  ;;  %v2161_v63 = vpop.f32.mrf.mxu0 }
 0x189   : > { %v2030_v53 = vpack.c.bf16 %v1581_v6, %v1581_v6  ;;  %v2146_v35 = vpop.f32.mrf.mxu1  ;;  %1664 = vst.msk [vmem:[%s3170_s9 + $0x8] sm:$0xf] %vm1661_vm10, %v2032_v54  ;;  %v1584_v0 = vadd.f32 %v2161_v63, %v1419_v8  ;;  %v1715_v29 = vmul.f32 %v1581_v6, %v1581_v6  ;;  %v1678_v57 = vsel %vm1174_vm0, %v1581_v6, 0.0 }
 0x18a   : > { %v1432_v44 = vadd.f32 %v2146_v35, %v2128_v32  ;;  %v1521_v10 = vpop.f32.mrf.mxu0  ;;  %v1734_v19 = vsel %vm1174_vm0, %v1717_v3, 0.0 }
 0x18b   : > { %v1582_v2 = vadd.f32 %v1521_v10, %v1411_v59  ;;  %v1423_v39 = vpop.f32.mrf.mxu1  ;;  %1662 = vst.msk [vmem:[%s3170_s9] sm:$0xf] %vm1661_vm10, %v2030_v53  ;;  %v2033_v22 = vpack.c.bf16 %v1584_v0, %v1584_v0  ;;  %v1731_v60 = vsel %vm1174_vm0, %v1715_v29, 0.0  ;;  %v1718_v52 = vmul.f32 %v1584_v0, %v1584_v0 }
 0x18c   : > { %v1424_v37 = vadd.f32 %v1423_v39, %v1315_v5  ;;  %v2164_v11 = vpop.f32.mrf.mxu0  ;;  %v1683_v16 = vsel %vm1174_vm0, %v1584_v0, 0.0 }
 0x18d   : > { %v2031_v7 = vpack.c.bf16 %v1582_v2, %v1582_v2  ;;  %v1679_v9 = vsel %vm1174_vm0, %v1582_v2, 0.0  ;;  %v1716_v4 = vmul.f32 %v1582_v2, %v1582_v2  ;;  %v1587_v51 = vadd.f32 %v2164_v11, %v1432_v44  ;;  %v2147_v33 = vpop.f32.mrf.mxu1  ;;  %1665 = vst.msk [vmem:[%s3170_s9 + $0xc] sm:$0xf] %vm1661_vm10, %v2033_v22 }
 0x18e   : > { %v1680_v12 = vadd.f32 %v1679_v9, %v1678_v57  ;;  %v1435_v38 = vadd.f32 %v2147_v33, %v2129_v17  ;;  %v1534_v18 = vpop.f32.mrf.mxu0  ;;  %v1736_v17 = vsel %vm1174_vm0, %v1718_v52, 0.0 }
 0x18f   : > { %v1732_v55 = vsel %vm1174_vm0, %v1716_v4, 0.0  ;;  %v2036_v46 = vpack.c.bf16 %v1587_v51, %v1587_v51  ;;  %v1426_v58 = vpop.f32.mrf.mxu1  ;;  %1663 = vst.msk [vmem:[%s3170_s9 + $0x4] sm:$0xf] %vm1661_vm10, %v2031_v7  ;;  %v1585_v21 = vadd.f32 %v1534_v18, %v1424_v37  ;;  %v1721_v14 = vmul.f32 %v1587_v51, %v1587_v51 }
 0x190   : > { %v1682_v61 = vadd.f32 %v1681_v13, %v1680_v12  ;;  %v1733_v36 = vadd.f32 %v1732_v55, %v1731_v60  ;;  %v1427_v30 = vadd.f32 %v1426_v58, %v1318_v31  ;;  %v2165_v15 = vpop.f32.mrf.mxu0  ;;  %v1689_v3 = vsel %vm1174_vm0, %v1587_v51, 0.0 }
 0x191   : > { %v1588_v20 = vadd.f32 %v2165_v15, %v1435_v38  ;;  %v2150_v41 = vpop.f32.mrf.mxu1  ;;  %1668 = vst.msk [vmem:[%s3170_s9 + $0x18] sm:$0xf] %vm1661_vm10, %v2036_v46  ;;  %v2034_v49 = vpack.c.bf16 %v1585_v21, %v1585_v21  ;;  %v1685_v50 = vsel %vm1174_vm0, %v1585_v21, 0.0  ;;  %v1719_v27 = vmul.f32 %v1585_v21, %v1585_v21 }
 0x192   : > { %v1735_v47 = vadd.f32 %v1734_v19, %v1733_v36  ;;  %v1684_v32 = vadd.f32 %v1683_v16, %v1682_v61  ;;  %v1537_v5 = vpop.f32.mrf.mxu0  ;;  %v1448_v48 = vadd.f32 %v2150_v41, %v3146_v62  ;;  %v1742_v37 = vsel %vm1174_vm0, %v1721_v14, 0.0 }
 0x193   : > { %v2037_v31 = vpack.c.bf16 %v1588_v20, %v1588_v20  ;;  %v1439_v23 = vpop.f32.mrf.mxu1  ;;  %v1586_v1 = vadd.f32 %v1537_v5, %v1427_v30  ;;  %1666 = vst.msk [vmem:[%s3170_s9 + $0x10] sm:$0xf] %vm1661_vm10, %v2034_v49  ;;  %v1738_v54 = vsel %vm1174_vm0, %v1719_v27, 0.0  ;;  %v1722_v6 = vmul.f32 %v1588_v20, %v1588_v20 }
 0x194   : > { %v1686_v43 = vadd.f32 %v1685_v50, %v1684_v32  ;;  %v1737_v26 = vadd.f32 %v1736_v17, %v1735_v47  ;;  %v2168_v8 = vpop.f32.mrf.mxu0  ;;  %v1440_v56 = vadd.f32 %v1439_v23, %v3148_v45 }
 0x195   : > { %v2151_v59 = vpop.f32.mrf.mxu1  ;;  %1669 = vst.msk [vmem:[%s3170_s9 + $0x1c] sm:$0xf] %vm1661_vm10, %v2037_v31  ;;  %v2035_v53 = vpack.c.bf16 %v1586_v1, %v1586_v1  ;;  %v1687_v35 = vsel %vm1174_vm0, %v1586_v1, 0.0  ;;  %v1720_v0 = vmul.f32 %v1586_v1, %v1586_v1  ;;  %v1591_v10 = vadd.f32 %v2168_v8, %v1448_v48 }
 0x196   : > { %v1739_v63 = vadd.f32 %v1738_v54, %v1737_v26  ;;  %v1550_v62 = vpop.f32.mrf.mxu0  ;;  %v1688_v44 = vadd.f32 %v1687_v35, %v1686_v43  ;;  %v1451_v29 = vadd.f32 %v2151_v59, %v3150_v24  ;;  %v1691_v24 = vsel %vm1174_vm0, %v1588_v20, 0.0 }
 0x197   : > { %v1589_v2 = vadd.f32 %v1550_v62, %v1440_v56  ;;  %v1442_v39 = vpop.f32.mrf.mxu1  ;;  %v1740_v45 = vsel %vm1174_vm0, %v1720_v0, 0.0  ;;  %1667 = vst.msk [vmem:[%s3170_s9 + $0x14] sm:$0xf] %vm1661_vm10, %v2035_v53  ;;  %v2040_v9 = vpack.c.bf16 %v1591_v10, %v1591_v10  ;;  %v1744_v33 = vsel %vm1174_vm0, %v1722_v6, 0.0 }
 0x198   : > { %v1443_v57 = vadd.f32 %v1442_v39, %v3153_v42  ;;  %v2169_v22 = vpop.f32.mrf.mxu0  ;;  %v1690_v11 = vadd.f32 %v1689_v3, %v1688_v44  ;;  %v1741_v7 = vadd.f32 %v1740_v45, %v1739_v63  ;;  %v1697_v55 = vsel %vm1174_vm0, %v1591_v10, 0.0 }
 0x199   : > { %v2154_v4 = vpop.f32.mrf.mxu1  ;;  %v2038_v51 = vpack.c.bf16 %v1589_v2, %v1589_v2  ;;  %v1723_v13 = vmul.f32 %v1589_v2, %v1589_v2  ;;  %v1592_v18 = vadd.f32 %v2169_v22, %v1451_v29  ;;  %1672 = vst.msk [vmem:[%s3170_s9 + $0x28] sm:$0xf] %vm1661_vm10, %v2040_v9  ;;  %v1693_v46 = vsel %vm1174_vm0, %v1589_v2, 0.0 }
 0x19a   : > { %v1553_v12 = vpop.f32.mrf.mxu0  ;;  %v1743_v38 = vadd.f32 %v1742_v37, %v1741_v7  ;;  %v1692_v42 = vadd.f32 %v1691_v24, %v1690_v11  ;;  %v1464_v60 = vadd.f32 %v2154_v4, %v3158_v28  ;;  %v1725_v21 = vmul.f32 %v1591_v10, %v1591_v10 }
 0x19b   : > { %v1455_v52 = vpop.f32.mrf.mxu1  ;;  %v1590_v58 = vadd.f32 %v1553_v12, %v1443_v57  ;;  %1670 = vst.msk [vmem:[%s3170_s9 + $0x20] sm:$0xf] %vm1661_vm10, %v2038_v51  ;;  %v2041_v19 = vpack.c.bf16 %v1592_v18, %v1592_v18  ;;  %v1746_v28 = vsel %vm1174_vm0, %v1723_v13, 0.0  ;;  %v1726_v27 = vmul.f32 %v1592_v18, %v1592_v18 }
 0x19c   : > { %v1456_v61 = vadd.f32 %v1455_v52, %v3161_v34  ;;  %v2172_v36 = vpop.f32.mrf.mxu0  ;;  %v1694_v30 = vadd.f32 %v1693_v46, %v1692_v42  ;;  %v1745_v15 = vadd.f32 %v1744_v33, %v1743_v38  ;;  %v1750_v14 = vsel %vm1174_vm0, %v1725_v21, 0.0 }
 0x19d   : > { %v2155_v16 = vpop.f32.mrf.mxu1  ;;  %v2039_v20 = vpack.c.bf16 %v1590_v58, %v1590_v58  ;;  %v1695_v41 = vsel %vm1174_vm0, %v1590_v58, 0.0  ;;  %v1724_v47 = vmul.f32 %v1590_v58, %v1590_v58  ;;  %v1595_v34 = vadd.f32 %v2172_v36, %v1464_v60  ;;  %1673 = vst.msk [vmem:[%s3170_s9 + $0x2c] sm:$0xf] %vm1661_vm10, %v2041_v19 }
 0x19e   : > { %v1566_v49 = vpop.f32.mrf.mxu0  ;;  %v1747_v32 = vadd.f32 %v1746_v28, %v1745_v15  ;;  %v1696_v5 = vadd.f32 %v1695_v41, %v1694_v30  ;;  %v1467_v17 = vadd.f32 %v2155_v16, %v3163_v25  ;;  %v1699_v25 = vsel %vm1174_vm0, %v1592_v18, 0.0 }
 0x19f   : > { %v1458_v50 = vpop.f32.mrf.mxu1  ;;  %v1748_v31 = vsel %vm1174_vm0, %v1724_v47, 0.0  ;;  %v1593_v23 = vadd.f32 %v1566_v49, %v1456_v61  ;;  %1671 = vst.msk [vmem:[%s3170_s9 + $0x24] sm:$0xf] %vm1661_vm10, %v2039_v20  ;;  %v2044_v8 = vpack.c.bf16 %v1595_v34, %v1595_v34  ;;  %v1729_v62 = vmul.f32 %v1595_v34, %v1595_v34 }
 0x1a0   : > { %v1459_v43 = vadd.f32 %v1458_v50, %v3165_v40  ;;  %v2173_v26 = vpop.f32.mrf.mxu0  ;;  %v1698_v48 = vadd.f32 %v1697_v55, %v1696_v5  ;;  %v1749_v1 = vadd.f32 %v1748_v31, %v1747_v32  ;;  %v1752_v40 = vsel %vm1174_vm0, %v1726_v27, 0.0 }
 0x1a1   : > { %v2042_v54 = vpack.c.bf16 %v1593_v23, %v1593_v23  ;;  %v1727_v6 = vmul.f32 %v1593_v23, %v1593_v23  ;;  %v1596_v53 = vadd.f32 %v2173_v26, %v1467_v17  ;;  %1676 = vst.msk [vmem:[%s3170_s9 + $0x38] sm:$0xf] %vm1661_vm10, %v2044_v8  ;;  %v1701_v0 = vsel %vm1174_vm0, %v1593_v23, 0.0 }
 0x1a2   : > { %v1569_v56 = vpop.f32.mrf.mxu0  ;;  %v1751_v59 = vadd.f32 %v1750_v14, %v1749_v1  ;;  %v1700_v63 = vadd.f32 %v1699_v25, %v1698_v48  ;;  %v1705_v37 = vsel %vm1174_vm0, %v1595_v34, 0.0  ;;  %v1758_v24 = vsel %vm1174_vm0, %v1729_v62, 0.0 }
 0x1a3   : > { %v1594_v35 = vadd.f32 %v1569_v56, %v1459_v43  ;;  %1674 = vst.msk [vmem:[%s3170_s9 + $0x30] sm:$0xf] %vm1661_vm10, %v2042_v54  ;;  %v2045_v29 = vpack.c.bf16 %v1596_v53, %v1596_v53  ;;  %v1754_v2 = vsel %vm1174_vm0, %v1727_v6, 0.0  ;;  %v1730_v11 = vmul.f32 %v1596_v53, %v1596_v53 }
 0x1a4   : > { %v1702_v44 = vadd.f32 %v1701_v0, %v1700_v63  ;;  %v1753_v10 = vadd.f32 %v1752_v40, %v1751_v59  ;;  %v1707_v33 = vsel %vm1174_vm0, %v1596_v53, 0.0 }
 0x1a5   : > { %v2043_v39 = vpack.c.bf16 %v1594_v35, %v1594_v35  ;;  %v1703_v3 = vsel %vm1174_vm0, %v1594_v35, 0.0  ;;  %v1728_v45 = vmul.f32 %v1594_v35, %v1594_v35  ;;  %1677 = vst.msk [vmem:[%s3170_s9 + $0x3c] sm:$0xf] %vm1661_vm10, %v2045_v29  ;;  %v1760_v12 = vsel %vm1174_vm0, %v1730_v11, 0.0 }
 0x1a6   : > { %v1755_v57 = vadd.f32 %v1754_v2, %v1753_v10  ;;  %v1704_v22 = vadd.f32 %v1703_v3, %v1702_v44 }
 0x1a7   : > { %v1756_v7 = vsel %vm1174_vm0, %v1728_v45, 0.0  ;;  %1675 = vst.msk [vmem:[%s3170_s9 + $0x34] sm:$0xf] %vm1661_vm10, %v2043_v39 }
 0x1a8   : > { %v1706_v9 = vadd.f32 %v1705_v37, %v1704_v22  ;;  %v1757_v4 = vadd.f32 %v1756_v7, %v1755_v57 }
 0x1aa   : > { %v1708_v51 = vadd.f32 %v1707_v33, %v1706_v9  ;;  %v1759_v13 = vadd.f32 %v1758_v24, %v1757_v4 }
 0x1ac   : > { %v1761_v38 = vadd.f32 %v1760_v12, %v1759_v13  ;;  %v1709_v58 = vrot.slane %v1708_v51, 4 }
 0x1ae   : > { %v1762_v42 = vrot.slane %v1761_v38, 4  ;;  %v1710_v61 = vadd.f32 %v1709_v58, %v1708_v51 }
 0x1b0   : > { %v1763_v18 = vadd.f32 %v1762_v42, %v1761_v38  ;;  %v1711_v36 = vrot.slane %v1710_v61, 2 }
 0x1b2   : > { %v1764_v60 = vrot.slane %v1763_v18, 2  ;;  %v1712_v21 = vadd.f32 %v1711_v36, %v1710_v61 }
 0x1b4   : > { %v1765_v52 = vadd.f32 %v1764_v60, %v1763_v18  ;;  %v1713_v30 = vrot.slane %v1712_v21, 1 }
 0x1b6   : > { %v1766_v55 = vrot.slane %v1765_v52, 1  ;;  %v1714_v15 = vadd.f32 %v1713_v30, %v1712_v21 }
 0x1b8   : > { %v1767_v46 = vadd.f32 %v1766_v55, %v1765_v52 }
 0x1ba   : > { %1769 = vrot.lane.b32.xlu0 %v1767_v46, %s2365_s10 }
 0x22c   : > { %v1770_v19 = vpop.permute.xlu0 %1769 }
 0x22d   : > { %v1772_v16 = vsel %vm1174_vm0, %v1714_v15, %v1770_v19 }
 0x22e   : > { %1774 = vst.msk [vmem:[%s461_s12] sm:$0x1] %vm1773_vm11, %v1772_v16 }
 0x22f PF: > { %s18_s28 = sadd.s32 1, %s2363_s28   ;;  %s3311_s24 = smov %s2355_s26 }
 0x230   : > { %p15_p0 = scmp.ge.s32.totalorder %s18_s28, 6   ;;  %s3312_s25 = smov %s2359_s27 }
 0x231   : > { %s3313_s26 = smov %s3316_s29  ;;  %s3314_s27 = smov %s3320_s30 }
 0x232   :  { %17 = sbr.rel (!%p15_p0) target bundleno = 3 (0x3), region = 94 }

</bundles_post_ra>
